<compile_context>
chip_gen: v5e
topology: v5e:2x2
jax: 0.10.0
libtpu: 0.0.40
codegen_flags: <defaults>
</compile_context>

<pallas_src>
import jax
import jax.numpy as jnp
from jax import lax
from jax.experimental import pallas as pl
from jax.experimental.pallas import tpu as pltpu


def _round_up(x, m):
    return (x + m - 1) // m * m


# ---------------------------------------------------------------------------
# Pallas LSTM kernel: one grid step == one block of T_BLK time steps
# ---------------------------------------------------------------------------
def _lstm_block_kernel(x_ref, wih_hbm, whh_hbm, b_ref, out_ref,
                       wih_vmem, whh_vmem, xw_scr, h_scr, c_scr, dma_sem):
    """Refs:
      x_ref   : (T_BLK, Bp, Dp)   current time-block input (VMEM, pipelined)
      wih_hbm : (Dp, 4Hp)  bf16   input->gates weight, left in HBM (pl.ANY)
      whh_hbm : (Hp, 4Hp)  bf16   hidden->gates weight, left in HBM (pl.ANY)
      b_ref   : (1, 4Hp)   f32    combined bias (b_ih + b_hh), gate-padded
      out_ref : (T_BLK, Bp, Hp)   this block's hidden outputs
      wih_vmem/whh_vmem           single-buffered VMEM copies of the weights
      xw_scr  : (T_BLK, Bp, 4Hp)  hoisted x @ W_ih + b for the whole block
      h_scr, c_scr : (Bp, Hp)     carried hidden / cell state (persist on grid)
      dma_sem : DMA((2,))         semaphores for the one-time weight fetch
    Gate order matches PyTorch nn.LSTM: [i, f, g, o].
    """
    tb = pl.program_id(0)
    t_blk, bp, dp = x_ref.shape
    hp = h_scr.shape[1]

    @pl.when(tb == 0)
    def _init():
        # AWDLSTM._init_hidden -> zeros; fetch grid-invariant weights once.
        h_scr[...] = jnp.zeros_like(h_scr)
        c_scr[...] = jnp.zeros_like(c_scr)
        cp_ih = pltpu.make_async_copy(wih_hbm, wih_vmem, dma_sem.at[0])
        cp_hh = pltpu.make_async_copy(whh_hbm, whh_vmem, dma_sem.at[1])
        cp_ih.start()
        cp_hh.start()
        cp_ih.wait()
        cp_hh.wait()

    # ---- time-parallel input projection, hoisted out of the recurrence -----
    # One (T_BLK*Bp, Dp) x (Dp, 4Hp) matmul per block (MXU-friendly) instead of
    # a tiny per-step matmul.  bf16 operands, f32 accumulation.
    x_blk = x_ref[...].reshape(t_blk * bp, dp).astype(jnp.bfloat16)
    xw = jnp.dot(x_blk, wih_vmem[...], preferred_element_type=jnp.float32)
    xw = xw + b_ref[...]                       # (T_BLK*Bp, 4Hp) + (1, 4Hp)
    xw_scr[...] = xw.reshape(t_blk, bp, 4 * hp)

    # ---- serial recurrence over the time block ------------------------------
    def step(t, carry):
        h, c = carry                           # f32 carries
        gates = xw_scr[t] + jnp.dot(h.astype(jnp.bfloat16), whh_vmem[...],
                                    preferred_element_type=jnp.float32)
        # Lane-aligned gate slices (hp is a multiple of 128); order [i,f,g,o].
        # Note: 3 sigmoid + 2 tanh per element all share the single EUP slot;
        # they overlap the h@W_hh matmul for realistic hidden sizes.
        i_g = jax.nn.sigmoid(gates[:, 0 * hp:1 * hp])
        f_g = jax.nn.sigmoid(gates[:, 1 * hp:2 * hp])
        g_g = jnp.tanh(gates[:, 2 * hp:3 * hp])
        o_g = jax.nn.sigmoid(gates[:, 3 * hp:4 * hp])
        c_new = f_g * c + i_g * g_g
        h_new = o_g * jnp.tanh(c_new)
        out_ref[t] = h_new.astype(out_ref.dtype)
        return h_new, c_new

    h_fin, c_fin = lax.fori_loop(0, t_blk, step, (h_scr[...], c_scr[...]),
                                 unroll=True)
    h_scr[...] = h_fin
    c_scr[...] = c_fin


def lstm_layer_pallas(x_tm, w_ih, w_hh, b_ih, b_hh, *, t_blk=16,
                      weight_dtype=jnp.bfloat16):
    """Run one LSTM layer over a full (possibly already padded) sequence.

    x_tm : (S, B, Din)  time-major input, f32 (Din may exceed w_ih.shape[1]
                        with zero columns when chaining padded layer outputs)
    w_ih : (4H, Hin)    PyTorch weight_ih_l0 layout
    w_hh : (4H, H)      PyTorch weight_hh_l0 layout
    b_ih, b_hh : (4H,)
    returns (Sp, Bp, Hp) padded time-major hidden outputs (padding is zero in
    the hidden dim; padded batch rows / time steps carry don't-care values).
    """
    S, B, Din = x_tm.shape
    H = w_hh.shape[1]
    Hin = w_ih.shape[1]
    assert w_ih.shape[0] == 4 * H and Hin <= Din

    bp = _round_up(B, 8)            # sublane alignment
    hp = _round_up(H, 128)          # lane alignment (gate-aware below)
    dp = _round_up(Din, 128)
    t_blk = max(1, min(t_blk, S))
    sp = _round_up(S, t_blk)

    x_p = jnp.asarray(x_tm, jnp.float32)
    if (sp, bp, dp) != (S, B, Din):
        x_p = jnp.pad(x_p, ((0, sp - S), (0, bp - B), (0, dp - Din)))

    # Gate-aware padding: pad each of the [i|f|g|o] blocks to Hp so gate k
    # occupies lane-aligned columns [k*Hp, (k+1)*Hp).
    wih_t = jnp.asarray(w_ih, jnp.float32).T.reshape(Hin, 4, H)
    wih_t = jnp.pad(wih_t, ((0, dp - Hin), (0, 0), (0, hp - H)))
    wih_t = wih_t.reshape(dp, 4 * hp).astype(weight_dtype)

    whh_t = jnp.asarray(w_hh, jnp.float32).T.reshape(H, 4, H)
    whh_t = jnp.pad(whh_t, ((0, hp - H), (0, 0), (0, hp - H)))
    whh_t = whh_t.reshape(hp, 4 * hp).astype(weight_dtype)

    bias = jnp.asarray(b_ih + b_hh, jnp.float32).reshape(4, H)
    bias = jnp.pad(bias, ((0, 0), (0, hp - H))).reshape(1, 4 * hp)

    grid = (sp // t_blk,)
    out = pl.pallas_call(
        _lstm_block_kernel,
        out_shape=jax.ShapeDtypeStruct((sp, bp, hp), jnp.float32),
        grid_spec=pltpu.PrefetchScalarGridSpec(
            num_scalar_prefetch=0,
            grid=grid,
            in_specs=[
                pl.BlockSpec((t_blk, bp, dp), lambda tb: (tb, 0, 0)),
                pl.BlockSpec(memory_space=pl.ANY),    # W_ih: DMA'd once @ tb==0
                pl.BlockSpec(memory_space=pl.ANY),    # W_hh: DMA'd once @ tb==0
                pl.BlockSpec((1, 4 * hp), lambda tb: (0, 0)),
            ],
            out_specs=pl.BlockSpec((t_blk, bp, hp), lambda tb: (tb, 0, 0)),
            scratch_shapes=[
                pltpu.VMEM((dp, 4 * hp), weight_dtype),        # W_ih (1 copy)
                pltpu.VMEM((hp, 4 * hp), weight_dtype),        # W_hh (1 copy)
                pltpu.VMEM((t_blk, bp, 4 * hp), jnp.float32),  # hoisted x@W_ih
                pltpu.VMEM((bp, hp), jnp.float32),             # h carry
                pltpu.VMEM((bp, hp), jnp.float32),             # c carry
                pltpu.SemaphoreType.DMA((2,)),
            ],
        ),
        compiler_params=pltpu.CompilerParams(
            # recurrence over time -> sequential grid axis
            dimension_semantics=("arbitrary",),
            # sized so single-buffered bf16 weights + block activations fit
            # comfortably under v7x's 64 MiB physical VMEM (v5e/v6e have 128).
            vmem_limit_bytes=48 * 1024 * 1024,
        ),
    )(x_p, wih_t, whh_t, bias)
    # TODO(synk): on v7x a leading "parallel" batch-chunk grid axis would use
    # the second TensorCore; skipped here (batch is tiny and it is a no-op on
    # the single-TC v5e/v6e parts).
    return out


# ---------------------------------------------------------------------------
# AWD-LSTM forward (eval mode): embedding (glue) + stacked Pallas LSTM layers
# ---------------------------------------------------------------------------
def awd_lstm_forward(params, token_ids, *, t_blk=16):
    """token_ids: (B, S) int32.  Returns (raw_outputs, outputs): per-layer
    batch_first tensors of shape (B, S, n_hid) / (B, S, embed_size) for the
    last layer — matching the PyTorch module (dropouts identity in eval)."""
    B, S = token_ids.shape
    emb = jnp.take(params["embedding"], token_ids, axis=0)    # (B, S, E) gather
    x = jnp.transpose(emb, (1, 0, 2)).astype(jnp.float32)     # time-major

    raw_outputs, outputs = [], []
    for layer in params["layers"]:
        H = layer["w_hh"].shape[1]
        y_pad = lstm_layer_pallas(x, layer["w_ih"], layer["w_hh"],
                                  layer["b_ih"], layer["b_hh"], t_blk=t_blk)
        y_bf = jnp.transpose(y_pad[:S, :B, :H], (1, 0, 2))    # (B, S, H)
        raw_outputs.append(y_bf)
        outputs.append(y_bf)     # hidden_dropout is identity in eval
        x = y_pad                # chain padded, time-major (no transpose/unpad)
    return raw_outputs, outputs


# ---------------------------------------------------------------------------
# Pure-JAX f32 reference (for a loose numerical self-check)
# ---------------------------------------------------------------------------
def _lstm_layer_ref(x_tm, w_ih, w_hh, b_ih, b_hh):
    S, B, _ = x_tm.shape
    H = w_hh.shape[1]
    h = jnp.zeros((B, H), jnp.float32)
    c = jnp.zeros((B, H), jnp.float32)
    wih_t, whh_t, b = w_ih.T, w_hh.T, b_ih + b_hh
    outs = []
    for t in range(S):
        gates = x_tm[t] @ wih_t + h @ whh_t + b
        i = jax.nn.sigmoid(gates[:, 0 * H:1 * H])
        f = jax.nn.sigmoid(gates[:, 1 * H:2 * H])
        g = jnp.tanh(gates[:, 2 * H:3 * H])
        o = jax.nn.sigmoid(gates[:, 3 * H:4 * H])
        c = f * c + i * g
        h = o * jnp.tanh(c)
        outs.append(h)
    return jnp.stack(outs, axis=0)


def awd_lstm_forward_ref(params, token_ids):
    emb = jnp.take(params["embedding"], token_ids, axis=0)
    x = jnp.transpose(emb, (1, 0, 2)).astype(jnp.float32)
    outs = []
    for layer in params["layers"]:
        y = _lstm_layer_ref(x, layer["w_ih"], layer["w_hh"],
                            layer["b_ih"], layer["b_hh"])
        outs.append(jnp.transpose(y, (1, 0, 2)))
        x = y
    return outs


# ---------------------------------------------------------------------------
# Deterministic parameter construction (mirrors AWDLSTM.__init__ shapes)
# ---------------------------------------------------------------------------
def make_params(key, vocab_size, embed_size, n_hid, n_layers, pad_token):
    keys = jax.random.split(key, 1 + 4 * n_layers)
    init_range = 0.1
    embedding = jax.random.uniform(
        keys[0], (vocab_size, embed_size), jnp.float32, -init_range, init_range)
    embedding = embedding.at[pad_token].set(0.0)   # padding_idx row

    layers = []
    k = 1
    for l in range(n_layers):
        in_dim = embed_size if l == 0 else n_hid
        out_dim = n_hid if l != n_layers - 1 else embed_size
        stdv = 1.0 / float(out_dim) ** 0.5
        w_ih = jax.random.uniform(keys[k], (4 * out_dim, in_dim), jnp.float32, -stdv, stdv)
        w_hh = jax.random.uniform(keys[k + 1], (4 * out_dim, out_dim), jnp.float32, -stdv, stdv)
        b_ih = jax.random.uniform(keys[k + 2], (4 * out_dim,), jnp.float32, -stdv, stdv)
        b_hh = jax.random.uniform(keys[k + 3], (4 * out_dim,), jnp.float32, -stdv, stdv)
        k += 4
        layers.append(dict(w_ih=w_ih, w_hh=w_hh, b_ih=b_ih, b_hh=b_hh))
    return dict(embedding=embedding, layers=layers)


if __name__ == "__main__":
    # Small, module-consistent shapes.
    vocab_size, embed_size, n_hid, n_layers = 64, 32, 64, 3
    pad_token = 0
    batch, seq_len = 2, 8

    key = jax.random.PRNGKey(0)
    pkey, dkey = jax.random.split(key)
    params = make_params(pkey, vocab_size, embed_size, n_hid, n_layers, pad_token)
    token_ids = jax.random.randint(dkey, (batch, seq_len), 0, vocab_size, jnp.int32)

    raw_outputs, outputs = awd_lstm_forward(params, token_ids)
    jax.block_until_ready(outputs[-1])

    # Shape sanity: intermediate layers -> n_hid, last layer -> embed_size.
    assert raw_outputs[0].shape == (batch, seq_len, n_hid)
    assert raw_outputs[-1].shape == (batch, seq_len, embed_size)

    # Loose numerical check vs a pure-JAX f32 reference (kernel uses bf16 MXU
    # operands with f32 accumulation, so tolerance is generous).
    refs = awd_lstm_forward_ref(params, token_ids)
    for layer_idx, (got, ref) in enumerate(zip(outputs, refs)):
        err = float(jnp.max(jnp.abs(got - ref)))
        assert err < 5e-2, f"layer {layer_idx}: max abs err {err}"

    print("KERNEL_OK")
</pallas_src>

<mosaic_0001>
module attributes {stable_mosaic.version = 11 : i64} {
  func.func @_lstm_block_kernel(%arg0: i32, %arg1: memref<8x8x128xf32, #tpu.memory_space<vmem>>, %arg2: memref<128x512xbf16, #tpu.memory_space<any>>, %arg3: memref<128x512xbf16, #tpu.memory_space<any>>, %arg4: memref<1x512xf32, #tpu.memory_space<vmem>>, %arg5: memref<8x8x128xf32, #tpu.memory_space<vmem>>, %arg6: memref<128x512xbf16, #tpu.memory_space<vmem>>, %arg7: memref<128x512xbf16, #tpu.memory_space<vmem>>, %arg8: memref<8x8x512xf32, #tpu.memory_space<vmem>>, %arg9: memref<8x128xf32, #tpu.memory_space<vmem>>, %arg10: memref<8x128xf32, #tpu.memory_space<vmem>>, %arg11: memref<2x!tpu.dma_semaphore, #tpu.memory_space<semaphore_mem>>) attributes {dimension_semantics = [#tpu.dimension_semantics<arbitrary>], iteration_bounds = array<i64: 1>, scalar_prefetch = 0 : i64, scratch_operands = 6 : i64, tpu.core_type = #tpu.core_type<tc>, window_params = [{transform_indices = @transform_0, window_bounds = array<i64: 8, 8, 128>}, {}, {}, {pipeline_mode = #tpu.pipeline_mode<synchronous>, transform_indices = @transform_3, window_bounds = array<i64: 1, 512>}, {transform_indices = @transform_4, window_bounds = array<i64: 8, 8, 128>}]} {
    %c0_i32 = arith.constant 0 : i32
    %0 = arith.cmpi eq, %arg0, %c0_i32 : i32
    %1 = arith.extui %0 : i1 to i32
    %c0_i32_0 = arith.constant 0 : i32
    %2 = arith.cmpi ne, %1, %c0_i32_0 : i32
    scf.if %2 {
      %cst_99 = arith.constant 0.000000e+00 : f32
      %305 = vector.broadcast %cst_99 : f32 to vector<8x128xf32>
      %c0_100 = arith.constant 0 : index
      %c0_101 = arith.constant 0 : index
      %306 = vector.load %arg9[%c0_100, %c0_101] : memref<8x128xf32, #tpu.memory_space<vmem>>, vector<8x128xf32>
      tpu.vector_store %arg9[%c0_100, %c0_101], %305 {strides = array<i32>} : memref<8x128xf32, #tpu.memory_space<vmem>>, vector<8x128xf32>,
      %cst_102 = arith.constant 0.000000e+00 : f32
      %307 = vector.broadcast %cst_102 : f32 to vector<8x128xf32>
      %c0_103 = arith.constant 0 : index
      %c0_104 = arith.constant 0 : index
      %308 = vector.load %arg10[%c0_103, %c0_104] : memref<8x128xf32, #tpu.memory_space<vmem>>, vector<8x128xf32>
      tpu.vector_store %arg10[%c0_103, %c0_104], %307 {strides = array<i32>} : memref<8x128xf32, #tpu.memory_space<vmem>>, vector<8x128xf32>,
      %c0_i32_105 = arith.constant 0 : i32
      %309 = tpu.memref_slice %arg11[%c0_i32_105] : memref<2x!tpu.dma_semaphore, #tpu.memory_space<semaphore_mem>> -> memref<1x!tpu.dma_semaphore, #tpu.memory_space<semaphore_mem>>
      %310 = tpu.memref_squeeze %309 : memref<1x!tpu.dma_semaphore, #tpu.memory_space<semaphore_mem>> -> memref<!tpu.dma_semaphore, #tpu.memory_space<semaphore_mem>>
      tpu.enqueue_dma source(%arg2 : memref<128x512xbf16, #tpu.memory_space<any>>) target(%arg6 : memref<128x512xbf16, #tpu.memory_space<vmem>>) target_semaphore(%310 : memref<!tpu.dma_semaphore, #tpu.memory_space<semaphore_mem>>)
      %c1_i32_106 = arith.constant 1 : i32
      %311 = tpu.memref_slice %arg11[%c1_i32_106] : memref<2x!tpu.dma_semaphore, #tpu.memory_space<semaphore_mem>> -> memref<1x!tpu.dma_semaphore, #tpu.memory_space<semaphore_mem>>
      %312 = tpu.memref_squeeze %311 : memref<1x!tpu.dma_semaphore, #tpu.memory_space<semaphore_mem>> -> memref<!tpu.dma_semaphore, #tpu.memory_space<semaphore_mem>>
      tpu.enqueue_dma source(%arg3 : memref<128x512xbf16, #tpu.memory_space<any>>) target(%arg7 : memref<128x512xbf16, #tpu.memory_space<vmem>>) target_semaphore(%312 : memref<!tpu.dma_semaphore, #tpu.memory_space<semaphore_mem>>)
      %c0_i32_107 = arith.constant 0 : i32
      %313 = tpu.memref_slice %arg11[%c0_i32_107] : memref<2x!tpu.dma_semaphore, #tpu.memory_space<semaphore_mem>> -> memref<1x!tpu.dma_semaphore, #tpu.memory_space<semaphore_mem>>
      %314 = tpu.memref_squeeze %313 : memref<1x!tpu.dma_semaphore, #tpu.memory_space<semaphore_mem>> -> memref<!tpu.dma_semaphore, #tpu.memory_space<semaphore_mem>>
      tpu.wait_dma2 semaphore(%314 : memref<!tpu.dma_semaphore, #tpu.memory_space<semaphore_mem>>) src(%arg2 : memref<128x512xbf16, #tpu.memory_space<any>>) dst(%arg6 : memref<128x512xbf16, #tpu.memory_space<vmem>>)
      %c1_i32_108 = arith.constant 1 : i32
      %315 = tpu.memref_slice %arg11[%c1_i32_108] : memref<2x!tpu.dma_semaphore, #tpu.memory_space<semaphore_mem>> -> memref<1x!tpu.dma_semaphore, #tpu.memory_space<semaphore_mem>>
      %316 = tpu.memref_squeeze %315 : memref<1x!tpu.dma_semaphore, #tpu.memory_space<semaphore_mem>> -> memref<!tpu.dma_semaphore, #tpu.memory_space<semaphore_mem>>
      tpu.wait_dma2 semaphore(%316 : memref<!tpu.dma_semaphore, #tpu.memory_space<semaphore_mem>>) src(%arg3 : memref<128x512xbf16, #tpu.memory_space<any>>) dst(%arg7 : memref<128x512xbf16, #tpu.memory_space<vmem>>)
    } else {
    }
    %c0 = arith.constant 0 : index
    %c0_1 = arith.constant 0 : index
    %c0_2 = arith.constant 0 : index
    %3 = vector.load %arg1[%c0, %c0_1, %c0_2] : memref<8x8x128xf32, #tpu.memory_space<vmem>>, vector<8x8x128xf32>
    %4 = vector.shape_cast %3 : vector<8x8x128xf32> to vector<64x128xf32>
    %5 = arith.truncf %4 : vector<64x128xf32> to vector<64x128xbf16>
    %c0_3 = arith.constant 0 : index
    %c0_4 = arith.constant 0 : index
    %6 = vector.load %arg6[%c0_3, %c0_4] : memref<128x512xbf16, #tpu.memory_space<vmem>>, vector<128x512xbf16>
    %cst = arith.constant dense<0.000000e+00> : vector<64x512xf32>
    %7 = tpu.matmul %5, %6, %cst {dimension_numbers = #tpu.dot_dimension_numbers<[1], [0], [0], [1], [0, 0, 1, 1], [], []>} : vector<64x128xbf16>, vector<128x512xbf16>, vector<64x512xf32> -> vector<64x512xf32>
    %c0_5 = arith.constant 0 : index
    %c0_6 = arith.constant 0 : index
    %8 = vector.load %arg4[%c0_5, %c0_6] : memref<1x512xf32, #tpu.memory_space<vmem>>, vector<1x512xf32>
    %9 = vector.broadcast %8 : vector<1x512xf32> to vector<64x512xf32>
    %10 = arith.addf %7, %9 : vector<64x512xf32>
    %11 = vector.shape_cast %10 : vector<64x512xf32> to vector<8x8x512xf32>
    %c0_7 = arith.constant 0 : index
    %c0_8 = arith.constant 0 : index
    %c0_9 = arith.constant 0 : index
    %12 = vector.load %arg8[%c0_7, %c0_8, %c0_9] : memref<8x8x512xf32, #tpu.memory_space<vmem>>, vector<8x8x512xf32>
    tpu.vector_store %arg8[%c0_7, %c0_8, %c0_9], %11 {strides = array<i32>} : memref<8x8x512xf32, #tpu.memory_space<vmem>>, vector<8x8x512xf32>,
    %c0_10 = arith.constant 0 : index
    %c0_11 = arith.constant 0 : index
    %13 = vector.load %arg9[%c0_10, %c0_11] : memref<8x128xf32, #tpu.memory_space<vmem>>, vector<8x128xf32>
    %c0_12 = arith.constant 0 : index
    %c0_13 = arith.constant 0 : index
    %14 = vector.load %arg10[%c0_12, %c0_13] : memref<8x128xf32, #tpu.memory_space<vmem>>, vector<8x128xf32>
    %c0_i32_14 = arith.constant 0 : i32
    %15 = arith.index_cast %c0_i32_14 : i32 to index
    %c0_15 = arith.constant 0 : index
    %c0_16 = arith.constant 0 : index
    %16 = vector.load %arg8[%15, %c0_15, %c0_16] : memref<8x8x512xf32, #tpu.memory_space<vmem>>, vector<1x8x512xf32>
    %17 = vector.shape_cast %16 : vector<1x8x512xf32> to vector<8x512xf32>
    %18 = arith.truncf %13 : vector<8x128xf32> to vector<8x128xbf16>
    %c0_17 = arith.constant 0 : index
    %c0_18 = arith.constant 0 : index
    %19 = vector.load %arg7[%c0_17, %c0_18] : memref<128x512xbf16, #tpu.memory_space<vmem>>, vector<128x512xbf16>
    %cst_19 = arith.constant dense<0.000000e+00> : vector<8x512xf32>
    %20 = tpu.matmul %18, %19, %cst_19 {dimension_numbers = #tpu.dot_dimension_numbers<[1], [0], [0], [1], [0, 0, 1, 1], [], []>} : vector<8x128xbf16>, vector<128x512xbf16>, vector<8x512xf32> -> vector<8x512xf32>
    %21 = arith.addf %17, %20 : vector<8x512xf32>
    %22 = vector.extract_strided_slice %21 {offsets = [0, 0], sizes = [8, 128], strides = [1, 1]} : vector<8x512xf32> to vector<8x128xf32>
    %23 = arith.negf %22 : vector<8x128xf32>
    %24 = math.exp %23 : vector<8x128xf32>
    %cst_20 = arith.constant 1.000000e+00 : f32
    %25 = vector.broadcast %cst_20 : f32 to vector<8x128xf32>
    %26 = arith.addf %25, %24 : vector<8x128xf32>
    %27 = arith.divf %25, %26 : vector<8x128xf32>
    %28 = vector.extract_strided_slice %21 {offsets = [0, 128], sizes = [8, 128], strides = [1, 1]} : vector<8x512xf32> to vector<8x128xf32>
    %29 = arith.negf %28 : vector<8x128xf32>
    %30 = math.exp %29 : vector<8x128xf32>
    %cst_21 = arith.constant 1.000000e+00 : f32
    %31 = vector.broadcast %cst_21 : f32 to vector<8x128xf32>
    %32 = arith.addf %31, %30 : vector<8x128xf32>
    %33 = arith.divf %31, %32 : vector<8x128xf32>
    %34 = vector.extract_strided_slice %21 {offsets = [0, 256], sizes = [8, 128], strides = [1, 1]} : vector<8x512xf32> to vector<8x128xf32>
    %35 = math.tanh %34 : vector<8x128xf32>
    %36 = vector.extract_strided_slice %21 {offsets = [0, 384], sizes = [8, 128], strides = [1, 1]} : vector<8x512xf32> to vector<8x128xf32>
    %37 = arith.negf %36 : vector<8x128xf32>
    %38 = math.exp %37 : vector<8x128xf32>
    %cst_22 = arith.constant 1.000000e+00 : f32
    %39 = vector.broadcast %cst_22 : f32 to vector<8x128xf32>
    %40 = arith.addf %39, %38 : vector<8x128xf32>
    %41 = arith.divf %39, %40 : vector<8x128xf32>
    %42 = arith.mulf %33, %14 : vector<8x128xf32>
    %43 = arith.mulf %27, %35 : vector<8x128xf32>
    %44 = arith.addf %42, %43 : vector<8x128xf32>
    %45 = math.tanh %44 : vector<8x128xf32>
    %46 = arith.mulf %41, %45 : vector<8x128xf32>
    %47 = arith.index_cast %c0_i32_14 : i32 to index
    %c0_23 = arith.constant 0 : index
    %c0_24 = arith.constant 0 : index
    %48 = vector.load %arg5[%47, %c0_23, %c0_24] : memref<8x8x128xf32, #tpu.memory_space<vmem>>, vector<1x8x128xf32>
    %49 = vector.shape_cast %48 : vector<1x8x128xf32> to vector<8x128xf32>
    %50 = vector.shape_cast %46 : vector<8x128xf32> to vector<1x8x128xf32>
    tpu.vector_store %arg5[%47, %c0_23, %c0_24], %50 {strides = array<i32>} : memref<8x8x128xf32, #tpu.memory_space<vmem>>, vector<1x8x128xf32>,
    %c1_i32 = arith.constant 1 : i32
    %51 = arith.index_cast %c1_i32 : i32 to index
    %c0_25 = arith.constant 0 : index
    %c0_26 = arith.constant 0 : index
    %52 = vector.load %arg8[%51, %c0_25, %c0_26] : memref<8x8x512xf32, #tpu.memory_space<vmem>>, vector<1x8x512xf32>
    %53 = vector.shape_cast %52 : vector<1x8x512xf32> to vector<8x512xf32>
    %54 = arith.truncf %46 : vector<8x128xf32> to vector<8x128xbf16>
    %c0_27 = arith.constant 0 : index
    %c0_28 = arith.constant 0 : index
    %55 = vector.load %arg7[%c0_27, %c0_28] : memref<128x512xbf16, #tpu.memory_space<vmem>>, vector<128x512xbf16>
    %cst_29 = arith.constant dense<0.000000e+00> : vector<8x512xf32>
    %56 = tpu.matmul %54, %55, %cst_29 {dimension_numbers = #tpu.dot_dimension_numbers<[1], [0], [0], [1], [0, 0, 1, 1], [], []>} : vector<8x128xbf16>, vector<128x512xbf16>, vector<8x512xf32> -> vector<8x512xf32>
    %57 = arith.addf %53, %56 : vector<8x512xf32>
    %58 = vector.extract_strided_slice %57 {offsets = [0, 0], sizes = [8, 128], strides = [1, 1]} : vector<8x512xf32> to vector<8x128xf32>
    %59 = arith.negf %58 : vector<8x128xf32>
    %60 = math.exp %59 : vector<8x128xf32>
    %cst_30 = arith.constant 1.000000e+00 : f32
    %61 = vector.broadcast %cst_30 : f32 to vector<8x128xf32>
    %62 = arith.addf %61, %60 : vector<8x128xf32>
    %63 = arith.divf %61, %62 : vector<8x128xf32>
    %64 = vector.extract_strided_slice %57 {offsets = [0, 128], sizes = [8, 128], strides = [1, 1]} : vector<8x512xf32> to vector<8x128xf32>
    %65 = arith.negf %64 : vector<8x128xf32>
    %66 = math.exp %65 : vector<8x128xf32>
    %cst_31 = arith.constant 1.000000e+00 : f32
    %67 = vector.broadcast %cst_31 : f32 to vector<8x128xf32>
    %68 = arith.addf %67, %66 : vector<8x128xf32>
    %69 = arith.divf %67, %68 : vector<8x128xf32>
    %70 = vector.extract_strided_slice %57 {offsets = [0, 256], sizes = [8, 128], strides = [1, 1]} : vector<8x512xf32> to vector<8x128xf32>
    %71 = math.tanh %70 : vector<8x128xf32>
    %72 = vector.extract_strided_slice %57 {offsets = [0, 384], sizes = [8, 128], strides = [1, 1]} : vector<8x512xf32> to vector<8x128xf32>
    %73 = arith.negf %72 : vector<8x128xf32>
    %74 = math.exp %73 : vector<8x128xf32>
    %cst_32 = arith.constant 1.000000e+00 : f32
    %75 = vector.broadcast %cst_32 : f32 to vector<8x128xf32>
    %76 = arith.addf %75, %74 : vector<8x128xf32>
    %77 = arith.divf %75, %76 : vector<8x128xf32>
    %78 = arith.mulf %69, %44 : vector<8x128xf32>
    %79 = arith.mulf %63, %71 : vector<8x128xf32>
    %80 = arith.addf %78, %79 : vector<8x128xf32>
    %81 = math.tanh %80 : vector<8x128xf32>
    %82 = arith.mulf %77, %81 : vector<8x128xf32>
    %83 = arith.index_cast %c1_i32 : i32 to index
    %c0_33 = arith.constant 0 : index
    %c0_34 = arith.constant 0 : index
    %84 = vector.load %arg5[%83, %c0_33, %c0_34] : memref<8x8x128xf32, #tpu.memory_space<vmem>>, vector<1x8x128xf32>
    %85 = vector.shape_cast %84 : vector<1x8x128xf32> to vector<8x128xf32>
    %86 = vector.shape_cast %82 : vector<8x128xf32> to vector<1x8x128xf32>
    tpu.vector_store %arg5[%83, %c0_33, %c0_34], %86 {strides = array<i32>} : memref<8x8x128xf32, #tpu.memory_space<vmem>>, vector<1x8x128xf32>,
    %c2_i32 = arith.constant 2 : i32
    %87 = arith.index_cast %c2_i32 : i32 to index
    %c0_35 = arith.constant 0 : index
    %c0_36 = arith.constant 0 : index
    %88 = vector.load %arg8[%87, %c0_35, %c0_36] : memref<8x8x512xf32, #tpu.memory_space<vmem>>, vector<1x8x512xf32>
    %89 = vector.shape_cast %88 : vector<1x8x512xf32> to vector<8x512xf32>
    %90 = arith.truncf %82 : vector<8x128xf32> to vector<8x128xbf16>
    %c0_37 = arith.constant 0 : index
    %c0_38 = arith.constant 0 : index
    %91 = vector.load %arg7[%c0_37, %c0_38] : memref<128x512xbf16, #tpu.memory_space<vmem>>, vector<128x512xbf16>
    %cst_39 = arith.constant dense<0.000000e+00> : vector<8x512xf32>
    %92 = tpu.matmul %90, %91, %cst_39 {dimension_numbers = #tpu.dot_dimension_numbers<[1], [0], [0], [1], [0, 0, 1, 1], [], []>} : vector<8x128xbf16>, vector<128x512xbf16>, vector<8x512xf32> -> vector<8x512xf32>
    %93 = arith.addf %89, %92 : vector<8x512xf32>
    %94 = vector.extract_strided_slice %93 {offsets = [0, 0], sizes = [8, 128], strides = [1, 1]} : vector<8x512xf32> to vector<8x128xf32>
    %95 = arith.negf %94 : vector<8x128xf32>
    %96 = math.exp %95 : vector<8x128xf32>
    %cst_40 = arith.constant 1.000000e+00 : f32
    %97 = vector.broadcast %cst_40 : f32 to vector<8x128xf32>
    %98 = arith.addf %97, %96 : vector<8x128xf32>
    %99 = arith.divf %97, %98 : vector<8x128xf32>
    %100 = vector.extract_strided_slice %93 {offsets = [0, 128], sizes = [8, 128], strides = [1, 1]} : vector<8x512xf32> to vector<8x128xf32>
    %101 = arith.negf %100 : vector<8x128xf32>
    %102 = math.exp %101 : vector<8x128xf32>
    %cst_41 = arith.constant 1.000000e+00 : f32
    %103 = vector.broadcast %cst_41 : f32 to vector<8x128xf32>
    %104 = arith.addf %103, %102 : vector<8x128xf32>
    %105 = arith.divf %103, %104 : vector<8x128xf32>
    %106 = vector.extract_strided_slice %93 {offsets = [0, 256], sizes = [8, 128], strides = [1, 1]} : vector<8x512xf32> to vector<8x128xf32>
    %107 = math.tanh %106 : vector<8x128xf32>
    %108 = vector.extract_strided_slice %93 {offsets = [0, 384], sizes = [8, 128], strides = [1, 1]} : vector<8x512xf32> to vector<8x128xf32>
    %109 = arith.negf %108 : vector<8x128xf32>
    %110 = math.exp %109 : vector<8x128xf32>
    %cst_42 = arith.constant 1.000000e+00 : f32
    %111 = vector.broadcast %cst_42 : f32 to vector<8x128xf32>
    %112 = arith.addf %111, %110 : vector<8x128xf32>
    %113 = arith.divf %111, %112 : vector<8x128xf32>
    %114 = arith.mulf %105, %80 : vector<8x128xf32>
    %115 = arith.mulf %99, %107 : vector<8x128xf32>
    %116 = arith.addf %114, %115 : vector<8x128xf32>
    %117 = math.tanh %116 : vector<8x128xf32>
    %118 = arith.mulf %113, %117 : vector<8x128xf32>
    %119 = arith.index_cast %c2_i32 : i32 to index
    %c0_43 = arith.constant 0 : index
    %c0_44 = arith.constant 0 : index
    %120 = vector.load %arg5[%119, %c0_43, %c0_44] : memref<8x8x128xf32, #tpu.memory_space<vmem>>, vector<1x8x128xf32>
    %121 = vector.shape_cast %120 : vector<1x8x128xf32> to vector<8x128xf32>
    %122 = vector.shape_cast %118 : vector<8x128xf32> to vector<1x8x128xf32>
    tpu.vector_store %arg5[%119, %c0_43, %c0_44], %122 {strides = array<i32>} : memref<8x8x128xf32, #tpu.memory_space<vmem>>, vector<1x8x128xf32>,
    %c3_i32 = arith.constant 3 : i32
    %123 = arith.index_cast %c3_i32 : i32 to index
    %c0_45 = arith.constant 0 : index
    %c0_46 = arith.constant 0 : index
    %124 = vector.load %arg8[%123, %c0_45, %c0_46] : memref<8x8x512xf32, #tpu.memory_space<vmem>>, vector<1x8x512xf32>
    %125 = vector.shape_cast %124 : vector<1x8x512xf32> to vector<8x512xf32>
    %126 = arith.truncf %118 : vector<8x128xf32> to vector<8x128xbf16>
    %c0_47 = arith.constant 0 : index
    %c0_48 = arith.constant 0 : index
    %127 = vector.load %arg7[%c0_47, %c0_48] : memref<128x512xbf16, #tpu.memory_space<vmem>>, vector<128x512xbf16>
    %cst_49 = arith.constant dense<0.000000e+00> : vector<8x512xf32>
    %128 = tpu.matmul %126, %127, %cst_49 {dimension_numbers = #tpu.dot_dimension_numbers<[1], [0], [0], [1], [0, 0, 1, 1], [], []>} : vector<8x128xbf16>, vector<128x512xbf16>, vector<8x512xf32> -> vector<8x512xf32>
    %129 = arith.addf %125, %128 : vector<8x512xf32>
    %130 = vector.extract_strided_slice %129 {offsets = [0, 0], sizes = [8, 128], strides = [1, 1]} : vector<8x512xf32> to vector<8x128xf32>
    %131 = arith.negf %130 : vector<8x128xf32>
    %132 = math.exp %131 : vector<8x128xf32>
    %cst_50 = arith.constant 1.000000e+00 : f32
    %133 = vector.broadcast %cst_50 : f32 to vector<8x128xf32>
    %134 = arith.addf %133, %132 : vector<8x128xf32>
    %135 = arith.divf %133, %134 : vector<8x128xf32>
    %136 = vector.extract_strided_slice %129 {offsets = [0, 128], sizes = [8, 128], strides = [1, 1]} : vector<8x512xf32> to vector<8x128xf32>
    %137 = arith.negf %136 : vector<8x128xf32>
    %138 = math.exp %137 : vector<8x128xf32>
    %cst_51 = arith.constant 1.000000e+00 : f32
    %139 = vector.broadcast %cst_51 : f32 to vector<8x128xf32>
    %140 = arith.addf %139, %138 : vector<8x128xf32>
    %141 = arith.divf %139, %140 : vector<8x128xf32>
    %142 = vector.extract_strided_slice %129 {offsets = [0, 256], sizes = [8, 128], strides = [1, 1]} : vector<8x512xf32> to vector<8x128xf32>
    %143 = math.tanh %142 : vector<8x128xf32>
    %144 = vector.extract_strided_slice %129 {offsets = [0, 384], sizes = [8, 128], strides = [1, 1]} : vector<8x512xf32> to vector<8x128xf32>
    %145 = arith.negf %144 : vector<8x128xf32>
    %146 = math.exp %145 : vector<8x128xf32>
    %cst_52 = arith.constant 1.000000e+00 : f32
    %147 = vector.broadcast %cst_52 : f32 to vector<8x128xf32>
    %148 = arith.addf %147, %146 : vector<8x128xf32>
    %149 = arith.divf %147, %148 : vector<8x128xf32>
    %150 = arith.mulf %141, %116 : vector<8x128xf32>
    %151 = arith.mulf %135, %143 : vector<8x128xf32>
    %152 = arith.addf %150, %151 : vector<8x128xf32>
    %153 = math.tanh %152 : vector<8x128xf32>
    %154 = arith.mulf %149, %153 : vector<8x128xf32>
    %155 = arith.index_cast %c3_i32 : i32 to index
    %c0_53 = arith.constant 0 : index
    %c0_54 = arith.constant 0 : index
    %156 = vector.load %arg5[%155, %c0_53, %c0_54] : memref<8x8x128xf32, #tpu.memory_space<vmem>>, vector<1x8x128xf32>
    %157 = vector.shape_cast %156 : vector<1x8x128xf32> to vector<8x128xf32>
    %158 = vector.shape_cast %154 : vector<8x128xf32> to vector<1x8x128xf32>
    tpu.vector_store %arg5[%155, %c0_53, %c0_54], %158 {strides = array<i32>} : memref<8x8x128xf32, #tpu.memory_space<vmem>>, vector<1x8x128xf32>,
    %c4_i32 = arith.constant 4 : i32
    %159 = arith.index_cast %c4_i32 : i32 to index
    %c0_55 = arith.constant 0 : index
    %c0_56 = arith.constant 0 : index
    %160 = vector.load %arg8[%159, %c0_55, %c0_56] : memref<8x8x512xf32, #tpu.memory_space<vmem>>, vector<1x8x512xf32>
    %161 = vector.shape_cast %160 : vector<1x8x512xf32> to vector<8x512xf32>
    %162 = arith.truncf %154 : vector<8x128xf32> to vector<8x128xbf16>
    %c0_57 = arith.constant 0 : index
    %c0_58 = arith.constant 0 : index
    %163 = vector.load %arg7[%c0_57, %c0_58] : memref<128x512xbf16, #tpu.memory_space<vmem>>, vector<128x512xbf16>
    %cst_59 = arith.constant dense<0.000000e+00> : vector<8x512xf32>
    %164 = tpu.matmul %162, %163, %cst_59 {dimension_numbers = #tpu.dot_dimension_numbers<[1], [0], [0], [1], [0, 0, 1, 1], [], []>} : vector<8x128xbf16>, vector<128x512xbf16>, vector<8x512xf32> -> vector<8x512xf32>
    %165 = arith.addf %161, %164 : vector<8x512xf32>
    %166 = vector.extract_strided_slice %165 {offsets = [0, 0], sizes = [8, 128], strides = [1, 1]} : vector<8x512xf32> to vector<8x128xf32>
    %167 = arith.negf %166 : vector<8x128xf32>
    %168 = math.exp %167 : vector<8x128xf32>
    %cst_60 = arith.constant 1.000000e+00 : f32
    %169 = vector.broadcast %cst_60 : f32 to vector<8x128xf32>
    %170 = arith.addf %169, %168 : vector<8x128xf32>
    %171 = arith.divf %169, %170 : vector<8x128xf32>
    %172 = vector.extract_strided_slice %165 {offsets = [0, 128], sizes = [8, 128], strides = [1, 1]} : vector<8x512xf32> to vector<8x128xf32>
    %173 = arith.negf %172 : vector<8x128xf32>
    %174 = math.exp %173 : vector<8x128xf32>
    %cst_61 = arith.constant 1.000000e+00 : f32
    %175 = vector.broadcast %cst_61 : f32 to vector<8x128xf32>
    %176 = arith.addf %175, %174 : vector<8x128xf32>
    %177 = arith.divf %175, %176 : vector<8x128xf32>
    %178 = vector.extract_strided_slice %165 {offsets = [0, 256], sizes = [8, 128], strides = [1, 1]} : vector<8x512xf32> to vector<8x128xf32>
    %179 = math.tanh %178 : vector<8x128xf32>
    %180 = vector.extract_strided_slice %165 {offsets = [0, 384], sizes = [8, 128], strides = [1, 1]} : vector<8x512xf32> to vector<8x128xf32>
    %181 = arith.negf %180 : vector<8x128xf32>
    %182 = math.exp %181 : vector<8x128xf32>
    %cst_62 = arith.constant 1.000000e+00 : f32
    %183 = vector.broadcast %cst_62 : f32 to vector<8x128xf32>
    %184 = arith.addf %183, %182 : vector<8x128xf32>
    %185 = arith.divf %183, %184 : vector<8x128xf32>
    %186 = arith.mulf %177, %152 : vector<8x128xf32>
    %187 = arith.mulf %171, %179 : vector<8x128xf32>
    %188 = arith.addf %186, %187 : vector<8x128xf32>
    %189 = math.tanh %188 : vector<8x128xf32>
    %190 = arith.mulf %185, %189 : vector<8x128xf32>
    %191 = arith.index_cast %c4_i32 : i32 to index
    %c0_63 = arith.constant 0 : index
    %c0_64 = arith.constant 0 : index
    %192 = vector.load %arg5[%191, %c0_63, %c0_64] : memref<8x8x128xf32, #tpu.memory_space<vmem>>, vector<1x8x128xf32>
    %193 = vector.shape_cast %192 : vector<1x8x128xf32> to vector<8x128xf32>
    %194 = vector.shape_cast %190 : vector<8x128xf32> to vector<1x8x128xf32>
    tpu.vector_store %arg5[%191, %c0_63, %c0_64], %194 {strides = array<i32>} : memref<8x8x128xf32, #tpu.memory_space<vmem>>, vector<1x8x128xf32>,
    %c5_i32 = arith.constant 5 : i32
    %195 = arith.index_cast %c5_i32 : i32 to index
    %c0_65 = arith.constant 0 : index
    %c0_66 = arith.constant 0 : index
    %196 = vector.load %arg8[%195, %c0_65, %c0_66] : memref<8x8x512xf32, #tpu.memory_space<vmem>>, vector<1x8x512xf32>
    %197 = vector.shape_cast %196 : vector<1x8x512xf32> to vector<8x512xf32>
    %198 = arith.truncf %190 : vector<8x128xf32> to vector<8x128xbf16>
    %c0_67 = arith.constant 0 : index
    %c0_68 = arith.constant 0 : index
    %199 = vector.load %arg7[%c0_67, %c0_68] : memref<128x512xbf16, #tpu.memory_space<vmem>>, vector<128x512xbf16>
    %cst_69 = arith.constant dense<0.000000e+00> : vector<8x512xf32>
    %200 = tpu.matmul %198, %199, %cst_69 {dimension_numbers = #tpu.dot_dimension_numbers<[1], [0], [0], [1], [0, 0, 1, 1], [], []>} : vector<8x128xbf16>, vector<128x512xbf16>, vector<8x512xf32> -> vector<8x512xf32>
    %201 = arith.addf %197, %200 : vector<8x512xf32>
    %202 = vector.extract_strided_slice %201 {offsets = [0, 0], sizes = [8, 128], strides = [1, 1]} : vector<8x512xf32> to vector<8x128xf32>
    %203 = arith.negf %202 : vector<8x128xf32>
    %204 = math.exp %203 : vector<8x128xf32>
    %cst_70 = arith.constant 1.000000e+00 : f32
    %205 = vector.broadcast %cst_70 : f32 to vector<8x128xf32>
    %206 = arith.addf %205, %204 : vector<8x128xf32>
    %207 = arith.divf %205, %206 : vector<8x128xf32>
    %208 = vector.extract_strided_slice %201 {offsets = [0, 128], sizes = [8, 128], strides = [1, 1]} : vector<8x512xf32> to vector<8x128xf32>
    %209 = arith.negf %208 : vector<8x128xf32>
    %210 = math.exp %209 : vector<8x128xf32>
    %cst_71 = arith.constant 1.000000e+00 : f32
    %211 = vector.broadcast %cst_71 : f32 to vector<8x128xf32>
    %212 = arith.addf %211, %210 : vector<8x128xf32>
    %213 = arith.divf %211, %212 : vector<8x128xf32>
    %214 = vector.extract_strided_slice %201 {offsets = [0, 256], sizes = [8, 128], strides = [1, 1]} : vector<8x512xf32> to vector<8x128xf32>
    %215 = math.tanh %214 : vector<8x128xf32>
    %216 = vector.extract_strided_slice %201 {offsets = [0, 384], sizes = [8, 128], strides = [1, 1]} : vector<8x512xf32> to vector<8x128xf32>
    %217 = arith.negf %216 : vector<8x128xf32>
    %218 = math.exp %217 : vector<8x128xf32>
    %cst_72 = arith.constant 1.000000e+00 : f32
    %219 = vector.broadcast %cst_72 : f32 to vector<8x128xf32>
    %220 = arith.addf %219, %218 : vector<8x128xf32>
    %221 = arith.divf %219, %220 : vector<8x128xf32>
    %222 = arith.mulf %213, %188 : vector<8x128xf32>
    %223 = arith.mulf %207, %215 : vector<8x128xf32>
    %224 = arith.addf %222, %223 : vector<8x128xf32>
    %225 = math.tanh %224 : vector<8x128xf32>
    %226 = arith.mulf %221, %225 : vector<8x128xf32>
    %227 = arith.index_cast %c5_i32 : i32 to index
    %c0_73 = arith.constant 0 : index
    %c0_74 = arith.constant 0 : index
    %228 = vector.load %arg5[%227, %c0_73, %c0_74] : memref<8x8x128xf32, #tpu.memory_space<vmem>>, vector<1x8x128xf32>
    %229 = vector.shape_cast %228 : vector<1x8x128xf32> to vector<8x128xf32>
    %230 = vector.shape_cast %226 : vector<8x128xf32> to vector<1x8x128xf32>
    tpu.vector_store %arg5[%227, %c0_73, %c0_74], %230 {strides = array<i32>} : memref<8x8x128xf32, #tpu.memory_space<vmem>>, vector<1x8x128xf32>,
    %c6_i32 = arith.constant 6 : i32
    %231 = arith.index_cast %c6_i32 : i32 to index
    %c0_75 = arith.constant 0 : index
    %c0_76 = arith.constant 0 : index
    %232 = vector.load %arg8[%231, %c0_75, %c0_76] : memref<8x8x512xf32, #tpu.memory_space<vmem>>, vector<1x8x512xf32>
    %233 = vector.shape_cast %232 : vector<1x8x512xf32> to vector<8x512xf32>
    %234 = arith.truncf %226 : vector<8x128xf32> to vector<8x128xbf16>
    %c0_77 = arith.constant 0 : index
    %c0_78 = arith.constant 0 : index
    %235 = vector.load %arg7[%c0_77, %c0_78] : memref<128x512xbf16, #tpu.memory_space<vmem>>, vector<128x512xbf16>
    %cst_79 = arith.constant dense<0.000000e+00> : vector<8x512xf32>
    %236 = tpu.matmul %234, %235, %cst_79 {dimension_numbers = #tpu.dot_dimension_numbers<[1], [0], [0], [1], [0, 0, 1, 1], [], []>} : vector<8x128xbf16>, vector<128x512xbf16>, vector<8x512xf32> -> vector<8x512xf32>
    %237 = arith.addf %233, %236 : vector<8x512xf32>
    %238 = vector.extract_strided_slice %237 {offsets = [0, 0], sizes = [8, 128], strides = [1, 1]} : vector<8x512xf32> to vector<8x128xf32>
    %239 = arith.negf %238 : vector<8x128xf32>
    %240 = math.exp %239 : vector<8x128xf32>
    %cst_80 = arith.constant 1.000000e+00 : f32
    %241 = vector.broadcast %cst_80 : f32 to vector<8x128xf32>
    %242 = arith.addf %241, %240 : vector<8x128xf32>
    %243 = arith.divf %241, %242 : vector<8x128xf32>
    %244 = vector.extract_strided_slice %237 {offsets = [0, 128], sizes = [8, 128], strides = [1, 1]} : vector<8x512xf32> to vector<8x128xf32>
    %245 = arith.negf %244 : vector<8x128xf32>
    %246 = math.exp %245 : vector<8x128xf32>
    %cst_81 = arith.constant 1.000000e+00 : f32
    %247 = vector.broadcast %cst_81 : f32 to vector<8x128xf32>
    %248 = arith.addf %247, %246 : vector<8x128xf32>
    %249 = arith.divf %247, %248 : vector<8x128xf32>
    %250 = vector.extract_strided_slice %237 {offsets = [0, 256], sizes = [8, 128], strides = [1, 1]} : vector<8x512xf32> to vector<8x128xf32>
    %251 = math.tanh %250 : vector<8x128xf32>
    %252 = vector.extract_strided_slice %237 {offsets = [0, 384], sizes = [8, 128], strides = [1, 1]} : vector<8x512xf32> to vector<8x128xf32>
    %253 = arith.negf %252 : vector<8x128xf32>
    %254 = math.exp %253 : vector<8x128xf32>
    %cst_82 = arith.constant 1.000000e+00 : f32
    %255 = vector.broadcast %cst_82 : f32 to vector<8x128xf32>
    %256 = arith.addf %255, %254 : vector<8x128xf32>
    %257 = arith.divf %255, %256 : vector<8x128xf32>
    %258 = arith.mulf %249, %224 : vector<8x128xf32>
    %259 = arith.mulf %243, %251 : vector<8x128xf32>
    %260 = arith.addf %258, %259 : vector<8x128xf32>
    %261 = math.tanh %260 : vector<8x128xf32>
    %262 = arith.mulf %257, %261 : vector<8x128xf32>
    %263 = arith.index_cast %c6_i32 : i32 to index
    %c0_83 = arith.constant 0 : index
    %c0_84 = arith.constant 0 : index
    %264 = vector.load %arg5[%263, %c0_83, %c0_84] : memref<8x8x128xf32, #tpu.memory_space<vmem>>, vector<1x8x128xf32>
    %265 = vector.shape_cast %264 : vector<1x8x128xf32> to vector<8x128xf32>
    %266 = vector.shape_cast %262 : vector<8x128xf32> to vector<1x8x128xf32>
    tpu.vector_store %arg5[%263, %c0_83, %c0_84], %266 {strides = array<i32>} : memref<8x8x128xf32, #tpu.memory_space<vmem>>, vector<1x8x128xf32>,
    %c7_i32 = arith.constant 7 : i32
    %267 = arith.index_cast %c7_i32 : i32 to index
    %c0_85 = arith.constant 0 : index
    %c0_86 = arith.constant 0 : index
    %268 = vector.load %arg8[%267, %c0_85, %c0_86] : memref<8x8x512xf32, #tpu.memory_space<vmem>>, vector<1x8x512xf32>
    %269 = vector.shape_cast %268 : vector<1x8x512xf32> to vector<8x512xf32>
    %270 = arith.truncf %262 : vector<8x128xf32> to vector<8x128xbf16>
    %c0_87 = arith.constant 0 : index
    %c0_88 = arith.constant 0 : index
    %271 = vector.load %arg7[%c0_87, %c0_88] : memref<128x512xbf16, #tpu.memory_space<vmem>>, vector<128x512xbf16>
    %cst_89 = arith.constant dense<0.000000e+00> : vector<8x512xf32>
    %272 = tpu.matmul %270, %271, %cst_89 {dimension_numbers = #tpu.dot_dimension_numbers<[1], [0], [0], [1], [0, 0, 1, 1], [], []>} : vector<8x128xbf16>, vector<128x512xbf16>, vector<8x512xf32> -> vector<8x512xf32>
    %273 = arith.addf %269, %272 : vector<8x512xf32>
    %274 = vector.extract_strided_slice %273 {offsets = [0, 0], sizes = [8, 128], strides = [1, 1]} : vector<8x512xf32> to vector<8x128xf32>
    %275 = arith.negf %274 : vector<8x128xf32>
    %276 = math.exp %275 : vector<8x128xf32>
    %cst_90 = arith.constant 1.000000e+00 : f32
    %277 = vector.broadcast %cst_90 : f32 to vector<8x128xf32>
    %278 = arith.addf %277, %276 : vector<8x128xf32>
    %279 = arith.divf %277, %278 : vector<8x128xf32>
    %280 = vector.extract_strided_slice %273 {offsets = [0, 128], sizes = [8, 128], strides = [1, 1]} : vector<8x512xf32> to vector<8x128xf32>
    %281 = arith.negf %280 : vector<8x128xf32>
    %282 = math.exp %281 : vector<8x128xf32>
    %cst_91 = arith.constant 1.000000e+00 : f32
    %283 = vector.broadcast %cst_91 : f32 to vector<8x128xf32>
    %284 = arith.addf %283, %282 : vector<8x128xf32>
    %285 = arith.divf %283, %284 : vector<8x128xf32>
    %286 = vector.extract_strided_slice %273 {offsets = [0, 256], sizes = [8, 128], strides = [1, 1]} : vector<8x512xf32> to vector<8x128xf32>
    %287 = math.tanh %286 : vector<8x128xf32>
    %288 = vector.extract_strided_slice %273 {offsets = [0, 384], sizes = [8, 128], strides = [1, 1]} : vector<8x512xf32> to vector<8x128xf32>
    %289 = arith.negf %288 : vector<8x128xf32>
    %290 = math.exp %289 : vector<8x128xf32>
    %cst_92 = arith.constant 1.000000e+00 : f32
    %291 = vector.broadcast %cst_92 : f32 to vector<8x128xf32>
    %292 = arith.addf %291, %290 : vector<8x128xf32>
    %293 = arith.divf %291, %292 : vector<8x128xf32>
    %294 = arith.mulf %285, %260 : vector<8x128xf32>
    %295 = arith.mulf %279, %287 : vector<8x128xf32>
    %296 = arith.addf %294, %295 : vector<8x128xf32>
    %297 = math.tanh %296 : vector<8x128xf32>
    %298 = arith.mulf %293, %297 : vector<8x128xf32>
    %299 = arith.index_cast %c7_i32 : i32 to index
    %c0_93 = arith.constant 0 : index
    %c0_94 = arith.constant 0 : index
    %300 = vector.load %arg5[%299, %c0_93, %c0_94] : memref<8x8x128xf32, #tpu.memory_space<vmem>>, vector<1x8x128xf32>
    %301 = vector.shape_cast %300 : vector<1x8x128xf32> to vector<8x128xf32>
    %302 = vector.shape_cast %298 : vector<8x128xf32> to vector<1x8x128xf32>
    tpu.vector_store %arg5[%299, %c0_93, %c0_94], %302 {strides = array<i32>} : memref<8x8x128xf32, #tpu.memory_space<vmem>>, vector<1x8x128xf32>,
    %c8_i32 = arith.constant 8 : i32
    %c0_95 = arith.constant 0 : index
    %c0_96 = arith.constant 0 : index
    %303 = vector.load %arg9[%c0_95, %c0_96] : memref<8x128xf32, #tpu.memory_space<vmem>>, vector<8x128xf32>
    tpu.vector_store %arg9[%c0_95, %c0_96], %298 {strides = array<i32>} : memref<8x128xf32, #tpu.memory_space<vmem>>, vector<8x128xf32>,
    %c0_97 = arith.constant 0 : index
    %c0_98 = arith.constant 0 : index
    %304 = vector.load %arg10[%c0_97, %c0_98] : memref<8x128xf32, #tpu.memory_space<vmem>>, vector<8x128xf32>
    tpu.vector_store %arg10[%c0_97, %c0_98], %296 {strides = array<i32>} : memref<8x128xf32, #tpu.memory_space<vmem>>, vector<8x128xf32>,
    return
  }
  func.func @transform_0(%arg0: i32) -> (i32, i32, i32) {
    %c0_i32 = arith.constant 0 : i32
    %c0_i32_0 = arith.constant 0 : i32
    %c0_i32_1 = arith.constant 0 : i32
    return %arg0, %c0_i32, %c0_i32_0 : i32, i32, i32
  }
  func.func @transform_3(%arg0: i32) -> (i32, i32) {
    %c0_i32 = arith.constant 0 : i32
    %c0_i32_0 = arith.constant 0 : i32
    %c0_i32_1 = arith.constant 0 : i32
    return %c0_i32, %c0_i32_0 : i32, i32
  }
  func.func @transform_4(%arg0: i32) -> (i32, i32, i32) {
    %c0_i32 = arith.constant 0 : i32
    %c0_i32_0 = arith.constant 0 : i32
    %c0_i32_1 = arith.constant 0 : i32
    return %arg0, %c0_i32, %c0_i32_0 : i32, i32, i32
  }
}

</mosaic_0001>

<bundles_post_ra>
// kernel: tpu_custom_call.1
= control target key start
LH: loop header
LB: loop body
LE: loop exit
PB: predicated region body
PF: predicated region fallthrough
CT: control target
= control target key end

     0   :  { %9 = vsyncpa [#allocation9], 0  ;;  %s4982_s0 = inlined_call_operand.hbm [shape: f32[8,8,128], index: 0, kind: input, shape index: {}]   ;;  %s4983_s1 = inlined_call_operand.hbm [shape: bf16[128,512], index: 1, kind: input, shape index: {}]   ;;  %s4984_s2 = inlined_call_operand.hbm [shape: bf16[128,512], index: 2, kind: input, shape index: {}]   ;;  %s4985_s3 = inlined_call_operand.hbm [shape: f32[1,512], index: 3, kind: input, shape index: {}]   ;;  %s4986_s4 = inlined_call_operand.hbm [shape: f32[8,8,128], index: 4, kind: output, shape index: {}]  }
   0x1   :  { %10 = vsyncpa [#allocation12], 0 }
   0x2   :  { %11 = vsyncpa [#allocation10], 0  ;;  %s16_s17 = sshll.u32 %s4982_s0, 4  ;;  %s4764_s18 = smov [#allocation8]   ;;  %s17_s17 = int_to_ptr.hbm [resolvable:$true] %s16_s17 }
   0x3   :  { %s18_s19 = sshll.u32 %s4764_s18, 4  ;;  %s30_s22 = sshll.u32 %s4985_s3, 4  ;;  %s19_s19 = int_to_ptr.vmem [resolvable:$true] %s18_s19  ;;  %s31_s22 = int_to_ptr.hbm [resolvable:$true] %s30_s22 }
   0x4   :  { %s4765_s23 = smov 128   ;;  %s4766_s24 = smov 8  }
   0x5   :  { %24 = dma.hbm_to_vmem [thread:$0]  %s17_s17, 1024, %s19_s19, [#allocation9], %s4765_s23, %s4765_s23, %s4766_s24  }
   0x6   :  { %s4767_s25 = smov [#allocation11]  }
   0x7   :  { %s32_s26 = sshll.u32 %s4767_s25, 4  ;;  %s33_s26 = int_to_ptr.vmem [resolvable:$true] %s32_s26 }
   0x8   :  { %35 = dma.hbm_to_vmem [thread:$0]  %s31_s22, 64, %s33_s26, [#allocation12]  }
   0x9   :  { %4754 = dma.done.wait [#allocation9], 1024  }
   0xa   :  { %4755 = vsyncadd [#allocation9], 4294966272 }
   0xb   :  { %4756 = dma.done.wait [#allocation12], 64  }
   0xc   :  { %4757 = vsyncadd [#allocation12], 4294967232  ;;  %s57_s28 = sshll.u32 %s4983_s1, 4  ;;  %s4768_s3 = smov [#allocation2]   ;;  %s58_s28 = int_to_ptr.hbm [resolvable:$true] %s57_s28 }
   0xd   :  { %s59_s29 = sshll.u32 %s4768_s3, 4  ;;  %s71_s6 = sshll.u32 %s4984_s2, 4  ;;  %s60_s29 = int_to_ptr.vmem [resolvable:$true] %s59_s29  ;;  %s72_s6 = int_to_ptr.hbm [resolvable:$true] %s71_s6 }
   0xe   :  { %62 = dma.hbm_to_vmem [thread:$0]  %s58_s28, 4096, %s60_s29, [#allocation7] }
   0xf   :  { %s4769_s7 = smov [#allocation3]  }
  0x10   :  { %s73_s8 = sshll.u32 %s4769_s7, 4  ;;  %s74_s8 = int_to_ptr.vmem [resolvable:$true] %s73_s8 }
  0x11   :  { %76 = dma.hbm_to_vmem [thread:$0]  %s72_s6, 4096, %s74_s8, [#allocation7 + $0x1] }
  0x12   :  { %4758 = dma.done.wait [#allocation7], 4096 }
  0x13   :  { %4759 = vsyncadd [#allocation7], 4294963200 }
  0x14   :  { %4760 = dma.done.wait [#allocation7 + $0x1], 4096 }
  0x15   :  { %4761 = vsyncadd [#allocation7 + $0x1], 4294963200  ;;  %v3146_v0 = vld [vmem:[#allocation2 + $0xe0] sm:$0xf]  ;;  %v4240_v1 = vld [vmem:[#allocation2 + $0xec] sm:$0xf0] }
  0x16   :  { %v4238_v2 = vld [vmem:[#allocation2 + $0xe4] sm:$0xf]  ;;  %v3147_v3 = vor.u32 %v4240_v1, %v3146_v0  ;;  %v3148_v4 = vld [vmem:[#allocation2 + $0xf0] sm:$0xf0]  ;;  %v3154_v5 = vld [vmem:[#allocation2 + $0xe8] sm:$0xf] }
  0x17   :  { %v4241_v6 = vld [vmem:[#allocation2 + $0xf4] sm:$0xf0]  ;;  %v3151_v7 = vor.u32 %v4238_v2, %v3148_v4  ;;  %v4239_v9 = vld [vmem:[#allocation2 + $0xec] sm:$0xf]  ;;  %v3156_v10 = vld [vmem:[#allocation2 + $0xf8] sm:$0xf0] }
  0x18   :  { %v3155_v8 = vor.u32 %v4241_v6, %v3154_v5  ;;  %v3130_v11 = vld [vmem:[#allocation2 + $0xc0] sm:$0xf]  ;;  %297 = vmatpush.bf16.msra.mxu0 %v3147_v3  ;;  %v3159_v12 = vor.u32 %v4239_v9, %v3156_v10  ;;  %v4236_v13 = vld [vmem:[#allocation2 + $0xcc] sm:$0xf0]  ;;  %v4234_v14 = vld [vmem:[#allocation2 + $0xc4] sm:$0xf] }
  0x19   :  { %v3132_v15 = vld [vmem:[#allocation2 + $0xd0] sm:$0xf0]  ;;  %326 = vmatpush.bf16.msra.mxu1 %v3151_v7  ;;  %v3131_v16 = vor.u32 %v4236_v13, %v3130_v11  ;;  %v3138_v18 = vld [vmem:[#allocation2 + $0xc8] sm:$0xf]  ;;  %v4237_v19 = vld [vmem:[#allocation2 + $0xd4] sm:$0xf0] }
  0x1a   :  { %355 = vmatpush.bf16.msra.mxu2 %v3155_v8  ;;  %v3135_v17 = vor.u32 %v4234_v14, %v3132_v15  ;;  %v4235_v20 = vld [vmem:[#allocation2 + $0xcc] sm:$0xf]  ;;  %384 = vmatpush.bf16.msra.mxu3 %v3159_v12  ;;  %v3139_v21 = vor.u32 %v4237_v19, %v3138_v18  ;;  %v3140_v22 = vld [vmem:[#allocation2 + $0xd8] sm:$0xf0]  ;;  %v3114_v23 = vld [vmem:[#allocation2 + $0xa0] sm:$0xf] }
  0x1b   :  { %v4232_v24 = vld [vmem:[#allocation2 + $0xac] sm:$0xf0]  ;;  %v3143_v25 = vor.u32 %v4235_v20, %v3140_v22  ;;  %v4230_v26 = vld [vmem:[#allocation2 + $0xa4] sm:$0xf]  ;;  %v3116_v27 = vld [vmem:[#allocation2 + $0xb0] sm:$0xf0] }
  0x1c   :  { %v3122_v28 = vld [vmem:[#allocation2 + $0xa8] sm:$0xf]  ;;  %298 = vmatpush.bf16.msra.mxu0 %v3131_v16  ;;  %v3115_v29 = vor.u32 %v4232_v24, %v3114_v23  ;;  %v4233_v30 = vld [vmem:[#allocation2 + $0xb4] sm:$0xf0]  ;;  %v4231_v31 = vld [vmem:[#allocation2 + $0xac] sm:$0xf]  ;;  %v3119_v33 = vor.u32 %v4230_v26, %v3116_v27 }
  0x1d   :  { %v3124_v32 = vld [vmem:[#allocation2 + $0xb8] sm:$0xf0]  ;;  %327 = vmatpush.bf16.msra.mxu1 %v3135_v17  ;;  %v3123_v34 = vor.u32 %v4233_v30, %v3122_v28  ;;  %v3098_v35 = vld [vmem:[#allocation2 + $0x80] sm:$0xf]  ;;  %v4228_v36 = vld [vmem:[#allocation2 + $0x8c] sm:$0xf0] }
  0x1e   :  { %356 = vmatpush.bf16.msra.mxu2 %v3139_v21  ;;  %v4226_v37 = vld [vmem:[#allocation2 + $0x84] sm:$0xf]  ;;  %385 = vmatpush.bf16.msra.mxu3 %v3143_v25  ;;  %v3127_v38 = vor.u32 %v4231_v31, %v3124_v32  ;;  %v3100_v39 = vld [vmem:[#allocation2 + $0x90] sm:$0xf0]  ;;  %v3106_v40 = vld [vmem:[#allocation2 + $0x88] sm:$0xf]  ;;  %v3099_v44 = vor.u32 %v4228_v36, %v3098_v35 }
  0x1f   :  { %v4229_v41 = vld [vmem:[#allocation2 + $0x94] sm:$0xf0]  ;;  %v4227_v42 = vld [vmem:[#allocation2 + $0x8c] sm:$0xf]  ;;  %v3108_v43 = vld [vmem:[#allocation2 + $0x98] sm:$0xf0]  ;;  %v3103_v45 = vor.u32 %v4226_v37, %v3100_v39 }
  0x20   :  { %299 = vmatpush.bf16.msra.mxu0 %v3115_v29  ;;  %v3107_v46 = vor.u32 %v4229_v41, %v3106_v40  ;;  %v3082_v47 = vld [vmem:[#allocation2 + $0x60] sm:$0xf]  ;;  %v4224_v48 = vld [vmem:[#allocation2 + $0x6c] sm:$0xf0]  ;;  %v4222_v49 = vld [vmem:[#allocation2 + $0x64] sm:$0xf]  ;;  %v3111_v50 = vor.u32 %v4227_v42, %v3108_v43 }
  0x21   :  { %328 = vmatpush.bf16.msra.mxu1 %v3119_v33  ;;  %v3084_v51 = vld [vmem:[#allocation2 + $0x70] sm:$0xf0]  ;;  %v3090_v52 = vld [vmem:[#allocation2 + $0x68] sm:$0xf]  ;;  %v4225_v53 = vld [vmem:[#allocation2 + $0x74] sm:$0xf0]  ;;  %v3083_v56 = vor.u32 %v4224_v48, %v3082_v47 }
  0x22   :  { %357 = vmatpush.bf16.msra.mxu2 %v3123_v34  ;;  %386 = vmatpush.bf16.msra.mxu3 %v3127_v38  ;;  %v4223_v54 = vld [vmem:[#allocation2 + $0x6c] sm:$0xf]  ;;  %v3092_v55 = vld [vmem:[#allocation2 + $0x78] sm:$0xf0]  ;;  %v3087_v57 = vor.u32 %v4222_v49, %v3084_v51  ;;  %v3091_v58 = vor.u32 %v4225_v53, %v3090_v52  ;;  %v3066_v59 = vld [vmem:[#allocation2 + $0x40] sm:$0xf] }
  0x23   :  { %v4220_v60 = vld [vmem:[#allocation2 + $0x4c] sm:$0xf0]  ;;  %v4218_v61 = vld [vmem:[#allocation2 + $0x44] sm:$0xf]  ;;  %v3095_v62 = vor.u32 %v4223_v54, %v3092_v55  ;;  %v3068_v63 = vld [vmem:[#allocation2 + $0x50] sm:$0xf0] }
  0x24   :  { %300 = vmatpush.bf16.msra.mxu0 %v3099_v44  ;;  %v3074_v0 = vld [vmem:[#allocation2 + $0x48] sm:$0xf]  ;;  %v4221_v1 = vld [vmem:[#allocation2 + $0x54] sm:$0xf0]  ;;  %v4219_v2 = vld [vmem:[#allocation2 + $0x4c] sm:$0xf]  ;;  %v3067_v4 = vor.u32 %v4220_v60, %v3066_v59  ;;  %v3071_v5 = vor.u32 %v4218_v61, %v3068_v63 }
  0x25   :  { %329 = vmatpush.bf16.msra.mxu1 %v3103_v45  ;;  %v3076_v3 = vld [vmem:[#allocation2 + $0x58] sm:$0xf0]  ;;  %v3075_v6 = vor.u32 %v4221_v1, %v3074_v0  ;;  %v3050_v7 = vld [vmem:[#allocation2 + $0x20] sm:$0xf]  ;;  %v4216_v8 = vld [vmem:[#allocation2 + $0x2c] sm:$0xf0] }
  0x26   :  { %358 = vmatpush.bf16.msra.mxu2 %v3107_v46  ;;  %387 = vmatpush.bf16.msra.mxu3 %v3111_v50  ;;  %v4214_v9 = vld [vmem:[#allocation2 + $0x24] sm:$0xf]  ;;  %v3079_v10 = vor.u32 %v4219_v2, %v3076_v3  ;;  %v3052_v11 = vld [vmem:[#allocation2 + $0x30] sm:$0xf0]  ;;  %v3058_v12 = vld [vmem:[#allocation2 + $0x28] sm:$0xf]  ;;  %v3051_v16 = vor.u32 %v4216_v8, %v3050_v7 }
  0x27   :  { %v4217_v13 = vld [vmem:[#allocation2 + $0x34] sm:$0xf0]  ;;  %v4215_v14 = vld [vmem:[#allocation2 + $0x2c] sm:$0xf]  ;;  %v3060_v15 = vld [vmem:[#allocation2 + $0x38] sm:$0xf0]  ;;  %v3055_v19 = vor.u32 %v4214_v9, %v3052_v11 }
  0x28   :  { %301 = vmatpush.bf16.msra.mxu0 %v3083_v56  ;;  %v3034_v17 = vld [vmem:[#allocation2] sm:$0xf]  ;;  %v4212_v18 = vld [vmem:[#allocation2 + $0xc] sm:$0xf0]  ;;  %v3059_v20 = vor.u32 %v4217_v13, %v3058_v12  ;;  %v4210_v21 = vld [vmem:[#allocation2 + $0x4] sm:$0xf]  ;;  %v3063_v24 = vor.u32 %v4215_v14, %v3060_v15 }
  0x29   :  { %330 = vmatpush.bf16.msra.mxu1 %v3087_v57  ;;  %v3036_v22 = vld [vmem:[#allocation2 + $0x10] sm:$0xf0]  ;;  %v3042_v23 = vld [vmem:[#allocation2 + $0x8] sm:$0xf]  ;;  %v4213_v25 = vld [vmem:[#allocation2 + $0x14] sm:$0xf0]  ;;  %v3035_v31 = vor.u32 %v4212_v18, %v3034_v17 }
  0x2a   :  { %359 = vmatpush.bf16.msra.mxu2 %v3091_v58  ;;  %388 = vmatpush.bf16.msra.mxu3 %v3095_v62  ;;  %v4211_v26 = vld [vmem:[#allocation2 + $0xc] sm:$0xf]  ;;  %v3044_v27 = vld [vmem:[#allocation2 + $0x18] sm:$0xf0]  ;;  %v83_v28 = vld [vmem:[#allocation8] sm:$0xff]  ;;  %v3039_v35 = vor.u32 %v4210_v21, %v3036_v22  ;;  %v3043_v36 = vor.u32 %v4213_v25, %v3042_v23  ;;  %s4771_s1 = smov [#allocation13]  }
  0x2b   :  { %v3274_v29 = vld [vmem:[#allocation3 + $0xe0] sm:$0xf]  ;;  %v4272_v30 = vld [vmem:[#allocation3 + $0xec] sm:$0xf0]  ;;  %v84_v32 = vld [vmem:[#allocation8 + $0x8] sm:$0xff]  ;;  %v3047_v37 = vor.u32 %v4211_v26, %v3044_v27  ;;  %s3003_s2 = sshll.u32 %s4771_s1, 4  ;;  %s3004_s2 = int_to_ptr.vmem [resolvable:$true] %s3003_s2 }
  0x2c   :  { %302 = vmatpush.bf16.msra.mxu0 %v3067_v4  ;;  %v4270_v33 = vld [vmem:[#allocation3 + $0xe4] sm:$0xf]  ;;  %v3276_v34 = vld [vmem:[#allocation3 + $0xf0] sm:$0xf0]  ;;  %v3275_v38 = vor.u32 %v4272_v30, %v3274_v29  ;;  %v4271_v39 = vld [vmem:[#allocation3 + $0xec] sm:$0xf]  ;;  %v91_v42 = vpack.c.bf16 %v84_v32, %v83_v28 }
  0x2d   :  { %331 = vmatpush.bf16.msra.mxu1 %v3071_v5  ;;  %v3282_v40 = vld [vmem:[#allocation3 + $0xe8] sm:$0xf]  ;;  %v4273_v41 = vld [vmem:[#allocation3 + $0xf4] sm:$0xf0]  ;;  %v3279_v43 = vor.u32 %v4270_v33, %v3276_v34  ;;  %v3284_v44 = vld [vmem:[#allocation3 + $0xf8] sm:$0xf0] }
  0x2e   :  { %360 = vmatpush.bf16.msra.mxu2 %v3075_v6  ;;  %389 = vmatpush.bf16.msra.mxu3 %v3079_v10  ;;  %v3258_v45 = vld [vmem:[#allocation3 + $0xc0] sm:$0xf]  ;;  %v4268_v46 = vld [vmem:[#allocation3 + $0xcc] sm:$0xf0]  ;;  %v4266_v47 = vld [vmem:[#allocation3 + $0xc4] sm:$0xf]  ;;  %v3283_v49 = vor.u32 %v4273_v41, %v3282_v40  ;;  %v3287_v50 = vor.u32 %v4271_v39, %v3284_v44 }
  0x2f   :  { %v3260_v48 = vld [vmem:[#allocation3 + $0xd0] sm:$0xf0]  ;;  %v3259_v51 = vor.u32 %v4268_v46, %v3258_v45  ;;  %v4267_v52 = vld [vmem:[#allocation3 + $0xcc] sm:$0xf]  ;;  %v3266_v53 = vld [vmem:[#allocation3 + $0xc8] sm:$0xf] }
  0x30   :  { %303 = vmatpush.bf16.msra.mxu0 %v3051_v16  ;;  %v4269_v54 = vld [vmem:[#allocation3 + $0xd4] sm:$0xf0]  ;;  %v3263_v55 = vor.u32 %v4266_v47, %v3260_v48  ;;  %v3268_v56 = vld [vmem:[#allocation3 + $0xd8] sm:$0xf0]  ;;  %v3242_v57 = vld [vmem:[#allocation3 + $0xa0] sm:$0xf] }
  0x31   :  { %332 = vmatpush.bf16.msra.mxu1 %v3055_v19  ;;  %v4264_v58 = vld [vmem:[#allocation3 + $0xac] sm:$0xf0]  ;;  %v4262_v59 = vld [vmem:[#allocation3 + $0xa4] sm:$0xf]  ;;  %v3244_v60 = vld [vmem:[#allocation3 + $0xb0] sm:$0xf0]  ;;  %v3267_v61 = vor.u32 %v4269_v54, %v3266_v53  ;;  %v3271_v62 = vor.u32 %v4267_v52, %v3268_v56 }
  0x32   :  { %361 = vmatpush.bf16.msra.mxu2 %v3059_v20  ;;  %390 = vmatpush.bf16.msra.mxu3 %v3063_v24  ;;  %v3243_v63 = vor.u32 %v4264_v58, %v3242_v57  ;;  %v4263_v0 = vld [vmem:[#allocation3 + $0xac] sm:$0xf]  ;;  %v3250_v1 = vld [vmem:[#allocation3 + $0xa8] sm:$0xf]  ;;  %v4265_v2 = vld [vmem:[#allocation3 + $0xb4] sm:$0xf0]  ;;  %v3247_v3 = vor.u32 %v4262_v59, %v3244_v60 }
  0x33   :  { %v3252_v4 = vld [vmem:[#allocation3 + $0xb8] sm:$0xf0]  ;;  %v3226_v5 = vld [vmem:[#allocation3 + $0x80] sm:$0xf]  ;;  %v4260_v6 = vld [vmem:[#allocation3 + $0x8c] sm:$0xf0]  ;;  %v3251_v9 = vor.u32 %v4265_v2, %v3250_v1 }
  0x34   :  { %304 = vmatpush.bf16.msra.mxu0 %v3035_v31  ;;  %v4258_v7 = vld [vmem:[#allocation3 + $0x84] sm:$0xf]  ;;  %v3228_v8 = vld [vmem:[#allocation3 + $0x90] sm:$0xf0]  ;;  %v3255_v11 = vor.u32 %v4263_v0, %v3252_v4  ;;  %v3227_v12 = vor.u32 %v4260_v6, %v3226_v5  ;;  %v4259_v13 = vld [vmem:[#allocation3 + $0x8c] sm:$0xf] }
  0x35   :  { %333 = vmatpush.bf16.msra.mxu1 %v3039_v35  ;;  %v85_v10 = vld [vmem:[#allocation8 + $0x10] sm:$0xff]  ;;  %v3234_v14 = vld [vmem:[#allocation3 + $0x88] sm:$0xf]  ;;  %v4261_v15 = vld [vmem:[#allocation3 + $0x94] sm:$0xf0]  ;;  %v3231_v16 = vor.u32 %v4258_v7, %v3228_v8  ;;  %s3005_s11 = sshll.u32 %s4986_s4, 4  ;;  %s3006_s11 = int_to_ptr.hbm [resolvable:$true] %s3005_s11 }
  0x36   :  { %362 = vmatpush.bf16.msra.mxu2 %v3043_v36  ;;  %391 = vmatpush.bf16.msra.mxu3 %v3047_v37  ;;  %v3236_v17 = vld [vmem:[#allocation3 + $0x98] sm:$0xf0]  ;;  %v3210_v18 = vld [vmem:[#allocation3 + $0x60] sm:$0xf]  ;;  %v4256_v19 = vld [vmem:[#allocation3 + $0x6c] sm:$0xf0]  ;;  %v3235_v23 = vor.u32 %v4261_v15, %v3234_v14 }
  0x37   :  { %305 = vmatmul.bf16.vlgmr.msra.gmra.mxu0 %v91_v42  ;;  %v86_v20 = vld [vmem:[#allocation8 + $0x18] sm:$0xff]  ;;  %v4254_v21 = vld [vmem:[#allocation3 + $0x64] sm:$0xf]  ;;  %v3212_v22 = vld [vmem:[#allocation3 + $0x70] sm:$0xf0]  ;;  %v3239_v24 = vor.u32 %v4259_v13, %v3236_v17  ;;  %v3211_v25 = vor.u32 %v4256_v19, %v3210_v18 }
  0x38   :  { %644 = vmatpush.bf16.msrb.mxu0 %v3275_v38  ;;  %334 = vmatmul.bf16.vlgmr.msra.gmra.mxu1 %v91_v42  ;;  %v4255_v26 = vld [vmem:[#allocation3 + $0x6c] sm:$0xf]  ;;  %v3218_v27 = vld [vmem:[#allocation3 + $0x68] sm:$0xf]  ;;  %v4257_v28 = vld [vmem:[#allocation3 + $0x74] sm:$0xf0]  ;;  %v92_v29 = vpack.c.bf16 %v86_v20, %v85_v10  ;;  %v3215_v30 = vor.u32 %v4254_v21, %v3212_v22 }
  0x39   :  { %657 = vmatpush.bf16.msrb.mxu1 %v3279_v43  ;;  %363 = vmatmul.bf16.vlgmr.msra.gmra.mxu2 %v91_v42  ;;  %v3220_v31 = vld [vmem:[#allocation3 + $0x78] sm:$0xf0]  ;;  %v3194_v32 = vld [vmem:[#allocation3 + $0x40] sm:$0xf]  ;;  %v4252_v33 = vld [vmem:[#allocation3 + $0x4c] sm:$0xf0]  ;;  %v3219_v36 = vor.u32 %v4257_v28, %v3218_v27 }
  0x3a   :  { %392 = vmatmul.bf16.vlgmr.msra.gmra.mxu3 %v91_v42  ;;  %670 = vmatpush.bf16.msrb.mxu2 %v3283_v49  ;;  %v4250_v34 = vld [vmem:[#allocation3 + $0x44] sm:$0xf]  ;;  %v3196_v35 = vld [vmem:[#allocation3 + $0x50] sm:$0xf0]  ;;  %v3223_v37 = vor.u32 %v4255_v26, %v3220_v31  ;;  %v3195_v38 = vor.u32 %v4252_v33, %v3194_v32  ;;  %v4251_v40 = vld [vmem:[#allocation3 + $0x4c] sm:$0xf] }
  0x3b   :  { %683 = vmatpush.bf16.msrb.mxu3 %v3287_v50  ;;  %v3199_v39 = vor.u32 %v4250_v34, %v3196_v35  ;;  %v3204_v41 = vld [vmem:[#allocation3 + $0x58] sm:$0xf0]  ;;  %v3178_v42 = vld [vmem:[#allocation3 + $0x20] sm:$0xf]  ;;  %v4248_v43 = vld [vmem:[#allocation3 + $0x2c] sm:$0xf0] }
  0x3c   :  { %645 = vmatpush.bf16.msrb.mxu0 %v3259_v51  ;;  %v4246_v44 = vld [vmem:[#allocation3 + $0x24] sm:$0xf]  ;;  %v3207_v45 = vor.u32 %v4251_v40, %v3204_v41  ;;  %v3179_v46 = vor.u32 %v4248_v43, %v3178_v42  ;;  %v3180_v47 = vld [vmem:[#allocation3 + $0x30] sm:$0xf0]  ;;  %v3202_v48 = vld [vmem:[#allocation3 + $0x48] sm:$0xf] }
  0x3d   :  { %658 = vmatpush.bf16.msrb.mxu1 %v3263_v55  ;;  %v4253_v49 = vld [vmem:[#allocation3 + $0x54] sm:$0xf0]  ;;  %v3183_v50 = vor.u32 %v4246_v44, %v3180_v47  ;;  %v4247_v52 = vld [vmem:[#allocation3 + $0x2c] sm:$0xf]  ;;  %v3188_v53 = vld [vmem:[#allocation3 + $0x38] sm:$0xf0] }
  0x3e   :  { %671 = vmatpush.bf16.msrb.mxu2 %v3267_v61  ;;  %v3203_v51 = vor.u32 %v4253_v49, %v3202_v48  ;;  %v3162_v54 = vld [vmem:[#allocation3] sm:$0xf]  ;;  %v4244_v55 = vld [vmem:[#allocation3 + $0xc] sm:$0xf0]  ;;  %v4242_v56 = vld [vmem:[#allocation3 + $0x4] sm:$0xf]  ;;  %v3191_v60 = vor.u32 %v4247_v52, %v3188_v53 }
  0x3f   :  { %684 = vmatpush.bf16.msrb.mxu3 %v3271_v62  ;;  %v3164_v57 = vld [vmem:[#allocation3 + $0x10] sm:$0xf0]  ;;  %v3186_v58 = vld [vmem:[#allocation3 + $0x28] sm:$0xf]  ;;  %v4249_v59 = vld [vmem:[#allocation3 + $0x34] sm:$0xf0]  ;;  %v3163_v61 = vor.u32 %v4244_v55, %v3162_v54 }
  0x40   :  { %646 = vmatpush.bf16.msrb.mxu0 %v3243_v63  ;;  %v3187_v62 = vor.u32 %v4249_v59, %v3186_v58  ;;  %v3170_v63 = vld [vmem:[#allocation3 + $0x8] sm:$0xf]  ;;  %v4245_v0 = vld [vmem:[#allocation3 + $0x14] sm:$0xf0]  ;;  %v3167_v1 = vor.u32 %v4242_v56, %v3164_v57  ;;  %v4243_v2 = vld [vmem:[#allocation3 + $0xc] sm:$0xf] }
  0x41   :  { %659 = vmatpush.bf16.msrb.mxu1 %v3247_v3  ;;  %v3172_v3 = vld [vmem:[#allocation3 + $0x18] sm:$0xf0]  ;;  %v87_v4 = vld [vmem:[#allocation8 + $0x20] sm:$0xff]  ;;  %v88_v5 = vld [vmem:[#allocation8 + $0x28] sm:$0xff]  ;;  %v3171_v6 = vor.u32 %v4245_v0, %v3170_v63 }
  0x42   :  { %672 = vmatpush.bf16.msrb.mxu2 %v3251_v9  ;;  %v3175_v7 = vor.u32 %v4243_v2, %v3172_v3  ;;  %v93_v8 = vpack.c.bf16 %v88_v5, %v87_v4  ;;  %v89_v9 = vld [vmem:[#allocation8 + $0x30] sm:$0xff]  ;;  %v90_v10 = vld [vmem:[#allocation8 + $0x38] sm:$0xff]  ;;  %v127_v15 = vld [vmem:[#allocation11] sm:$0xf] }
  0x43   :  { %685 = vmatpush.bf16.msrb.mxu3 %v3255_v11  ;;  %v94_v11 = vpack.c.bf16 %v90_v10, %v89_v9  ;;  %v4820_v18 = vperm.slane %v127_v15, 1  ;;  %v3405_v58 = vld [vmem:[#allocation3 + $0xe0] sm:$0xf]  ;;  %v4304_v59 = vld [vmem:[#allocation3 + $0xec] sm:$0xf0] }
  0x44   :  { %647 = vmatpush.bf16.msrb.mxu0 %v3227_v12  ;;  %v4770_v12 = vmov 0.0|0.0   ;;  %v3407_v63 = vld [vmem:[#allocation3 + $0xf0] sm:$0xf0]  ;;  %v3413_v0 = vld [vmem:[#allocation3 + $0xe8] sm:$0xf] }
  0x45   :  { %660 = vmatpush.bf16.msrb.mxu1 %v3231_v16  ;;  %v4816_v16 = vperm.slane %v127_v15, 0 }
  0x46   :  { %673 = vmatpush.bf16.msrb.mxu2 %v3235_v23 }
  0x47   :  { %686 = vmatpush.bf16.msrb.mxu3 %v3239_v24  ;;  %310 = vmatmul.bf16.gmra.mxu0 %v92_v29  ;;  %v4830_v24 = vperm.slane %v127_v15, 2 }
  0x48   :  { %648 = vmatpush.bf16.msrb.mxu0 %v3211_v25  ;;  %339 = vmatmul.bf16.gmra.mxu1 %v92_v29  ;;  %v4832_v25 = vperm.slane %v127_v15, 3 }
  0x49   :  { %661 = vmatpush.bf16.msrb.mxu1 %v3215_v30  ;;  %368 = vmatmul.bf16.gmra.mxu2 %v92_v29 }
  0x4a   :  { %397 = vmatmul.bf16.gmra.mxu3 %v92_v29  ;;  %674 = vmatpush.bf16.msrb.mxu2 %v3219_v36 }
  0x4b   :  { %687 = vmatpush.bf16.msrb.mxu3 %v3223_v37 }
  0x4c   :  { %649 = vmatpush.bf16.msrb.mxu0 %v3195_v38 }
  0x4d   :  { %662 = vmatpush.bf16.msrb.mxu1 %v3199_v39 }
  0x4e   :  { %675 = vmatpush.bf16.msrb.mxu2 %v3203_v51 }
  0x4f   :  { %688 = vmatpush.bf16.msrb.mxu3 %v3207_v45 }
  0x50   :  { %650 = vmatpush.bf16.msrb.mxu0 %v3179_v46 }
  0x51   :  { %663 = vmatpush.bf16.msrb.mxu1 %v3183_v50 }
  0x52   :  { %676 = vmatpush.bf16.msrb.mxu2 %v3187_v62  ;;  %v3406_v62 = vor.u32 %v4304_v59, %v3405_v58  ;;  %v3381_v58 = vld [vmem:[#allocation3 + $0xa8] sm:$0xf]  ;;  %v4297_v59 = vld [vmem:[#allocation3 + $0xb4] sm:$0xf0] }
  0x53   :  { %689 = vmatpush.bf16.msrb.mxu3 %v3191_v60  ;;  %v4302_v60 = vld [vmem:[#allocation3 + $0xe4] sm:$0xf] }
  0x54   :  { %651 = vmatpush.bf16.msrb.mxu0 %v3163_v61  ;;  %v3410_v5 = vor.u32 %v4302_v60, %v3407_v63 }
  0x55   :  { %664 = vmatpush.bf16.msrb.mxu1 %v3167_v1  ;;  %v4305_v1 = vld [vmem:[#allocation3 + $0xf4] sm:$0xf0] }
  0x56   :  { %677 = vmatpush.bf16.msrb.mxu2 %v3171_v6  ;;  %v3414_v6 = vor.u32 %v4305_v1, %v3413_v0  ;;  %v3382_v0 = vor.u32 %v4297_v59, %v3381_v58  ;;  %v4295_v1 = vld [vmem:[#allocation3 + $0xac] sm:$0xf]  ;;  %v4289_v58 = vld [vmem:[#allocation3 + $0x74] sm:$0xf0] }
  0x57   :  { %690 = vmatpush.bf16.msrb.mxu3 %v3175_v7  ;;  %315 = vmatmul.bf16.gmra.mxu0 %v93_v8  ;;  %v4303_v7 = vld [vmem:[#allocation3 + $0xec] sm:$0xf] }
  0x58   :  { %344 = vmatmul.bf16.gmra.mxu1 %v93_v8  ;;  %962 = vmatpush.bf16.msra.mxu0 %v3406_v62 }
  0x59   :  { %373 = vmatmul.bf16.gmra.mxu2 %v93_v8  ;;  %975 = vmatpush.bf16.msra.mxu1 %v3410_v5 }
  0x5a   :  { %402 = vmatmul.bf16.gmra.mxu3 %v93_v8  ;;  %v3415_v8 = vld [vmem:[#allocation3 + $0xf8] sm:$0xf0]  ;;  %988 = vmatpush.bf16.msra.mxu2 %v3414_v6 }
  0x67   :  { %320 = vmatmul.bf16.gmra.mxu0 %v94_v11 }
  0x68   :  { %349 = vmatmul.bf16.gmra.mxu1 %v94_v11 }
  0x69   :  { %378 = vmatmul.bf16.gmra.mxu2 %v94_v11 }
  0x6a   :  { %407 = vmatmul.bf16.gmra.mxu3 %v94_v11 }
  0x77   :  { %652 = vmatmul.bf16.vlgmr.msrb.gmra.mxu0 %v4770_v12 }
  0x78   :  { %665 = vmatmul.bf16.vlgmr.msrb.gmra.mxu1 %v4770_v12 }
  0x79   :  { %678 = vmatmul.bf16.vlgmr.msrb.gmra.mxu2 %v4770_v12 }
  0x7a   :  { %691 = vmatmul.bf16.vlgmr.msrb.gmra.mxu3 %v4770_v12  ;;  %v3418_v12 = vor.u32 %v4303_v7, %v3415_v8 }
  0x7c   :  { %1001 = vmatpush.bf16.msra.mxu3 %v3418_v12  ;;  %v4292_v12 = vld [vmem:[#allocation3 + $0x8c] sm:$0xf0] }
  0xb4   :  { %v4812_v13 = vpop.f32.mrf.mxu0 }
  0xb5   :  { %v4814_v14 = vpop.f32.mrf.mxu1 }
  0xb6   :  { %v336_v59 = vadd.f32 %v4814_v14, %v4820_v18  ;;  %v3325_v14 = vld [vmem:[#allocation3 + $0x40] sm:$0xf] }
  0xbc   :  { %v4818_v17 = vpop.f32.mrf.mxu2  ;;  %v308_v20 = vpop.f32.mrf.mxu0 }
  0xbd   :  { %v4822_v19 = vpop.f32.mrf.mxu3  ;;  %v4825_v21 = vadd.f32 %v308_v20, %v4816_v16  ;;  %v337_v22 = vpop.f32.mrf.mxu1  ;;  %v3389_v20 = vld [vmem:[#allocation3 + $0xc0] sm:$0xf] }
  0xbe   :  { %v4828_v23 = vadd.f32 %v337_v22, %v4820_v18  ;;  %v4300_v22 = vld [vmem:[#allocation3 + $0xcc] sm:$0xf0] }
  0xc4   :  { %v366_v26 = vpop.f32.mrf.mxu2  ;;  %v311_v29 = vpop.f32.mrf.mxu0 }
  0xc5   :  { %v4835_v27 = vadd.f32 %v366_v26, %v4830_v24  ;;  %v395_v28 = vpop.f32.mrf.mxu3  ;;  %v4841_v31 = vadd.f32 %v311_v29, %v4816_v16  ;;  %v340_v32 = vpop.f32.mrf.mxu1  ;;  %v4298_v26 = vld [vmem:[#allocation3 + $0xc4] sm:$0xf]  ;;  %v3391_v29 = vld [vmem:[#allocation3 + $0xd0] sm:$0xf0] }
  0xc6   :  { %v4838_v30 = vadd.f32 %v395_v28, %v4832_v25  ;;  %v4844_v33 = vadd.f32 %v340_v32, %v4820_v18  ;;  %v3390_v28 = vor.u32 %v4300_v22, %v3389_v20  ;;  %v3397_v32 = vld [vmem:[#allocation3 + $0xc8] sm:$0xf]  ;;  %v4290_v20 = vld [vmem:[#allocation3 + $0x84] sm:$0xf] }
  0xc8   :  { %963 = vmatpush.bf16.msra.mxu0 %v3390_v28  ;;  %v3365_v28 = vld [vmem:[#allocation3 + $0x88] sm:$0xf] }
  0xcc   :  { %v369_v34 = vpop.f32.mrf.mxu2  ;;  %v313_v37 = vpop.f32.mrf.mxu0 }
  0xcd   :  { %v4847_v35 = vadd.f32 %v369_v34, %v4830_v24  ;;  %v398_v36 = vpop.f32.mrf.mxu3  ;;  %v4853_v39 = vadd.f32 %v313_v37, %v4816_v16  ;;  %v342_v40 = vpop.f32.mrf.mxu1  ;;  %v4301_v34 = vld [vmem:[#allocation3 + $0xd4] sm:$0xf0] }
  0xce   :  { %v4850_v38 = vadd.f32 %v398_v36, %v4832_v25  ;;  %v4856_v41 = vadd.f32 %v342_v40, %v4820_v18  ;;  %v3394_v36 = vor.u32 %v4298_v26, %v3391_v29  ;;  %v3398_v37 = vor.u32 %v4301_v34, %v3397_v32  ;;  %v4299_v40 = vld [vmem:[#allocation3 + $0xcc] sm:$0xf]  ;;  %v3359_v26 = vld [vmem:[#allocation3 + $0x90] sm:$0xf0]  ;;  %v4293_v29 = vld [vmem:[#allocation3 + $0x94] sm:$0xf0] }
  0xcf   :  { %v3362_v32 = vor.u32 %v4290_v20, %v3359_v26  ;;  %v3366_v34 = vor.u32 %v4293_v29, %v3365_v28  ;;  %v4282_v20 = vld [vmem:[#allocation3 + $0x44] sm:$0xf]  ;;  %v3327_v28 = vld [vmem:[#allocation3 + $0x50] sm:$0xf0]  ;;  %v3333_v29 = vld [vmem:[#allocation3 + $0x48] sm:$0xf] }
  0xd0   :  { %976 = vmatpush.bf16.msra.mxu1 %v3394_v36  ;;  %989 = vmatpush.bf16.msra.mxu2 %v3398_v37  ;;  %v4291_v36 = vld [vmem:[#allocation3 + $0x8c] sm:$0xf]  ;;  %v3367_v37 = vld [vmem:[#allocation3 + $0x98] sm:$0xf0] }
  0xd4   :  { %v371_v42 = vpop.f32.mrf.mxu2  ;;  %v316_v45 = vpop.f32.mrf.mxu0  ;;  %990 = vmatpush.bf16.msra.mxu2 %v3382_v0 }
  0xd5   :  { %v4859_v43 = vadd.f32 %v371_v42, %v4830_v24  ;;  %v400_v44 = vpop.f32.mrf.mxu3  ;;  %v4865_v47 = vadd.f32 %v316_v45, %v4816_v16  ;;  %v345_v48 = vpop.f32.mrf.mxu1  ;;  %v3399_v42 = vld [vmem:[#allocation3 + $0xd8] sm:$0xf0]  ;;  %v3373_v45 = vld [vmem:[#allocation3 + $0xa0] sm:$0xf] }
  0xd6   :  { %v4862_v46 = vadd.f32 %v400_v44, %v4832_v25  ;;  %v4868_v49 = vadd.f32 %v345_v48, %v4820_v18  ;;  %v3402_v44 = vor.u32 %v4299_v40, %v3399_v42  ;;  %v4296_v48 = vld [vmem:[#allocation3 + $0xac] sm:$0xf0]  ;;  %v3370_v40 = vor.u32 %v4291_v36, %v3367_v37  ;;  %v3341_v42 = vld [vmem:[#allocation3 + $0x60] sm:$0xf]  ;;  %v4285_v36 = vld [vmem:[#allocation3 + $0x54] sm:$0xf0] }
  0xd7   :  { %v4283_v37 = vld [vmem:[#allocation3 + $0x4c] sm:$0xf] }
  0xd8   :  { %1002 = vmatpush.bf16.msra.mxu3 %v3402_v44  ;;  %991 = vmatpush.bf16.msra.mxu2 %v3366_v34  ;;  %v4288_v44 = vld [vmem:[#allocation3 + $0x6c] sm:$0xf0]  ;;  %v3330_v34 = vor.u32 %v4282_v20, %v3327_v28 }
  0xdc   :  { %v374_v50 = vpop.f32.mrf.mxu2  ;;  %v318_v53 = vpop.f32.mrf.mxu0 }
  0xdd   :  { %v4871_v51 = vadd.f32 %v374_v50, %v4830_v24  ;;  %v403_v52 = vpop.f32.mrf.mxu3  ;;  %v4877_v55 = vadd.f32 %v318_v53, %v4816_v16  ;;  %v347_v56 = vpop.f32.mrf.mxu1  ;;  %v4294_v50 = vld [vmem:[#allocation3 + $0xa4] sm:$0xf]  ;;  %v3374_v53 = vor.u32 %v4296_v48, %v3373_v45  ;;  %v307_v48 = vadd.f32 %v4812_v13, %v4816_v16 }
  0xde   :  { %v4874_v54 = vadd.f32 %v403_v52, %v4832_v25  ;;  %v4880_v57 = vadd.f32 %v347_v56, %v4820_v18  ;;  %v3375_v56 = vld [vmem:[#allocation3 + $0xb0] sm:$0xf0]  ;;  %v4286_v45 = vld [vmem:[#allocation3 + $0x64] sm:$0xf] }
  0xdf   :  { %v3378_v63 = vor.u32 %v4294_v50, %v3375_v56  ;;  %964 = vmatpush.bf16.msra.mxu0 %v3374_v53  ;;  %v3343_v53 = vld [vmem:[#allocation3 + $0x70] sm:$0xf0]  ;;  %v3349_v56 = vld [vmem:[#allocation3 + $0x68] sm:$0xf] }
  0xe0   :  { %v3346_v0 = vor.u32 %v4286_v45, %v3343_v53  ;;  %v4280_v45 = vld [vmem:[#allocation3 + $0x2c] sm:$0xf0]  ;;  %v3311_v53 = vld [vmem:[#allocation3 + $0x30] sm:$0xf0] }
  0xe1   :  { %977 = vmatpush.bf16.msra.mxu1 %v3378_v63 }
  0xe4   :  { %v376_v61 = vpop.f32.mrf.mxu2  ;;  %v321_v4 = vpop.f32.mrf.mxu0 }
  0xe5   :  { %v4883_v2 = vadd.f32 %v376_v61, %v4830_v24  ;;  %v405_v3 = vpop.f32.mrf.mxu3  ;;  %v4889_v10 = vadd.f32 %v321_v4, %v4816_v16  ;;  %v350_v11 = vpop.f32.mrf.mxu1  ;;  %978 = vmatpush.bf16.msra.mxu1 %v3362_v32 }
  0xe6   :  { %v4886_v9 = vadd.f32 %v405_v3, %v4832_v25  ;;  %v4892_v15 = vadd.f32 %v350_v11, %v4820_v18  ;;  %v3383_v3 = vld [vmem:[#allocation3 + $0xb8] sm:$0xf0]  ;;  %v3357_v11 = vld [vmem:[#allocation3 + $0x80] sm:$0xf] }
  0xe7   :  { %v3386_v7 = vor.u32 %v4295_v1, %v3383_v3  ;;  %v3358_v22 = vor.u32 %v4292_v12, %v3357_v11  ;;  %v3350_v1 = vor.u32 %v4289_v58, %v3349_v56  ;;  %v4287_v3 = vld [vmem:[#allocation3 + $0x6c] sm:$0xf]  ;;  %v3317_v56 = vld [vmem:[#allocation3 + $0x28] sm:$0xf]  ;;  %v394_v58 = vadd.f32 %v4822_v19, %v4832_v25 }
  0xe8   :  { %v3301_v19 = vld [vmem:[#allocation3 + $0x8] sm:$0xf] }
  0xe9   :  { %1003 = vmatpush.bf16.msra.mxu3 %v3386_v7  ;;  %965 = vmatpush.bf16.msra.mxu0 %v3358_v22 }
  0xea   :  { %979 = vmatpush.bf16.msra.mxu1 %v3346_v0  ;;  %992 = vmatpush.bf16.msra.mxu2 %v3350_v1  ;;  %v4279_v0 = vld [vmem:[#allocation3 + $0x2c] sm:$0xf]  ;;  %v3319_v1 = vld [vmem:[#allocation3 + $0x38] sm:$0xf0] }
  0xec   :  { %v379_v52 = vpop.f32.mrf.mxu2  ;;  %v323_v62 = vpop.f32.mrf.mxu0 }
  0xed   :  { %v4895_v60 = vadd.f32 %v379_v52, %v4830_v24  ;;  %v408_v61 = vpop.f32.mrf.mxu3  ;;  %v4901_v5 = vadd.f32 %v323_v62, %v4816_v16  ;;  %v352_v6 = vpop.f32.mrf.mxu1  ;;  %1004 = vmatpush.bf16.msra.mxu3 %v3370_v40  ;;  %v3342_v52 = vor.u32 %v4288_v44, %v3341_v42  ;;  %v3334_v40 = vor.u32 %v4285_v36, %v3333_v29  ;;  %v3335_v42 = vld [vmem:[#allocation3 + $0x58] sm:$0xf0]  ;;  %v3309_v44 = vld [vmem:[#allocation3 + $0x20] sm:$0xf]  ;;  %v4275_v29 = vld [vmem:[#allocation3 + $0xc] sm:$0xf] }
  0xee   :  { %v4898_v4 = vadd.f32 %v408_v61, %v4832_v25  ;;  %v4904_v8 = vadd.f32 %v352_v6, %v4820_v18  ;;  %v3351_v6 = vld [vmem:[#allocation3 + $0x78] sm:$0xf0]  ;;  %v4284_v18 = vld [vmem:[#allocation3 + $0x4c] sm:$0xf0]  ;;  %980 = vmatpush.bf16.msra.mxu1 %v3330_v34 }
  0xef   :  { %966 = vmatpush.bf16.msra.mxu0 %v3342_v52  ;;  %v3354_v11 = vor.u32 %v4287_v3, %v3351_v6  ;;  %v3326_v26 = vor.u32 %v4284_v18, %v3325_v14  ;;  %v4278_v52 = vld [vmem:[#allocation3 + $0x24] sm:$0xf]  ;;  %993 = vmatpush.bf16.msra.mxu2 %v3334_v40 }
  0xf0   :  { %v4274_v14 = vld [vmem:[#allocation3 + $0x4] sm:$0xf] }
  0xf1   :  { %1005 = vmatpush.bf16.msra.mxu3 %v3354_v11  ;;  %v3293_v11 = vld [vmem:[#allocation3] sm:$0xf] }
  0xf3   :  { %967 = vmatpush.bf16.msra.mxu0 %v3326_v26  ;;  %v3295_v26 = vld [vmem:[#allocation3 + $0x10] sm:$0xf0] }
  0xf4   :  { %v381_v50 = vpop.f32.mrf.mxu2  ;;  %v653_v63 = vpop.f32.mrf.mxu0  ;;  %v3298_v28 = vor.u32 %v4274_v14, %v3295_v26 }
  0xf5   :  { %v4911_v61 = vadd.f32 %v381_v50, %v4830_v24  ;;  %v410_v62 = vpop.f32.mrf.mxu3  ;;  %v696_v16 = vadd.f32 %v653_v63, %v307_v48  ;;  %v666_v7 = vpop.f32.mrf.mxu1  ;;  %v3338_v48 = vor.u32 %v4283_v37, %v3335_v42  ;;  %v3310_v50 = vor.u32 %v4280_v45, %v3309_v44  ;;  %v4281_v63 = vld [vmem:[#allocation3 + $0x34] sm:$0xf0] }
  0xf6   :  { %v4914_v13 = vadd.f32 %v410_v62, %v4832_v25  ;;  %v697_v12 = vadd.f32 %v666_v7, %v336_v59  ;;  %v3314_v62 = vor.u32 %v4278_v52, %v3311_v53  ;;  %v3322_v7 = vor.u32 %v4279_v0, %v3319_v1  ;;  %v4277_v25 = vld [vmem:[#allocation3 + $0x14] sm:$0xf0] }
  0xf7   :  { %v3288_v22 = vmul.f32 -1.442695, %v696_v16  ;;  %1006 = vmatpush.bf16.msra.mxu3 %v3338_v48  ;;  %v3318_v16 = vor.u32 %v4281_v63, %v3317_v56  ;;  %968 = vmatpush.bf16.msra.mxu0 %v3310_v50  ;;  %v3302_v37 = vor.u32 %v4277_v25, %v3301_v19  ;;  %v365_v52 = vadd.f32 %v4818_v17, %v4830_v24 }
  0xf8   :  { %v3289_v32 = vmul.f32 -1.442695, %v697_v12  ;;  %v4276_v12 = vld [vmem:[#allocation3 + $0xc] sm:$0xf0]  ;;  %981 = vmatpush.bf16.msra.mxu1 %v3314_v62 }
  0xf9   :  { %4506 = vpow2.f32 %v3288_v22  ;;  %v3294_v22 = vor.u32 %v4276_v12, %v3293_v11  ;;  %994 = vmatpush.bf16.msra.mxu2 %v3318_v16 }
  0xfa   :  { %4508 = vpow2.f32 %v3289_v32  ;;  %v3303_v32 = vld [vmem:[#allocation3 + $0x18] sm:$0xf0] }
  0xfb   :  { %1007 = vmatpush.bf16.msra.mxu3 %v3322_v7  ;;  %v3306_v44 = vor.u32 %v4275_v29, %v3303_v32  ;;  %969 = vmatpush.bf16.msra.mxu0 %v3294_v22 }
  0xfc   :  { %v679_v59 = vpop.f32.mrf.mxu2  ;;  %v655_v6 = vpop.f32.mrf.mxu0  ;;  %982 = vmatpush.bf16.msra.mxu1 %v3298_v28 }
  0xfd   :  { %v692_v3 = vpop.f32.mrf.mxu3  ;;  %v668_v20 = vpop.f32.mrf.mxu1  ;;  %995 = vmatpush.bf16.msra.mxu2 %v3302_v37 }
  0xfe   :  { %v699_v18 = vadd.f32 %v692_v3, %v394_v58  ;;  %v698_v58 = vadd.f32 %v679_v59, %v365_v52 }
  0xff   :  { %v4507_v34 = vpop.eup %4506  ;;  %1008 = vmatpush.bf16.msra.mxu3 %v3306_v44 }
 0x100   :  { %v3290_v36 = vmul.f32 -1.442695, %v699_v18  ;;  %v4509_v40 = vpop.eup %4508  ;;  %v703_v42 = vadd.f32 1.0, %v4507_v34 }
 0x101   :  { %v722_v45 = vadd.f32 1.0, %v4509_v40 }
 0x102   :  { %4510 = vpow2.f32 %v3290_v36  ;;  %v715_v16 = vand.u32 2147483648, %v703_v42  ;;  %v713_v12 = vand.u32 2147483647, %v703_v42  ;;  %vm709_vm2 = vweird.f32 %v703_v42 }
 0x103   :  { %4512 = vrcp.f32 %v703_v42  ;;  %v734_v7 = vand.u32 2147483648, %v722_v45  ;;  %v732_v18 = vand.u32 2147483647, %v722_v45  ;;  %vm728_vm3 = vweird.f32 %v722_v45 }
 0x104   :  { %4514 = vrcp.f32 %v722_v45  ;;  %v681_v48 = vpop.f32.mrf.mxu2  ;;  %v716_v59 = vor.u32 1.1754944e-38, %v715_v16  ;;  %vm714_vm5 = vcmp.eq.f32.partialorder %v713_v12, 8.507059e+37  ;;  %v3538_v16 = vld [vmem:[#allocation3 + $0xf0] sm:$0xf0] }
 0x105   :  { %v694_v50 = vpop.f32.mrf.mxu3  ;;  %v735_v22 = vor.u32 1.1754944e-38, %v734_v7  ;;  %vm733_vm7 = vcmp.eq.f32.partialorder %v732_v18, 8.507059e+37  ;;  %v3544_v7 = vld [vmem:[#allocation3 + $0xe8] sm:$0xf]  ;;  %v3546_v18 = vld [vmem:[#allocation3 + $0xf8] sm:$0xf0] }
 0x108   :  { %v4511_v53 = vpop.eup %4510 }
 0x109   :  { %v4513_v56 = vpop.eup %4512  ;;  %v742_v62 = vadd.f32 1.0, %v4511_v53 }
 0x10a   :  { %v4515_v63 = vpop.eup %4514  ;;  %v705_v0 = vmul.f32 %v4513_v56, %v703_v42  ;;  %vm710_vm0 = vweird.f32 %v4513_v56 }
 0x10b   :  { %v724_v1 = vmul.f32 %v4515_v63, %v722_v45  ;;  %4516 = vrcp.f32 %v742_v62  ;;  %vm729_vm1 = vweird.f32 %v4515_v63  ;;  %vm711_vm4 = vmor %vm709_vm2, %vm710_vm0  ;;  %v754_v45 = vand.u32 2147483648, %v742_v62 }
 0x10c   :  { %v706_v3 = vsub.f32 1.0, %v705_v0  ;;  %4518 = vtanh.f32 %v698_v58  ;;  %vm730_vm6 = vmor %vm728_vm3, %vm729_vm1  ;;  %vm748_vm9 = vweird.f32 %v742_v62  ;;  %v752_v48 = vand.u32 2147483647, %v742_v62  ;;  %v3536_v0 = vld [vmem:[#allocation3 + $0xe0] sm:$0xf] }
 0x10d   :  { %v725_v6 = vsub.f32 1.0, %v724_v1  ;;  %v755_v52 = vor.u32 1.1754944e-38, %v754_v45  ;;  %v4336_v1 = vld [vmem:[#allocation3 + $0xec] sm:$0xf0] }
 0x10e   :  { %v707_v11 = vmul.f32 %v4513_v56, %v706_v3  ;;  %vm753_vm11 = vcmp.eq.f32.partialorder %v752_v48, 8.507059e+37  ;;  %v4334_v3 = vld [vmem:[#allocation3 + $0xe4] sm:$0xf]  ;;  %v3506_v48 = vld [vmem:[#allocation3 + $0xb0] sm:$0xf0] }
 0x10f   :  { %v726_v14 = vmul.f32 %v4515_v63, %v725_v6  ;;  %v3537_v6 = vor.u32 %v4336_v1, %v3536_v0  ;;  %v3488_v1 = vld [vmem:[#allocation3 + $0x80] sm:$0xf] }
 0x110   :  { %v708_v17 = vadd.f32 %v4513_v56, %v707_v11  ;;  %v3541_v11 = vor.u32 %v4334_v3, %v3538_v16  ;;  %v4324_v3 = vld [vmem:[#allocation3 + $0x8c] sm:$0xf0] }
 0x111   :  { %v4517_v24 = vpop.eup %4516  ;;  %v727_v20 = vadd.f32 %v4515_v63, %v726_v14  ;;  %v4335_v14 = vld [vmem:[#allocation3 + $0xec] sm:$0xf]  ;;  %1281 = vmatpush.bf16.msrb.mxu0 %v3537_v6  ;;  %v4322_v6 = vld [vmem:[#allocation3 + $0x84] sm:$0xf]  ;;  %v3489_v16 = vor.u32 %v4324_v3, %v3488_v1  ;;  %v3464_v3 = vld [vmem:[#allocation3 + $0x48] sm:$0xf] }
 0x112   :  { %v712_v26 = vsel %vm711_vm4, %v4513_v56, %v708_v17  ;;  %v744_v19 = vmul.f32 %v4517_v24, %v742_v62  ;;  %v4519_v25 = vpop.eup %4518  ;;  %vm749_vm8 = vweird.f32 %v4517_v24  ;;  %v4337_v62 = vld [vmem:[#allocation3 + $0xf4] sm:$0xf0]  ;;  %v3549_v17 = vor.u32 %v4335_v14, %v3546_v18  ;;  %1294 = vmatpush.bf16.msrb.mxu1 %v3541_v11  ;;  %v4323_v18 = vld [vmem:[#allocation3 + $0x8c] sm:$0xf] }
 0x113   :  { %v717_v28 = vsel %vm714_vm5, %v716_v59, %v712_v26  ;;  %v731_v29 = vsel %vm730_vm6, %v4515_v63, %v727_v20  ;;  %vm750_vm10 = vmor %vm748_vm9, %vm749_vm8  ;;  %v3545_v12 = vor.u32 %v4337_v62, %v3544_v7  ;;  %v4332_v59 = vld [vmem:[#allocation3 + $0xcc] sm:$0xf0]  ;;  %v4330_v20 = vld [vmem:[#allocation3 + $0xc4] sm:$0xf] }
 0x114   :  { %v736_v32 = vsel %vm733_vm7, %v735_v22, %v731_v29  ;;  %v759_v34 = vmul.f32 %v4519_v25, %v717_v28  ;;  %v745_v36 = vsub.f32 1.0, %v744_v19  ;;  %1320 = vmatpush.bf16.msrb.mxu3 %v3549_v17  ;;  %v3522_v26 = vld [vmem:[#allocation3 + $0xd0] sm:$0xf0]  ;;  %v3528_v19 = vld [vmem:[#allocation3 + $0xc8] sm:$0xf] }
 0x115   :  { %v758_v37 = vmul.f32 0.0, %v736_v32  ;;  %1307 = vmatpush.bf16.msrb.mxu2 %v3545_v12  ;;  %v4333_v25 = vld [vmem:[#allocation3 + $0xd4] sm:$0xf0]  ;;  %v3525_v28 = vor.u32 %v4330_v20, %v3522_v26  ;;  %v4331_v32 = vld [vmem:[#allocation3 + $0xcc] sm:$0xf] }
 0x116   :  { %v746_v40 = vmul.f32 %v4517_v24, %v745_v36  ;;  %v3529_v29 = vor.u32 %v4333_v25, %v3528_v19  ;;  %v3490_v7 = vld [vmem:[#allocation3 + $0x90] sm:$0xf0]  ;;  %v3496_v62 = vld [vmem:[#allocation3 + $0x88] sm:$0xf]  ;;  %v4325_v11 = vld [vmem:[#allocation3 + $0x94] sm:$0xf0] }
 0x117   :  { %v4920_v42 = vadd.f32 %v759_v34, %v758_v37  ;;  %v3530_v34 = vld [vmem:[#allocation3 + $0xd8] sm:$0xf0]  ;;  %1295 = vmatpush.bf16.msrb.mxu1 %v3525_v28  ;;  %v3504_v37 = vld [vmem:[#allocation3 + $0xa0] sm:$0xf]  ;;  %v3493_v12 = vor.u32 %v4322_v6, %v3490_v7  ;;  %v3497_v14 = vor.u32 %v4325_v11, %v3496_v62  ;;  %v4320_v20 = vld [vmem:[#allocation3 + $0x6c] sm:$0xf0] }
 0x118   :  { %v747_v44 = vadd.f32 %v4517_v24, %v746_v40  ;;  %v3533_v36 = vor.u32 %v4331_v32, %v3530_v34  ;;  %v4328_v40 = vld [vmem:[#allocation3 + $0xac] sm:$0xf0]  ;;  %v3498_v17 = vld [vmem:[#allocation3 + $0x98] sm:$0xf0]  ;;  %v3474_v19 = vld [vmem:[#allocation3 + $0x70] sm:$0xf0] }
 0x119   :  { %4520 = vtanh.f32 %v4920_v42  ;;  %1308 = vmatpush.bf16.msrb.mxu2 %v3529_v29  ;;  %v3505_v45 = vor.u32 %v4328_v40, %v3504_v37  ;;  %v3480_v25 = vld [vmem:[#allocation3 + $0x68] sm:$0xf]  ;;  %v4321_v28 = vld [vmem:[#allocation3 + $0x74] sm:$0xf0]  ;;  %v4319_v37 = vld [vmem:[#allocation3 + $0x6c] sm:$0xf] }
 0x11a   :  { %v751_v50 = vsel %vm750_vm10, %v4517_v24, %v747_v44  ;;  %v3520_v24 = vld [vmem:[#allocation3 + $0xc0] sm:$0xf]  ;;  %v4326_v44 = vld [vmem:[#allocation3 + $0xa4] sm:$0xf]  ;;  %1321 = vmatpush.bf16.msrb.mxu3 %v3533_v36  ;;  %v3481_v36 = vor.u32 %v4321_v28, %v3480_v25  ;;  %v3482_v40 = vld [vmem:[#allocation3 + $0x78] sm:$0xf0] }
 0x11b   :  { %v756_v56 = vsel %vm753_vm11, %v755_v52, %v751_v50  ;;  %v3521_v22 = vor.u32 %v4332_v59, %v3520_v24  ;;  %v3512_v50 = vld [vmem:[#allocation3 + $0xa8] sm:$0xf]  ;;  %v4329_v52 = vld [vmem:[#allocation3 + $0xb4] sm:$0xf0]  ;;  %v3501_v24 = vor.u32 %v4323_v18, %v3498_v17  ;;  %v3472_v59 = vld [vmem:[#allocation3 + $0x60] sm:$0xf] }
 0x11c   :  { %v3473_v26 = vor.u32 %v4320_v20, %v3472_v59  ;;  %v4317_v6 = vld [vmem:[#allocation3 + $0x54] sm:$0xf0]  ;;  %v3440_v7 = vld [vmem:[#allocation3 + $0x20] sm:$0xf]  ;;  %v4312_v62 = vld [vmem:[#allocation3 + $0x2c] sm:$0xf0] }
 0x11d   :  { %1282 = vmatpush.bf16.msrb.mxu0 %v3521_v22  ;;  %v4318_v22 = vld [vmem:[#allocation3 + $0x64] sm:$0xf]  ;;  %v3442_v18 = vld [vmem:[#allocation3 + $0x30] sm:$0xf0]  ;;  %v3448_v17 = vld [vmem:[#allocation3 + $0x28] sm:$0xf] }
 0x11e   :  { %v3477_v34 = vor.u32 %v4318_v22, %v3474_v19  ;;  %v4313_v22 = vld [vmem:[#allocation3 + $0x34] sm:$0xf0]  ;;  %v3450_v19 = vld [vmem:[#allocation3 + $0x38] sm:$0xf0] }
 0x11f   :  { %v4521_v53 = vpop.eup %4520 }
 0x120   :  { %v762_v58 = vmul.f32 %v4521_v53, %v756_v56  ;;  %v3509_v53 = vor.u32 %v4326_v44, %v3506_v48  ;;  %v3513_v56 = vor.u32 %v4329_v52, %v3512_v50  ;;  %v3485_v48 = vor.u32 %v4319_v37, %v3482_v40  ;;  %v3456_v50 = vld [vmem:[#allocation3 + $0x40] sm:$0xf]  ;;  %v4316_v52 = vld [vmem:[#allocation3 + $0x4c] sm:$0xf0]  ;;  %v4306_v40 = vld [vmem:[#allocation3 + $0x4] sm:$0xf] }
 0x121   :  { %1283 = vmatpush.bf16.msrb.mxu0 %v3505_v45  ;;  %v4308_v37 = vld [vmem:[#allocation3 + $0xc] sm:$0xf0] }
 0x122   :  { %763 = vst [vmem:[#allocation13] sm:$0xff] %v762_v58  ;;  %v769_v63 = vpack.c.bf16 %v762_v58, %v762_v58  ;;  %v4327_v58 = vld [vmem:[#allocation3 + $0xac] sm:$0xf]  ;;  %1296 = vmatpush.bf16.msrb.mxu1 %v3509_v53  ;;  %1309 = vmatpush.bf16.msrb.mxu2 %v3513_v56  ;;  %v4314_v53 = vld [vmem:[#allocation3 + $0x44] sm:$0xf] }
 0x124   :  { %970 = vmatmul.bf16.vlgmr.msra.gmra.mxu0 %v769_v63  ;;  %983 = vmatmul.bf16.vlgmr.msra.gmra.mxu1 %v769_v63 }
 0x125   :  { %996 = vmatmul.bf16.vlgmr.msra.gmra.mxu2 %v769_v63  ;;  %1009 = vmatmul.bf16.vlgmr.msra.gmra.mxu3 %v769_v63  ;;  %v3514_v63 = vld [vmem:[#allocation3 + $0xb8] sm:$0xf0] }
 0x126   :  { %v3517_v0 = vor.u32 %v4327_v58, %v3514_v63  ;;  %1284 = vmatpush.bf16.msrb.mxu0 %v3489_v16  ;;  %1297 = vmatpush.bf16.msrb.mxu1 %v3493_v12  ;;  %v3457_v63 = vor.u32 %v4316_v52, %v3456_v50  ;;  %v4315_v16 = vld [vmem:[#allocation3 + $0x4c] sm:$0xf]  ;;  %v3441_v12 = vor.u32 %v4312_v62, %v3440_v7  ;;  %v4309_v50 = vld [vmem:[#allocation3 + $0x14] sm:$0xf0] }
 0x127   :  { %1310 = vmatpush.bf16.msrb.mxu2 %v3497_v14  ;;  %v4310_v14 = vld [vmem:[#allocation3 + $0x24] sm:$0xf] }
 0x128   :  { %1322 = vmatpush.bf16.msrb.mxu3 %v3517_v0  ;;  %v3458_v0 = vld [vmem:[#allocation3 + $0x50] sm:$0xf0]  ;;  %v3445_v20 = vor.u32 %v4310_v14, %v3442_v18 }
 0x129   :  { %v3461_v1 = vor.u32 %v4314_v53, %v3458_v0 }
 0x12a   :  { %1285 = vmatpush.bf16.msrb.mxu0 %v3473_v26  ;;  %1298 = vmatpush.bf16.msrb.mxu1 %v3477_v34  ;;  %v4311_v26 = vld [vmem:[#allocation3 + $0x2c] sm:$0xf] }
 0x12b   :  { %1311 = vmatpush.bf16.msrb.mxu2 %v3481_v36  ;;  %v3453_v34 = vor.u32 %v4311_v26, %v3450_v19  ;;  %v3424_v36 = vld [vmem:[#allocation3] sm:$0xf] }
 0x12c   :  { %1323 = vmatpush.bf16.msrb.mxu3 %v3501_v24 }
 0x12e   :  { %1286 = vmatpush.bf16.msrb.mxu0 %v3457_v63  ;;  %1299 = vmatpush.bf16.msrb.mxu1 %v3461_v1 }
 0x130   :  { %1324 = vmatpush.bf16.msrb.mxu3 %v3485_v48  ;;  %v3432_v48 = vld [vmem:[#allocation3 + $0x8] sm:$0xf] }
 0x132   :  { %1287 = vmatpush.bf16.msrb.mxu0 %v3441_v12  ;;  %1300 = vmatpush.bf16.msrb.mxu1 %v3445_v20 }
 0x1a1   :  { %v971_v29 = vpop.f32.mrf.mxu0  ;;  %v984_v32 = vpop.f32.mrf.mxu1 }
 0x1a2   :  { %v1014_v44 = vadd.f32 %v971_v29, %v4825_v21  ;;  %v1015_v45 = vadd.f32 %v984_v32, %v4828_v23  ;;  %v3465_v21 = vor.u32 %v4317_v6, %v3464_v3  ;;  %v3466_v23 = vld [vmem:[#allocation3 + $0x58] sm:$0xf0]  ;;  %v3449_v32 = vor.u32 %v4313_v22, %v3448_v17 }
 0x1a3   :  { %v3469_v11 = vor.u32 %v4315_v16, %v3466_v23 }
 0x1a4   :  { %v3419_v56 = vmul.f32 -1.442695, %v1014_v44  ;;  %v3420_v58 = vmul.f32 -1.442695, %v1015_v45  ;;  %1312 = vmatpush.bf16.msrb.mxu2 %v3465_v21  ;;  %v3425_v44 = vor.u32 %v4308_v37, %v3424_v36  ;;  %v3426_v45 = vld [vmem:[#allocation3 + $0x10] sm:$0xf0] }
 0x1a5   :  { %1325 = vmatpush.bf16.msrb.mxu3 %v3469_v11  ;;  %v3429_v53 = vor.u32 %v4306_v40, %v3426_v45 }
 0x1a6   :  { %4522 = vpow2.f32 %v3419_v56  ;;  %v4307_v56 = vld [vmem:[#allocation3 + $0xc] sm:$0xf]  ;;  %1288 = vmatpush.bf16.msrb.mxu0 %v3425_v44 }
 0x1a7   :  { %4524 = vpow2.f32 %v3420_v58  ;;  %v3434_v58 = vld [vmem:[#allocation3 + $0x18] sm:$0xf0]  ;;  %1301 = vmatpush.bf16.msrb.mxu1 %v3429_v53 }
 0x1a8   :  { %v997_v24 = vpop.f32.mrf.mxu2  ;;  %v1010_v59 = vpop.f32.mrf.mxu3  ;;  %1313 = vmatpush.bf16.msrb.mxu2 %v3449_v32  ;;  %v3437_v3 = vor.u32 %v4307_v56, %v3434_v58 }
 0x1a9   :  { %v1017_v25 = vadd.f32 %v1010_v59, %v4838_v30  ;;  %v973_v28 = vpop.f32.mrf.mxu0  ;;  %v986_v29 = vpop.f32.mrf.mxu1  ;;  %v3433_v30 = vor.u32 %v4309_v50, %v3432_v48  ;;  %1326 = vmatpush.bf16.msrb.mxu3 %v3453_v34  ;;  %v1016_v11 = vadd.f32 %v997_v24, %v4835_v27 }
 0x1ab   :  { %v3421_v52 = vmul.f32 -1.442695, %v1017_v25 }
 0x1ac   :  { %v4523_v63 = vpop.eup %4522  ;;  %1314 = vmatpush.bf16.msrb.mxu2 %v3433_v30 }
 0x1ad   :  { %v4525_v0 = vpop.eup %4524  ;;  %v1021_v1 = vadd.f32 1.0, %v4523_v63  ;;  %4526 = vpow2.f32 %v3421_v52  ;;  %1327 = vmatpush.bf16.msrb.mxu3 %v3437_v3 }
 0x1ae   :  { %v1040_v6 = vadd.f32 1.0, %v4525_v0 }
 0x1af   :  { %4528 = vrcp.f32 %v1021_v1  ;;  %v1033_v20 = vand.u32 2147483648, %v1021_v1  ;;  %v1031_v19 = vand.u32 2147483647, %v1021_v1  ;;  %vm1027_vm14 = vweird.f32 %v1021_v1 }
 0x1b0   :  { %4530 = vrcp.f32 %v1040_v6  ;;  %v999_v16 = vpop.f32.mrf.mxu2  ;;  %v1012_v21 = vpop.f32.mrf.mxu3  ;;  %v1052_v22 = vand.u32 2147483648, %v1040_v6  ;;  %v1050_v28 = vand.u32 2147483647, %v1040_v6  ;;  %vm1046_vm15 = vweird.f32 %v1040_v6 }
 0x1b1   :  { %v1034_v27 = vor.u32 1.1754944e-38, %v1033_v20  ;;  %vm1032_vm2 = vcmp.eq.f32.partialorder %v1031_v19, 8.507059e+37  ;;  %v4367_v20 = vld [vmem:[#allocation3 + $0xec] sm:$0xf]  ;;  %v3651_v19 = vld [vmem:[#allocation3 + $0xc0] sm:$0xf] }
 0x1b2   :  { %v1053_v36 = vor.u32 1.1754944e-38, %v1052_v22  ;;  %vm1051_vm3 = vcmp.eq.f32.partialorder %v1050_v28, 8.507059e+37  ;;  %v3677_v22 = vld [vmem:[#allocation3 + $0xf8] sm:$0xf0]  ;;  %v4362_v28 = vld [vmem:[#allocation3 + $0xc4] sm:$0xf] }
 0x1b3   :  { %v4527_v23 = vpop.eup %4526 }
 0x1b4   :  { %v1060_v7 = vadd.f32 1.0, %v4527_v23 }
 0x1b5   :  { %v4529_v62 = vpop.eup %4528 }
 0x1b6   :  { %v4531_v12 = vpop.eup %4530  ;;  %v1023_v14 = vmul.f32 %v4529_v62, %v1021_v1  ;;  %4532 = vrcp.f32 %v1060_v7  ;;  %vm1028_vm12 = vweird.f32 %v4529_v62  ;;  %v1072_v30 = vand.u32 2147483648, %v1060_v7 }
 0x1b7   :  { %v1042_v18 = vmul.f32 %v4531_v12, %v1040_v6  ;;  %4534 = vtanh.f32 %v1016_v11  ;;  %vm1047_vm13 = vweird.f32 %v4531_v12  ;;  %vm1029_vm0 = vmor %vm1027_vm14, %vm1028_vm12  ;;  %vm1066_vm5 = vweird.f32 %v1060_v7  ;;  %v4366_v11 = vld [vmem:[#allocation3 + $0xe4] sm:$0xf] }
 0x1b8   :  { %v1024_v17 = vsub.f32 1.0, %v1023_v14  ;;  %vm1048_vm1 = vmor %vm1046_vm15, %vm1047_vm13  ;;  %v1070_v0 = vand.u32 2147483647, %v1060_v7  ;;  %v1073_v3 = vor.u32 1.1754944e-38, %v1072_v30  ;;  %v3669_v14 = vld [vmem:[#allocation3 + $0xf0] sm:$0xf0] }
 0x1b9   :  { %v1043_v59 = vsub.f32 1.0, %v1042_v18  ;;  %v3675_v18 = vld [vmem:[#allocation3 + $0xe8] sm:$0xf] }
 0x1ba   :  { %v1025_v26 = vmul.f32 %v4529_v62, %v1024_v17  ;;  %vm1071_vm7 = vcmp.eq.f32.partialorder %v1070_v0, 8.507059e+37  ;;  %v3672_v17 = vor.u32 %v4366_v11, %v3669_v14  ;;  %v3627_v11 = vld [vmem:[#allocation3 + $0x88] sm:$0xf] }
 0x1bb   :  { %v1044_v25 = vmul.f32 %v4531_v12, %v1043_v59 }
 0x1bc   :  { %v4533_v29 = vpop.eup %4532  ;;  %v1026_v32 = vadd.f32 %v4529_v62, %v1025_v26  ;;  %v3680_v26 = vor.u32 %v4367_v20, %v3677_v22  ;;  %1613 = vmatpush.bf16.msra.mxu1 %v3672_v17  ;;  %v3629_v17 = vld [vmem:[#allocation3 + $0x98] sm:$0xf0]  ;;  %v3603_v20 = vld [vmem:[#allocation3 + $0x60] sm:$0xf]  ;;  %v4352_v22 = vld [vmem:[#allocation3 + $0x6c] sm:$0xf0] }
 0x1bd   :  { %v1045_v24 = vadd.f32 %v4531_v12, %v1044_v25  ;;  %v1062_v34 = vmul.f32 %v4533_v29, %v1060_v7  ;;  %v4535_v40 = vpop.eup %4534  ;;  %vm1067_vm4 = vweird.f32 %v4533_v29  ;;  %v4369_v7 = vld [vmem:[#allocation3 + $0xf4] sm:$0xf0]  ;;  %v4364_v25 = vld [vmem:[#allocation3 + $0xcc] sm:$0xf0] }
 0x1be   :  { %v1030_v37 = vsel %vm1029_vm0, %v4529_v62, %v1026_v32  ;;  %vm1068_vm6 = vmor %vm1066_vm5, %vm1067_vm4  ;;  %v4368_v62 = vld [vmem:[#allocation3 + $0xec] sm:$0xf0]  ;;  %v3676_v59 = vor.u32 %v4369_v7, %v3675_v18  ;;  %1639 = vmatpush.bf16.msra.mxu3 %v3680_v26  ;;  %v3653_v32 = vld [vmem:[#allocation3 + $0xd0] sm:$0xf0] }
 0x1bf   :  { %v1035_v44 = vsel %vm1032_vm2, %v1034_v27, %v1030_v37  ;;  %v1049_v45 = vsel %vm1048_vm1, %v4531_v12, %v1045_v24  ;;  %v1063_v48 = vsub.f32 1.0, %v1062_v34  ;;  %v3659_v27 = vld [vmem:[#allocation3 + $0xc8] sm:$0xf]  ;;  %v4365_v24 = vld [vmem:[#allocation3 + $0xd4] sm:$0xf0]  ;;  %v3656_v34 = vor.u32 %v4362_v28, %v3653_v32 }
 0x1c0   :  { %v1054_v50 = vsel %vm1051_vm3, %v1053_v36, %v1049_v45  ;;  %v1077_v52 = vmul.f32 %v4535_v40, %v1035_v44  ;;  %1626 = vmatpush.bf16.msra.mxu2 %v3676_v59  ;;  %v3660_v36 = vor.u32 %v4365_v24, %v3659_v27  ;;  %v4363_v37 = vld [vmem:[#allocation3 + $0xcc] sm:$0xf]  ;;  %v3661_v40 = vld [vmem:[#allocation3 + $0xd8] sm:$0xf0]  ;;  %v3635_v45 = vld [vmem:[#allocation3 + $0xa0] sm:$0xf] }
 0x1c1   :  { %v1076_v53 = vmul.f32 %v1054_v50, %v4920_v42  ;;  %v1064_v56 = vmul.f32 %v4533_v29, %v1063_v48  ;;  %v3667_v42 = vld [vmem:[#allocation3 + $0xe0] sm:$0xf]  ;;  %v3664_v44 = vor.u32 %v4363_v37, %v3661_v40  ;;  %1614 = vmatpush.bf16.msra.mxu1 %v3656_v34  ;;  %v4360_v48 = vld [vmem:[#allocation3 + $0xac] sm:$0xf0]  ;;  %v4358_v50 = vld [vmem:[#allocation3 + $0xa4] sm:$0xf] }
 0x1c2   :  { %v3668_v12 = vor.u32 %v4368_v62, %v3667_v42  ;;  %v3621_v62 = vld [vmem:[#allocation3 + $0x90] sm:$0xf0]  ;;  %v4355_v7 = vld [vmem:[#allocation3 + $0x8c] sm:$0xf]  ;;  %v4350_v26 = vld [vmem:[#allocation3 + $0x64] sm:$0xf] }
 0x1c3   :  { %v4928_v58 = vadd.f32 %v1077_v52, %v1076_v53  ;;  %v1065_v63 = vadd.f32 %v4533_v29, %v1064_v56  ;;  %1640 = vmatpush.bf16.msra.mxu3 %v3664_v44  ;;  %v3636_v52 = vor.u32 %v4360_v48, %v3635_v45  ;;  %v3637_v53 = vld [vmem:[#allocation3 + $0xb0] sm:$0xf0]  ;;  %v3643_v56 = vld [vmem:[#allocation3 + $0xa8] sm:$0xf]  ;;  %v3632_v59 = vor.u32 %v4355_v7, %v3629_v17  ;;  %v4351_v24 = vld [vmem:[#allocation3 + $0x6c] sm:$0xf] }
 0x1c4   :  { %1600 = vmatpush.bf16.msra.mxu0 %v3668_v12  ;;  %1627 = vmatpush.bf16.msra.mxu2 %v3660_v36  ;;  %v3640_v30 = vor.u32 %v4358_v50, %v3637_v53  ;;  %v4357_v12 = vld [vmem:[#allocation3 + $0x94] sm:$0xf0]  ;;  %v3611_v28 = vld [vmem:[#allocation3 + $0x68] sm:$0xf]  ;;  %v3613_v34 = vld [vmem:[#allocation3 + $0x78] sm:$0xf0] }
 0x1c5   :  { %4536 = vtanh.f32 %v4928_v58  ;;  %v1069_v1 = vsel %vm1068_vm6, %v4533_v29, %v1065_v63  ;;  %v3652_v29 = vor.u32 %v4364_v25, %v3651_v19  ;;  %v4361_v63 = vld [vmem:[#allocation3 + $0xb4] sm:$0xf0]  ;;  %v3628_v18 = vor.u32 %v4357_v12, %v3627_v11  ;;  %v3605_v25 = vld [vmem:[#allocation3 + $0x70] sm:$0xf0]  ;;  %v3587_v48 = vld [vmem:[#allocation3 + $0x40] sm:$0xf] }
 0x1c6   :  { %v1074_v16 = vsel %vm1071_vm7, %v1073_v3, %v1069_v1  ;;  %v3644_v0 = vor.u32 %v4361_v63, %v3643_v56  ;;  %v4359_v1 = vld [vmem:[#allocation3 + $0xac] sm:$0xf]  ;;  %v3645_v3 = vld [vmem:[#allocation3 + $0xb8] sm:$0xf0]  ;;  %1615 = vmatpush.bf16.msra.mxu1 %v3640_v30  ;;  %v3604_v19 = vor.u32 %v4352_v22, %v3603_v20  ;;  %v3608_v32 = vor.u32 %v4350_v26, %v3605_v25  ;;  %v4348_v50 = vld [vmem:[#allocation3 + $0x4c] sm:$0xf0] }
 0x1c7   :  { %v3616_v40 = vor.u32 %v4351_v24, %v3613_v34  ;;  %v3588_v53 = vor.u32 %v4348_v50, %v3587_v48  ;;  %v3589_v56 = vld [vmem:[#allocation3 + $0x50] sm:$0xf0]  ;;  %v3595_v63 = vld [vmem:[#allocation3 + $0x48] sm:$0xf]  ;;  %v4349_v30 = vld [vmem:[#allocation3 + $0x54] sm:$0xf0] }
 0x1c8   :  { %1601 = vmatpush.bf16.msra.mxu0 %v3652_v29  ;;  %1628 = vmatpush.bf16.msra.mxu2 %v3644_v0  ;;  %v4353_v29 = vld [vmem:[#allocation3 + $0x74] sm:$0xf0]  ;;  %v3573_v11 = vld [vmem:[#allocation3 + $0x30] sm:$0xf0]  ;;  %v3579_v12 = vld [vmem:[#allocation3 + $0x28] sm:$0xf] }
 0x1c9   :  { %v3612_v27 = vor.u32 %v4353_v29, %v3611_v28  ;;  %v4343_v7 = vld [vmem:[#allocation3 + $0x2c] sm:$0xf]  ;;  %v3581_v17 = vld [vmem:[#allocation3 + $0x38] sm:$0xf0]  ;;  %v4340_v25 = vld [vmem:[#allocation3 + $0xc] sm:$0xf0] }
 0x1ca   :  { %v3584_v26 = vor.u32 %v4343_v7, %v3581_v17  ;;  %v4338_v28 = vld [vmem:[#allocation3 + $0x4] sm:$0xf]  ;;  %v3557_v34 = vld [vmem:[#allocation3 + $0x10] sm:$0xf0]  ;;  %v3565_v48 = vld [vmem:[#allocation3 + $0x18] sm:$0xf0] }
 0x1cb   :  { %v4537_v6 = vpop.eup %4536 }
 0x1cc   :  { %v1080_v21 = vmul.f32 %v4537_v6, %v1074_v16  ;;  %1602 = vmatpush.bf16.msra.mxu0 %v3636_v52  ;;  %v3648_v6 = vor.u32 %v4359_v1, %v3645_v3  ;;  %v3619_v16 = vld [vmem:[#allocation3 + $0x80] sm:$0xf]  ;;  %1629 = vmatpush.bf16.msra.mxu2 %v3628_v18  ;;  %v4346_v52 = vld [vmem:[#allocation3 + $0x44] sm:$0xf]  ;;  %v4345_v18 = vld [vmem:[#allocation3 + $0x34] sm:$0xf0] }
 0x1cd   :  { %v3592_v3 = vor.u32 %v4346_v52, %v3589_v56  ;;  %v3580_v22 = vor.u32 %v4345_v18, %v3579_v12 }
 0x1ce   :  { %1082 = vst [vmem:[#allocation13 + $0x8] sm:$0xff] %v1080_v21  ;;  %v1088_v23 = vpack.c.bf16 %v1080_v21, %v1080_v21  ;;  %v4356_v21 = vld [vmem:[#allocation3 + $0x8c] sm:$0xf0]  ;;  %1641 = vmatpush.bf16.msra.mxu3 %v3648_v6  ;;  %v3596_v6 = vor.u32 %v4349_v30, %v3595_v63 }
 0x1cf   :  { %v3620_v42 = vor.u32 %v4356_v21, %v3619_v16  ;;  %v4347_v16 = vld [vmem:[#allocation3 + $0x4c] sm:$0xf]  ;;  %v3597_v21 = vld [vmem:[#allocation3 + $0x58] sm:$0xf0] }
 0x1d0   :  { %1289 = vmatmul.bf16.vlgmr.msrb.gmra.mxu0 %v1088_v23  ;;  %1302 = vmatmul.bf16.vlgmr.msrb.gmra.mxu1 %v1088_v23 }
 0x1d1   :  { %1315 = vmatmul.bf16.vlgmr.msrb.gmra.mxu2 %v1088_v23  ;;  %1328 = vmatmul.bf16.vlgmr.msrb.gmra.mxu3 %v1088_v23  ;;  %v4354_v23 = vld [vmem:[#allocation3 + $0x84] sm:$0xf] }
 0x1d2   :  { %v3624_v14 = vor.u32 %v4354_v23, %v3621_v62  ;;  %1603 = vmatpush.bf16.msra.mxu0 %v3620_v42  ;;  %1642 = vmatpush.bf16.msra.mxu3 %v3632_v59  ;;  %v4344_v23 = vld [vmem:[#allocation3 + $0x2c] sm:$0xf0]  ;;  %v4342_v62 = vld [vmem:[#allocation3 + $0x24] sm:$0xf] }
 0x1d3   :  { %1630 = vmatpush.bf16.msra.mxu2 %v3612_v27 }
 0x1d4   :  { %1616 = vmatpush.bf16.msra.mxu1 %v3624_v14  ;;  %v3576_v14 = vor.u32 %v4342_v62, %v3573_v11 }
 0x1d6   :  { %1604 = vmatpush.bf16.msra.mxu0 %v3604_v19  ;;  %1643 = vmatpush.bf16.msra.mxu3 %v3616_v40  ;;  %v3555_v19 = vld [vmem:[#allocation3] sm:$0xf]  ;;  %v3560_v40 = vor.u32 %v4338_v28, %v3557_v34 }
 0x1d7   :  { %1631 = vmatpush.bf16.msra.mxu2 %v3596_v6  ;;  %v3556_v24 = vor.u32 %v4340_v25, %v3555_v19 }
 0x1d8   :  { %1617 = vmatpush.bf16.msra.mxu1 %v3608_v32 }
 0x1da   :  { %1605 = vmatpush.bf16.msra.mxu0 %v3588_v53 }
 0x1db   :  { %1632 = vmatpush.bf16.msra.mxu2 %v3580_v22 }
 0x1dc   :  { %1618 = vmatpush.bf16.msra.mxu1 %v3592_v3 }
 0x1e0   :  { %1619 = vmatpush.bf16.msra.mxu1 %v3576_v14 }
 0x1e4   :  { %1620 = vmatpush.bf16.msra.mxu1 %v3560_v40 }
 0x24d   :  { %v1290_v36 = vpop.f32.mrf.mxu0  ;;  %v1303_v37 = vpop.f32.mrf.mxu1 }
 0x24e   :  { %v1333_v44 = vadd.f32 %v1290_v36, %v4841_v31  ;;  %v1334_v45 = vadd.f32 %v1303_v37, %v4844_v33  ;;  %v3571_v31 = vld [vmem:[#allocation3 + $0x20] sm:$0xf]  ;;  %v3600_v33 = vor.u32 %v4347_v16, %v3597_v21  ;;  %v3563_v36 = vld [vmem:[#allocation3 + $0x8] sm:$0xf]  ;;  %v4341_v37 = vld [vmem:[#allocation3 + $0x14] sm:$0xf0] }
 0x24f   :  { %v3572_v42 = vor.u32 %v4344_v23, %v3571_v31 }
 0x250   :  { %v3550_v0 = vmul.f32 -1.442695, %v1333_v44  ;;  %v3551_v1 = vmul.f32 -1.442695, %v1334_v45  ;;  %1644 = vmatpush.bf16.msra.mxu3 %v3600_v33  ;;  %v3564_v44 = vor.u32 %v4341_v37, %v3563_v36  ;;  %v4339_v45 = vld [vmem:[#allocation3 + $0xc] sm:$0xf] }
 0x251   :  { %1606 = vmatpush.bf16.msra.mxu0 %v3572_v42  ;;  %v3568_v53 = vor.u32 %v4339_v45, %v3565_v48 }
 0x252   :  { %4538 = vpow2.f32 %v3550_v0  ;;  %1633 = vmatpush.bf16.msra.mxu2 %v3564_v44 }
 0x253   :  { %4540 = vpow2.f32 %v3551_v1 }
 0x254   :  { %v1316_v59 = vpop.f32.mrf.mxu2  ;;  %v1329_v20 = vpop.f32.mrf.mxu3  ;;  %1645 = vmatpush.bf16.msra.mxu3 %v3584_v26 }
 0x255   :  { %v1336_v29 = vadd.f32 %v1329_v20, %v4850_v38  ;;  %v1292_v32 = vpop.f32.mrf.mxu0  ;;  %v1305_v27 = vpop.f32.mrf.mxu1  ;;  %1607 = vmatpush.bf16.msra.mxu0 %v3556_v24  ;;  %v1335_v16 = vadd.f32 %v1316_v59, %v4847_v35 }
 0x257   :  { %v3552_v50 = vmul.f32 -1.442695, %v1336_v29 }
 0x258   :  { %v4539_v52 = vpop.eup %4538  ;;  %1646 = vmatpush.bf16.msra.mxu3 %v3568_v53 }
 0x259   :  { %v4541_v56 = vpop.eup %4540  ;;  %v1340_v63 = vadd.f32 1.0, %v4539_v52  ;;  %4542 = vpow2.f32 %v3552_v50 }
 0x25a   :  { %v1359_v38 = vadd.f32 1.0, %v4541_v56 }
 0x25b   :  { %4544 = vrcp.f32 %v1340_v63  ;;  %v1352_v62 = vand.u32 2147483648, %v1340_v63  ;;  %v1350_v14 = vand.u32 2147483647, %v1340_v63  ;;  %vm1346_vm10 = vweird.f32 %v1340_v63 }
 0x25c   :  { %4546 = vrcp.f32 %v1359_v38  ;;  %v1318_v30 = vpop.f32.mrf.mxu2  ;;  %v1331_v0 = vpop.f32.mrf.mxu3  ;;  %v1371_v11 = vand.u32 2147483648, %v1359_v38  ;;  %v1369_v7 = vand.u32 2147483647, %v1359_v38  ;;  %vm1365_vm11 = vweird.f32 %v1359_v38 }
 0x25d   :  { %v1353_v35 = vor.u32 1.1754944e-38, %v1352_v62  ;;  %vm1351_vm14 = vcmp.eq.f32.partialorder %v1350_v14, 8.507059e+37  ;;  %v4398_v30 = vld [vmem:[#allocation3 + $0xe4] sm:$0xf]  ;;  %v4396_v62 = vld [vmem:[#allocation3 + $0xcc] sm:$0xf0] }
 0x25e   :  { %v1372_v26 = vor.u32 1.1754944e-38, %v1371_v11  ;;  %vm1370_vm15 = vcmp.eq.f32.partialorder %v1369_v7, 8.507059e+37  ;;  %v4394_v11 = vld [vmem:[#allocation3 + $0xc4] sm:$0xf]  ;;  %v3784_v14 = vld [vmem:[#allocation3 + $0xd0] sm:$0xf0] }
 0x25f   :  { %v4543_v1 = vpop.eup %4542  ;;  %v4397_v7 = vld [vmem:[#allocation3 + $0xd4] sm:$0xf0] }
 0x260   :  { %v1379_v3 = vadd.f32 1.0, %v4543_v1  ;;  %v3800_v1 = vld [vmem:[#allocation3 + $0xf0] sm:$0xf0] }
 0x261   :  { %v4545_v6 = vpop.eup %4544 }
 0x262   :  { %v4547_v21 = vpop.eup %4546  ;;  %v1342_v31 = vmul.f32 %v4545_v6, %v1340_v63  ;;  %4548 = vrcp.f32 %v1379_v3  ;;  %vm1347_vm8 = vweird.f32 %v4545_v6  ;;  %v1391_v44 = vand.u32 2147483648, %v1379_v3 }
 0x263   :  { %v1361_v23 = vmul.f32 %v4547_v21, %v1359_v38  ;;  %4550 = vtanh.f32 %v1335_v16  ;;  %vm1366_vm9 = vweird.f32 %v4547_v21  ;;  %vm1348_vm12 = vmor %vm1346_vm10, %vm1347_vm8  ;;  %vm1385_vm1 = vweird.f32 %v1379_v3  ;;  %v4400_v38 = vld [vmem:[#allocation3 + $0xec] sm:$0xf0] }
 0x264   :  { %v1343_v33 = vsub.f32 1.0, %v1342_v31  ;;  %vm1367_vm13 = vmor %vm1365_vm11, %vm1366_vm9  ;;  %v1389_v45 = vand.u32 2147483647, %v1379_v3  ;;  %v1392_v50 = vor.u32 1.1754944e-38, %v1391_v44  ;;  %v3803_v16 = vor.u32 %v4398_v30, %v3800_v1  ;;  %v4399_v31 = vld [vmem:[#allocation3 + $0xec] sm:$0xf] }
 0x265   :  { %v1362_v42 = vsub.f32 1.0, %v1361_v23  ;;  %v3808_v23 = vld [vmem:[#allocation3 + $0xf8] sm:$0xf0]  ;;  %v4387_v30 = vld [vmem:[#allocation3 + $0x8c] sm:$0xf] }
 0x266   :  { %v1344_v12 = vmul.f32 %v4545_v6, %v1343_v33  ;;  %vm1390_vm3 = vcmp.eq.f32.partialorder %v1389_v45, 8.507059e+37  ;;  %v3811_v33 = vor.u32 %v4399_v31, %v3808_v23  ;;  %1932 = vmatpush.bf16.msrb.mxu1 %v3803_v16  ;;  %v3750_v45 = vld [vmem:[#allocation3 + $0x80] sm:$0xf]  ;;  %v4382_v16 = vld [vmem:[#allocation3 + $0x64] sm:$0xf] }
 0x267   :  { %v1363_v18 = vmul.f32 %v4547_v21, %v1362_v42  ;;  %v3782_v42 = vld [vmem:[#allocation3 + $0xc0] sm:$0xf]  ;;  %v3736_v31 = vld [vmem:[#allocation3 + $0x70] sm:$0xf0]  ;;  %v3742_v23 = vld [vmem:[#allocation3 + $0x68] sm:$0xf] }
 0x268   :  { %v4549_v17 = vpop.eup %4548  ;;  %v1345_v20 = vadd.f32 %v4545_v6, %v1344_v12  ;;  %1958 = vmatpush.bf16.msrb.mxu3 %v3811_v33  ;;  %v3783_v12 = vor.u32 %v4396_v62, %v3782_v42  ;;  %v4385_v33 = vld [vmem:[#allocation3 + $0x74] sm:$0xf0]  ;;  %v3739_v42 = vor.u32 %v4382_v16, %v3736_v31 }
 0x269   :  { %v1364_v59 = vadd.f32 %v4547_v21, %v1363_v18  ;;  %v1381_v22 = vmul.f32 %v4549_v17, %v1379_v3  ;;  %v4551_v25 = vpop.eup %4550  ;;  %vm1386_vm0 = vweird.f32 %v4549_v17  ;;  %v4401_v3 = vld [vmem:[#allocation3 + $0xf4] sm:$0xf0]  ;;  %v3790_v18 = vld [vmem:[#allocation3 + $0xc8] sm:$0xf]  ;;  %v3743_v62 = vor.u32 %v4385_v33, %v3742_v23  ;;  %v3688_v33 = vld [vmem:[#allocation3 + $0x10] sm:$0xf0] }
 0x26a   :  { %v1349_v19 = vsel %vm1348_vm12, %v4545_v6, %v1345_v20  ;;  %vm1387_vm2 = vmor %vm1385_vm1, %vm1386_vm0  ;;  %v3806_v6 = vld [vmem:[#allocation3 + $0xe8] sm:$0xf]  ;;  %v3791_v20 = vor.u32 %v4397_v7, %v3790_v18 }
 0x26b   :  { %v1354_v28 = vsel %vm1351_vm14, %v1353_v35, %v1349_v19  ;;  %v1368_v29 = vsel %vm1367_vm13, %v4547_v21, %v1364_v59  ;;  %v1382_v32 = vsub.f32 1.0, %v1381_v22  ;;  %v3807_v21 = vor.u32 %v4401_v3, %v3806_v6  ;;  %v4395_v35 = vld [vmem:[#allocation3 + $0xcc] sm:$0xf]  ;;  %v3792_v59 = vld [vmem:[#allocation3 + $0xd8] sm:$0xf0] }
 0x26c   :  { %v1373_v27 = vsel %vm1370_vm15, %v1372_v26, %v1368_v29  ;;  %v1396_v24 = vmul.f32 %v4551_v25, %v1354_v28  ;;  %v3795_v22 = vor.u32 %v4395_v35, %v3792_v59  ;;  %v3766_v26 = vld [vmem:[#allocation3 + $0xa0] sm:$0xf]  ;;  %v4392_v19 = vld [vmem:[#allocation3 + $0xac] sm:$0xf0]  ;;  %v4390_v25 = vld [vmem:[#allocation3 + $0xa4] sm:$0xf] }
 0x26d   :  { %v1395_v34 = vmul.f32 %v1373_v27, %v4928_v58  ;;  %v1383_v36 = vmul.f32 %v4549_v17, %v1382_v32  ;;  %v3798_v58 = vld [vmem:[#allocation3 + $0xe0] sm:$0xf]  ;;  %1945 = vmatpush.bf16.msrb.mxu2 %v3807_v21  ;;  %v3767_v28 = vor.u32 %v4392_v19, %v3766_v26  ;;  %v3768_v29 = vld [vmem:[#allocation3 + $0xb0] sm:$0xf0]  ;;  %v3774_v32 = vld [vmem:[#allocation3 + $0xa8] sm:$0xf] }
 0x26e   :  { %v3799_v0 = vor.u32 %v4400_v38, %v3798_v58  ;;  %1959 = vmatpush.bf16.msrb.mxu3 %v3795_v22  ;;  %v4393_v27 = vld [vmem:[#allocation3 + $0xb4] sm:$0xf0]  ;;  %v3734_v6 = vld [vmem:[#allocation3 + $0x60] sm:$0xf]  ;;  %v4384_v3 = vld [vmem:[#allocation3 + $0x6c] sm:$0xf0] }
 0x26f   :  { %v4936_v37 = vadd.f32 %v1396_v24, %v1395_v34  ;;  %v1384_v40 = vadd.f32 %v4549_v17, %v1383_v36  ;;  %v3771_v24 = vor.u32 %v4390_v25, %v3768_v29  ;;  %v3775_v34 = vor.u32 %v4393_v27, %v3774_v32  ;;  %v4391_v36 = vld [vmem:[#allocation3 + $0xac] sm:$0xf]  ;;  %v3718_v35 = vld [vmem:[#allocation3 + $0x40] sm:$0xf]  ;;  %v4380_v59 = vld [vmem:[#allocation3 + $0x4c] sm:$0xf0] }
 0x270   :  { %1919 = vmatpush.bf16.msrb.mxu0 %v3799_v0  ;;  %v3760_v0 = vld [vmem:[#allocation3 + $0x98] sm:$0xf0]  ;;  %v3735_v21 = vor.u32 %v4384_v3, %v3734_v6  ;;  %v4378_v22 = vld [vmem:[#allocation3 + $0x44] sm:$0xf]  ;;  %v3719_v26 = vor.u32 %v4380_v59, %v3718_v35  ;;  %v3720_v19 = vld [vmem:[#allocation3 + $0x50] sm:$0xf0] }
 0x271   :  { %4552 = vtanh.f32 %v4936_v37  ;;  %v1388_v48 = vsel %vm1387_vm2, %v4549_v17, %v1384_v40  ;;  %v3787_v17 = vor.u32 %v4394_v11, %v3784_v14  ;;  %1946 = vmatpush.bf16.msrb.mxu2 %v3791_v20  ;;  %v3776_v40 = vld [vmem:[#allocation3 + $0xb8] sm:$0xf0]  ;;  %v3763_v1 = vor.u32 %v4387_v30, %v3760_v0  ;;  %v4383_v11 = vld [vmem:[#allocation3 + $0x6c] sm:$0xf]  ;;  %v3726_v25 = vld [vmem:[#allocation3 + $0x48] sm:$0xf] }
 0x272   :  { %v1393_v53 = vsel %vm1390_vm3, %v1392_v50, %v1388_v48  ;;  %v3779_v44 = vor.u32 %v4391_v36, %v3776_v40  ;;  %v4388_v48 = vld [vmem:[#allocation3 + $0x8c] sm:$0xf0]  ;;  %v4386_v50 = vld [vmem:[#allocation3 + $0x84] sm:$0xf]  ;;  %v3723_v27 = vor.u32 %v4378_v22, %v3720_v19  ;;  %v3728_v36 = vld [vmem:[#allocation3 + $0x58] sm:$0xf0] }
 0x273   :  { %1933 = vmatpush.bf16.msrb.mxu1 %v3787_v17  ;;  %v4376_v40 = vld [vmem:[#allocation3 + $0x2c] sm:$0xf0]  ;;  %v4370_v3 = vld [vmem:[#allocation3 + $0x4] sm:$0xf] }
 0x274   :  { %1920 = vmatpush.bf16.msrb.mxu0 %v3783_v12  ;;  %1960 = vmatpush.bf16.msrb.mxu3 %v3779_v44  ;;  %v3744_v12 = vld [vmem:[#allocation3 + $0x78] sm:$0xf0]  ;;  %v4372_v6 = vld [vmem:[#allocation3 + $0xc] sm:$0xf0] }
 0x275   :  { %1947 = vmatpush.bf16.msrb.mxu2 %v3775_v34  ;;  %v3747_v7 = vor.u32 %v4383_v11, %v3744_v12  ;;  %v4379_v34 = vld [vmem:[#allocation3 + $0x4c] sm:$0xf]  ;;  %v3691_v11 = vor.u32 %v4370_v3, %v3688_v33 }
 0x277   :  { %v4553_v52 = vpop.eup %4552  ;;  %1934 = vmatpush.bf16.msrb.mxu1 %v3771_v24 }
 0x278   :  { %v1399_v56 = vmul.f32 %v4553_v52, %v1393_v53  ;;  %1921 = vmatpush.bf16.msrb.mxu0 %v3767_v28  ;;  %v3751_v52 = vor.u32 %v4388_v48, %v3750_v45  ;;  %v3752_v53 = vld [vmem:[#allocation3 + $0x90] sm:$0xf0]  ;;  %1961 = vmatpush.bf16.msrb.mxu3 %v3763_v1  ;;  %v4381_v28 = vld [vmem:[#allocation3 + $0x54] sm:$0xf0]  ;;  %v4374_v45 = vld [vmem:[#allocation3 + $0x24] sm:$0xf] }
 0x279   :  { %v3755_v58 = vor.u32 %v4386_v50, %v3752_v53  ;;  %v3727_v24 = vor.u32 %v4381_v28, %v3726_v25  ;;  %v3704_v48 = vld [vmem:[#allocation3 + $0x30] sm:$0xf0]  ;;  %v3710_v50 = vld [vmem:[#allocation3 + $0x28] sm:$0xf]  ;;  %v4377_v53 = vld [vmem:[#allocation3 + $0x34] sm:$0xf0] }
 0x27a   :  { %1401 = vst [vmem:[#allocation13 + $0x10] sm:$0xff] %v1399_v56  ;;  %v1407_v63 = vpack.c.bf16 %v1399_v56, %v1399_v56  ;;  %v3758_v56 = vld [vmem:[#allocation3 + $0x88] sm:$0xf]  ;;  %v3711_v30 = vor.u32 %v4377_v53, %v3710_v50  ;;  %v3686_v1 = vld [vmem:[#allocation3] sm:$0xf] }
 0x27b   :  { %1935 = vmatpush.bf16.msrb.mxu1 %v3755_v58  ;;  %v3687_v23 = vor.u32 %v4372_v6, %v3686_v1 }
 0x27c   :  { %1608 = vmatmul.bf16.vlgmr.msra.gmra.mxu0 %v1407_v63  ;;  %1621 = vmatmul.bf16.vlgmr.msra.gmra.mxu1 %v1407_v63 }
 0x27d   :  { %1634 = vmatmul.bf16.vlgmr.msra.gmra.mxu2 %v1407_v63  ;;  %1647 = vmatmul.bf16.vlgmr.msra.gmra.mxu3 %v1407_v63  ;;  %v4389_v63 = vld [vmem:[#allocation3 + $0x94] sm:$0xf0] }
 0x27e   :  { %v3759_v38 = vor.u32 %v4389_v63, %v3758_v56  ;;  %1922 = vmatpush.bf16.msrb.mxu0 %v3751_v52  ;;  %1962 = vmatpush.bf16.msrb.mxu3 %v3747_v7  ;;  %v3707_v52 = vor.u32 %v4374_v45, %v3704_v48  ;;  %v4375_v56 = vld [vmem:[#allocation3 + $0x2c] sm:$0xf]  ;;  %v3712_v63 = vld [vmem:[#allocation3 + $0x38] sm:$0xf0] }
 0x27f   :  { %1936 = vmatpush.bf16.msrb.mxu1 %v3739_v42  ;;  %v3715_v0 = vor.u32 %v4375_v56, %v3712_v63  ;;  %v3694_v42 = vld [vmem:[#allocation3 + $0x8] sm:$0xf] }
 0x280   :  { %1948 = vmatpush.bf16.msrb.mxu2 %v3759_v38 }
 0x282   :  { %1923 = vmatpush.bf16.msrb.mxu0 %v3735_v21 }
 0x283   :  { %1937 = vmatpush.bf16.msrb.mxu1 %v3723_v27 }
 0x284   :  { %1949 = vmatpush.bf16.msrb.mxu2 %v3743_v62  ;;  %v4373_v62 = vld [vmem:[#allocation3 + $0x14] sm:$0xf0] }
 0x285   :  { %v3695_v12 = vor.u32 %v4373_v62, %v3694_v42 }
 0x286   :  { %1924 = vmatpush.bf16.msrb.mxu0 %v3719_v26 }
 0x287   :  { %1938 = vmatpush.bf16.msrb.mxu1 %v3707_v52 }
 0x288   :  { %1950 = vmatpush.bf16.msrb.mxu2 %v3727_v24 }
 0x28b   :  { %1939 = vmatpush.bf16.msrb.mxu1 %v3691_v11 }
 0x28c   :  { %1951 = vmatpush.bf16.msrb.mxu2 %v3711_v30 }
 0x290   :  { %1952 = vmatpush.bf16.msrb.mxu2 %v3695_v12 }
 0x2f9   :  { %v1609_v14 = vpop.f32.mrf.mxu0  ;;  %v1622_v18 = vpop.f32.mrf.mxu1 }
 0x2fa   :  { %v1652_v17 = vadd.f32 %v1609_v14, %v4853_v39  ;;  %v1653_v20 = vadd.f32 %v1622_v18, %v4856_v41  ;;  %v3702_v39 = vld [vmem:[#allocation3 + $0x20] sm:$0xf]  ;;  %v3731_v41 = vor.u32 %v4379_v34, %v3728_v36  ;;  %v4371_v14 = vld [vmem:[#allocation3 + $0xc] sm:$0xf]  ;;  %v3696_v18 = vld [vmem:[#allocation3 + $0x18] sm:$0xf0] }
 0x2fb   :  { %v3703_v44 = vor.u32 %v4376_v40, %v3702_v39 }
 0x2fc   :  { %v3681_v29 = vmul.f32 -1.442695, %v1652_v17  ;;  %v3682_v32 = vmul.f32 -1.442695, %v1653_v20  ;;  %1963 = vmatpush.bf16.msrb.mxu3 %v3731_v41  ;;  %v3699_v20 = vor.u32 %v4371_v14, %v3696_v18 }
 0x2fd   :  { %1925 = vmatpush.bf16.msrb.mxu0 %v3703_v44 }
 0x2fe   :  { %4554 = vpow2.f32 %v3681_v29 }
 0x2ff   :  { %4556 = vpow2.f32 %v3682_v32 }
 0x300   :  { %v1635_v58 = vpop.f32.mrf.mxu2  ;;  %v1648_v38 = vpop.f32.mrf.mxu3  ;;  %1964 = vmatpush.bf16.msrb.mxu3 %v3715_v0 }
 0x301   :  { %v1655_v16 = vadd.f32 %v1648_v38, %v4862_v46  ;;  %v1611_v21 = vpop.f32.mrf.mxu0  ;;  %v1624_v31 = vpop.f32.mrf.mxu1  ;;  %1926 = vmatpush.bf16.msrb.mxu0 %v3687_v23  ;;  %v1654_v29 = vadd.f32 %v1635_v58, %v4859_v43 }
 0x303   :  { %v3683_v7 = vmul.f32 -1.442695, %v1655_v16 }
 0x304   :  { %v4555_v17 = vpop.eup %4554  ;;  %1965 = vmatpush.bf16.msrb.mxu3 %v3699_v20  ;;  %v4430_v20 = vld [vmem:[#allocation3 + $0xe4] sm:$0xf] }
 0x305   :  { %v4557_v35 = vpop.eup %4556  ;;  %v1659_v59 = vadd.f32 1.0, %v4555_v17  ;;  %4558 = vpow2.f32 %v3683_v7  ;;  %v4432_v17 = vld [vmem:[#allocation3 + $0xec] sm:$0xf0] }
 0x306   :  { %v1678_v46 = vadd.f32 1.0, %v4557_v35 }
 0x307   :  { %4560 = vrcp.f32 %v1659_v59  ;;  %v1671_v39 = vand.u32 2147483648, %v1659_v59  ;;  %v1669_v44 = vand.u32 2147483647, %v1659_v59  ;;  %vm1665_vm6 = vweird.f32 %v1659_v59 }
 0x308   :  { %4562 = vrcp.f32 %v1678_v46  ;;  %v1637_v22 = vpop.f32.mrf.mxu2  ;;  %v1650_v26 = vpop.f32.mrf.mxu3  ;;  %v1690_v40 = vand.u32 2147483648, %v1678_v46  ;;  %v1688_v48 = vand.u32 2147483647, %v1678_v46  ;;  %vm1684_vm7 = vweird.f32 %v1678_v46 }
 0x309   :  { %v1672_v43 = vor.u32 1.1754944e-38, %v1671_v39  ;;  %vm1670_vm10 = vcmp.eq.f32.partialorder %v1669_v44, 8.507059e+37  ;;  %v4433_v22 = vld [vmem:[#allocation3 + $0xf4] sm:$0xf0]  ;;  %v3921_v39 = vld [vmem:[#allocation3 + $0xc8] sm:$0xf] }
 0x30a   :  { %v1691_v63 = vor.u32 1.1754944e-38, %v1690_v40  ;;  %vm1689_vm11 = vcmp.eq.f32.partialorder %v1688_v48, 8.507059e+37  ;;  %v4429_v40 = vld [vmem:[#allocation3 + $0xd4] sm:$0xf0]  ;;  %v3923_v48 = vld [vmem:[#allocation3 + $0xd8] sm:$0xf0] }
 0x30b   :  { %v4559_v19 = vpop.eup %4558  ;;  %v3922_v44 = vor.u32 %v4429_v40, %v3921_v39  ;;  %v3849_v39 = vld [vmem:[#allocation3 + $0x40] sm:$0xf]  ;;  %v4412_v40 = vld [vmem:[#allocation3 + $0x4c] sm:$0xf0] }
 0x30c   :  { %v1698_v25 = vadd.f32 1.0, %v4559_v19 }
 0x30d   :  { %v4561_v28 = vpop.eup %4560 }
 0x30e   :  { %v4563_v32 = vpop.eup %4562  ;;  %v1661_v27 = vmul.f32 %v4561_v28, %v1659_v59  ;;  %4564 = vrcp.f32 %v1698_v25  ;;  %vm1666_vm4 = vweird.f32 %v4561_v28  ;;  %v1710_v33 = vand.u32 2147483648, %v1698_v25  ;;  %v3931_v59 = vld [vmem:[#allocation3 + $0xf0] sm:$0xf0] }
 0x30f   :  { %v1680_v24 = vmul.f32 %v4563_v32, %v1678_v46  ;;  %4566 = vtanh.f32 %v1654_v29  ;;  %vm1685_vm5 = vweird.f32 %v4563_v32  ;;  %vm1667_vm8 = vmor %vm1665_vm6, %vm1666_vm4  ;;  %vm1704_vm13 = vweird.f32 %v1698_v25  ;;  %v3937_v46 = vld [vmem:[#allocation3 + $0xe8] sm:$0xf] }
 0x310   :  { %v1662_v34 = vsub.f32 1.0, %v1661_v27  ;;  %vm1686_vm9 = vmor %vm1684_vm7, %vm1685_vm5  ;;  %v1708_v42 = vand.u32 2147483647, %v1698_v25  ;;  %v1711_v11 = vor.u32 1.1754944e-38, %v1710_v33  ;;  %v3934_v26 = vor.u32 %v4430_v20, %v3931_v59  ;;  %v4428_v27 = vld [vmem:[#allocation3 + $0xcc] sm:$0xf0] }
 0x311   :  { %v1681_v36 = vsub.f32 1.0, %v1680_v24  ;;  %v3938_v19 = vor.u32 %v4433_v22, %v3937_v46  ;;  %v4426_v24 = vld [vmem:[#allocation3 + $0xc4] sm:$0xf]  ;;  %v4416_v20 = vld [vmem:[#allocation3 + $0x6c] sm:$0xf0] }
 0x312   :  { %v1663_v41 = vmul.f32 %v4561_v28, %v1662_v34  ;;  %vm1709_vm15 = vcmp.eq.f32.partialorder %v1708_v42, 8.507059e+37  ;;  %2251 = vmatpush.bf16.msra.mxu1 %v3934_v26  ;;  %v3883_v42 = vld [vmem:[#allocation3 + $0x90] sm:$0xf0]  ;;  %v3873_v22 = vld [vmem:[#allocation3 + $0x68] sm:$0xf] }
 0x313   :  { %v1682_v45 = vmul.f32 %v4563_v32, %v1681_v36  ;;  %2264 = vmatpush.bf16.msra.mxu2 %v3938_v19  ;;  %v3915_v36 = vld [vmem:[#allocation3 + $0xd0] sm:$0xf0]  ;;  %v4417_v26 = vld [vmem:[#allocation3 + $0x74] sm:$0xf0] }
 0x314   :  { %v4565_v50 = vpop.eup %4564  ;;  %v1664_v52 = vadd.f32 %v4561_v28, %v1663_v41  ;;  %v3918_v41 = vor.u32 %v4426_v24, %v3915_v36  ;;  %v3867_v46 = vld [vmem:[#allocation3 + $0x70] sm:$0xf0] }
 0x315   :  { %v1683_v53 = vadd.f32 %v4563_v32, %v1682_v45  ;;  %v1700_v56 = vmul.f32 %v4565_v50, %v1698_v25  ;;  %v4567_v38 = vpop.eup %4566  ;;  %vm1705_vm12 = vweird.f32 %v4565_v50  ;;  %v4431_v25 = vld [vmem:[#allocation3 + $0xec] sm:$0xf] }
 0x316   :  { %v1668_v58 = vsel %vm1667_vm8, %v4561_v28, %v1664_v52  ;;  %vm1706_vm14 = vmor %vm1704_vm13, %vm1705_vm12  ;;  %v3939_v28 = vld [vmem:[#allocation3 + $0xf8] sm:$0xf0]  ;;  %v4427_v45 = vld [vmem:[#allocation3 + $0xcc] sm:$0xf]  ;;  %2252 = vmatpush.bf16.msra.mxu1 %v3918_v41 }
 0x317   :  { %v1673_v30 = vsel %vm1670_vm10, %v1672_v43, %v1668_v58  ;;  %v1687_v0 = vsel %vm1686_vm9, %v4563_v32, %v1683_v53  ;;  %v1701_v1 = vsub.f32 1.0, %v1700_v56  ;;  %v3942_v29 = vor.u32 %v4431_v25, %v3939_v28  ;;  %v3913_v32 = vld [vmem:[#allocation3 + $0xc0] sm:$0xf]  ;;  %2265 = vmatpush.bf16.msra.mxu2 %v3922_v44  ;;  %v4424_v43 = vld [vmem:[#allocation3 + $0xac] sm:$0xf0] }
 0x318   :  { %v1692_v6 = vsel %vm1689_vm11, %v1691_v63, %v1687_v0  ;;  %v1715_v3 = vmul.f32 %v4567_v38, %v1673_v30  ;;  %v3914_v34 = vor.u32 %v4428_v27, %v3913_v32  ;;  %v3897_v52 = vld [vmem:[#allocation3 + $0xa0] sm:$0xf]  ;;  %v4422_v53 = vld [vmem:[#allocation3 + $0xa4] sm:$0xf]  ;;  %v3899_v63 = vld [vmem:[#allocation3 + $0xb0] sm:$0xf0]  ;;  %v3874_v25 = vor.u32 %v4417_v26, %v3873_v22 }
 0x319   :  { %v1714_v16 = vmul.f32 %v1692_v6, %v4936_v37  ;;  %v1702_v21 = vmul.f32 %v4565_v50, %v1701_v1  ;;  %v3929_v37 = vld [vmem:[#allocation3 + $0xe0] sm:$0xf]  ;;  %2277 = vmatpush.bf16.msra.mxu3 %v3942_v29  ;;  %v3898_v56 = vor.u32 %v4424_v43, %v3897_v52  ;;  %v3905_v58 = vld [vmem:[#allocation3 + $0xa8] sm:$0xf]  ;;  %v4425_v38 = vld [vmem:[#allocation3 + $0xb4] sm:$0xf0]  ;;  %v3902_v30 = vor.u32 %v4422_v53, %v3899_v63 }
 0x31a   :  { %v3930_v35 = vor.u32 %v4432_v17, %v3929_v37  ;;  %v3906_v0 = vor.u32 %v4425_v38, %v3905_v58  ;;  %v4423_v1 = vld [vmem:[#allocation3 + $0xac] sm:$0xf]  ;;  %v3907_v6 = vld [vmem:[#allocation3 + $0xb8] sm:$0xf0]  ;;  %v3865_v17 = vld [vmem:[#allocation3 + $0x60] sm:$0xf]  ;;  %v3850_v44 = vor.u32 %v4412_v40, %v3849_v39 }
 0x31b   :  { %v4944_v31 = vadd.f32 %v1715_v3, %v1714_v16  ;;  %v1703_v23 = vadd.f32 %v4565_v50, %v1702_v21  ;;  %v3910_v3 = vor.u32 %v4423_v1, %v3907_v6  ;;  %2253 = vmatpush.bf16.msra.mxu1 %v3902_v30  ;;  %v3881_v16 = vld [vmem:[#allocation3 + $0x80] sm:$0xf]  ;;  %v4420_v21 = vld [vmem:[#allocation3 + $0x8c] sm:$0xf0]  ;;  %v3866_v59 = vor.u32 %v4416_v20, %v3865_v17  ;;  %v4415_v28 = vld [vmem:[#allocation3 + $0x6c] sm:$0xf] }
 0x31c   :  { %2238 = vmatpush.bf16.msra.mxu0 %v3930_v35  ;;  %2266 = vmatpush.bf16.msra.mxu2 %v3906_v0  ;;  %v3882_v33 = vor.u32 %v4420_v21, %v3881_v16  ;;  %v4414_v35 = vld [vmem:[#allocation3 + $0x64] sm:$0xf]  ;;  %v3875_v29 = vld [vmem:[#allocation3 + $0x78] sm:$0xf0]  ;;  %v4411_v63 = vld [vmem:[#allocation3 + $0x4c] sm:$0xf] }
 0x31d   :  { %4568 = vtanh.f32 %v4944_v31  ;;  %v1707_v62 = vsel %vm1706_vm14, %v4565_v50, %v1703_v23  ;;  %v3926_v50 = vor.u32 %v4427_v45, %v3923_v48  ;;  %v4418_v23 = vld [vmem:[#allocation3 + $0x84] sm:$0xf]  ;;  %v3870_v19 = vor.u32 %v4414_v35, %v3867_v46  ;;  %v3851_v45 = vld [vmem:[#allocation3 + $0x50] sm:$0xf0]  ;;  %v3857_v48 = vld [vmem:[#allocation3 + $0x48] sm:$0xf] }
 0x31e   :  { %v1712_v14 = vsel %vm1709_vm15, %v1711_v11, %v1707_v62  ;;  %v3889_v62 = vld [vmem:[#allocation3 + $0x88] sm:$0xf]  ;;  %v4421_v11 = vld [vmem:[#allocation3 + $0x94] sm:$0xf0]  ;;  %v3878_v24 = vor.u32 %v4415_v28, %v3875_v29  ;;  %v4410_v41 = vld [vmem:[#allocation3 + $0x44] sm:$0xf] }
 0x31f   :  { %2278 = vmatpush.bf16.msra.mxu3 %v3926_v50  ;;  %v4413_v50 = vld [vmem:[#allocation3 + $0x54] sm:$0xf0]  ;;  %v3854_v53 = vor.u32 %v4410_v41, %v3851_v45  ;;  %v3859_v58 = vld [vmem:[#allocation3 + $0x58] sm:$0xf0]  ;;  %v4408_v38 = vld [vmem:[#allocation3 + $0x2c] sm:$0xf0] }
 0x320   :  { %2239 = vmatpush.bf16.msra.mxu0 %v3914_v34  ;;  %v4406_v0 = vld [vmem:[#allocation3 + $0x24] sm:$0xf]  ;;  %v3835_v1 = vld [vmem:[#allocation3 + $0x30] sm:$0xf0]  ;;  %v3841_v6 = vld [vmem:[#allocation3 + $0x28] sm:$0xf] }
 0x321   :  { %v4409_v16 = vld [vmem:[#allocation3 + $0x34] sm:$0xf0]  ;;  %v4407_v21 = vld [vmem:[#allocation3 + $0x2c] sm:$0xf]  ;;  %v3819_v35 = vld [vmem:[#allocation3 + $0x10] sm:$0xf0] }
 0x322   :  { %v4405_v46 = vld [vmem:[#allocation3 + $0x14] sm:$0xf0] }
 0x323   :  { %v4569_v12 = vpop.eup %4568  ;;  %2279 = vmatpush.bf16.msra.mxu3 %v3910_v3  ;;  %v3838_v3 = vor.u32 %v4406_v0, %v3835_v1 }
 0x324   :  { %v1718_v18 = vmul.f32 %v4569_v12, %v1712_v14  ;;  %2240 = vmatpush.bf16.msra.mxu0 %v3898_v56  ;;  %v3886_v12 = vor.u32 %v4418_v23, %v3883_v42  ;;  %v3890_v14 = vor.u32 %v4421_v11, %v3889_v62  ;;  %v3858_v56 = vor.u32 %v4413_v50, %v3857_v48  ;;  %v3843_v23 = vld [vmem:[#allocation3 + $0x38] sm:$0xf0] }
 0x325   :  { %v3842_v62 = vor.u32 %v4409_v16, %v3841_v6  ;;  %v3846_v11 = vor.u32 %v4407_v21, %v3843_v23 }
 0x326   :  { %1720 = vst [vmem:[#allocation13 + $0x18] sm:$0xff] %v1718_v18  ;;  %v1726_v7 = vpack.c.bf16 %v1718_v18, %v1718_v18  ;;  %v4419_v18 = vld [vmem:[#allocation3 + $0x8c] sm:$0xf]  ;;  %2254 = vmatpush.bf16.msra.mxu1 %v3886_v12  ;;  %2267 = vmatpush.bf16.msra.mxu2 %v3890_v14  ;;  %v3817_v12 = vld [vmem:[#allocation3] sm:$0xf] }
 0x327   :  { %v4404_v14 = vld [vmem:[#allocation3 + $0xc] sm:$0xf0] }
 0x328   :  { %1927 = vmatmul.bf16.vlgmr.msrb.gmra.mxu0 %v1726_v7  ;;  %1940 = vmatmul.bf16.vlgmr.msrb.gmra.mxu1 %v1726_v7  ;;  %v3818_v20 = vor.u32 %v4404_v14, %v3817_v12 }
 0x329   :  { %1953 = vmatmul.bf16.vlgmr.msrb.gmra.mxu2 %v1726_v7  ;;  %1966 = vmatmul.bf16.vlgmr.msrb.gmra.mxu3 %v1726_v7  ;;  %v3891_v7 = vld [vmem:[#allocation3 + $0x98] sm:$0xf0] }
 0x32a   :  { %2241 = vmatpush.bf16.msra.mxu0 %v3882_v33  ;;  %v3894_v37 = vor.u32 %v4419_v18, %v3891_v7  ;;  %2255 = vmatpush.bf16.msra.mxu1 %v3870_v19  ;;  %v4402_v18 = vld [vmem:[#allocation3 + $0x4] sm:$0xf]  ;;  %v4403_v19 = vld [vmem:[#allocation3 + $0xc] sm:$0xf] }
 0x32b   :  { %2268 = vmatpush.bf16.msra.mxu2 %v3874_v25  ;;  %v3822_v22 = vor.u32 %v4402_v18, %v3819_v35  ;;  %v3827_v25 = vld [vmem:[#allocation3 + $0x18] sm:$0xf0] }
 0x32c   :  { %2280 = vmatpush.bf16.msra.mxu3 %v3894_v37 }
 0x32e   :  { %2242 = vmatpush.bf16.msra.mxu0 %v3866_v59  ;;  %2256 = vmatpush.bf16.msra.mxu1 %v3854_v53  ;;  %v3825_v59 = vld [vmem:[#allocation3 + $0x8] sm:$0xf] }
 0x32f   :  { %2269 = vmatpush.bf16.msra.mxu2 %v3858_v56  ;;  %v3826_v26 = vor.u32 %v4405_v46, %v3825_v59 }
 0x330   :  { %2281 = vmatpush.bf16.msra.mxu3 %v3878_v24 }
 0x332   :  { %2243 = vmatpush.bf16.msra.mxu0 %v3850_v44  ;;  %2257 = vmatpush.bf16.msra.mxu1 %v3838_v3 }
 0x333   :  { %2270 = vmatpush.bf16.msra.mxu2 %v3842_v62 }
 0x336   :  { %2258 = vmatpush.bf16.msra.mxu1 %v3822_v22 }
 0x337   :  { %2271 = vmatpush.bf16.msra.mxu2 %v3826_v26  ;;  %v4464_v26 = vld [vmem:[#allocation3 + $0xec] sm:$0xf0] }
 0x3a5   :  { %v1928_v32 = vpop.f32.mrf.mxu0  ;;  %v1941_v27 = vpop.f32.mrf.mxu1 }
 0x3a6   :  { %v1971_v34 = vadd.f32 %v1928_v32, %v4865_v47  ;;  %v1972_v36 = vadd.f32 %v1941_v27, %v4868_v49  ;;  %v3833_v47 = vld [vmem:[#allocation3 + $0x20] sm:$0xf]  ;;  %v3862_v49 = vor.u32 %v4411_v63, %v3859_v58  ;;  %v3830_v32 = vor.u32 %v4403_v19, %v3827_v25  ;;  %v4462_v19 = vld [vmem:[#allocation3 + $0xe4] sm:$0xf] }
 0x3a7   :  { %v3834_v30 = vor.u32 %v4408_v38, %v3833_v47 }
 0x3a8   :  { %v3812_v52 = vmul.f32 -1.442695, %v1971_v34  ;;  %v3813_v43 = vmul.f32 -1.442695, %v1972_v36  ;;  %2282 = vmatpush.bf16.msra.mxu3 %v3862_v49 }
 0x3a9   :  { %2244 = vmatpush.bf16.msra.mxu0 %v3834_v30 }
 0x3aa   :  { %4570 = vpow2.f32 %v3812_v52 }
 0x3ab   :  { %4572 = vpow2.f32 %v3813_v43 }
 0x3ac   :  { %v1954_v33 = vpop.f32.mrf.mxu2  ;;  %v1967_v42 = vpop.f32.mrf.mxu3  ;;  %2283 = vmatpush.bf16.msra.mxu3 %v3846_v11 }
 0x3ad   :  { %v1974_v7 = vadd.f32 %v1967_v42, %v4874_v54  ;;  %v1930_v37 = vpop.f32.mrf.mxu0  ;;  %v1943_v17 = vpop.f32.mrf.mxu1  ;;  %2245 = vmatpush.bf16.msra.mxu0 %v3818_v20  ;;  %v1973_v44 = vadd.f32 %v1954_v33, %v4871_v51 }
 0x3af   :  { %v3814_v28 = vmul.f32 -1.442695, %v1974_v7 }
 0x3b0   :  { %v4571_v29 = vpop.eup %4570  ;;  %2284 = vmatpush.bf16.msra.mxu3 %v3830_v32  ;;  %v4465_v32 = vld [vmem:[#allocation3 + $0xf4] sm:$0xf0] }
 0x3b1   :  { %v4573_v27 = vpop.eup %4572  ;;  %v1978_v24 = vadd.f32 1.0, %v4571_v29  ;;  %4574 = vpow2.f32 %v3814_v28  ;;  %v4062_v28 = vld [vmem:[#allocation3 + $0xf0] sm:$0xf0]  ;;  %v4068_v29 = vld [vmem:[#allocation3 + $0xe8] sm:$0xf] }
 0x3b2   :  { %v1997_v54 = vadd.f32 1.0, %v4573_v27  ;;  %v4065_v27 = vor.u32 %v4462_v19, %v4062_v28  ;;  %v4004_v19 = vld [vmem:[#allocation3 + $0x68] sm:$0xf] }
 0x3b3   :  { %4576 = vrcp.f32 %v1978_v24  ;;  %v1990_v53 = vand.u32 2147483648, %v1978_v24  ;;  %v1988_v58 = vand.u32 2147483647, %v1978_v24  ;;  %vm1984_vm2 = vweird.f32 %v1978_v24 }
 0x3b4   :  { %4578 = vrcp.f32 %v1997_v54  ;;  %v1956_v34 = vpop.f32.mrf.mxu2  ;;  %v1969_v36 = vpop.f32.mrf.mxu3  ;;  %v2009_v56 = vand.u32 2147483648, %v1997_v54  ;;  %v2007_v38 = vand.u32 2147483647, %v1997_v54  ;;  %vm2003_vm3 = vweird.f32 %v1997_v54  ;;  %2570 = vmatpush.bf16.msrb.mxu1 %v4065_v27  ;;  %v4006_v27 = vld [vmem:[#allocation3 + $0x78] sm:$0xf0] }
 0x3b5   :  { %v1991_v51 = vor.u32 1.1754944e-38, %v1990_v53  ;;  %vm1989_vm6 = vcmp.eq.f32.partialorder %v1988_v58, 8.507059e+37  ;;  %v4070_v34 = vld [vmem:[#allocation3 + $0xf8] sm:$0xf0]  ;;  %v4459_v53 = vld [vmem:[#allocation3 + $0xcc] sm:$0xf] }
 0x3b6   :  { %v2010_v6 = vor.u32 1.1754944e-38, %v2009_v56  ;;  %vm2008_vm7 = vcmp.eq.f32.partialorder %v2007_v38, 8.507059e+37  ;;  %v4054_v56 = vld [vmem:[#allocation3 + $0xd8] sm:$0xf0]  ;;  %v4028_v58 = vld [vmem:[#allocation3 + $0xa0] sm:$0xf] }
 0x3b7   :  { %v4575_v39 = vpop.eup %4574  ;;  %v4454_v38 = vld [vmem:[#allocation3 + $0xa4] sm:$0xf] }
 0x3b8   :  { %v2017_v40 = vadd.f32 1.0, %v4575_v39  ;;  %v4044_v39 = vld [vmem:[#allocation3 + $0xc0] sm:$0xf] }
 0x3b9   :  { %v4577_v41 = vpop.eup %4576 }
 0x3ba   :  { %v4579_v45 = vpop.eup %4578  ;;  %v1980_v48 = vmul.f32 %v4577_v41, %v1978_v24  ;;  %4580 = vrcp.f32 %v2017_v40  ;;  %vm1985_vm0 = vweird.f32 %v4577_v41  ;;  %v2029_v7 = vand.u32 2147483648, %v2017_v40 }
 0x3bb   :  { %v1999_v50 = vmul.f32 %v4579_v45, %v1997_v54  ;;  %4582 = vtanh.f32 %v1973_v44  ;;  %vm2004_vm1 = vweird.f32 %v4579_v45  ;;  %vm1986_vm4 = vmor %vm1984_vm2, %vm1985_vm0  ;;  %vm2023_vm9 = vweird.f32 %v2017_v40  ;;  %v4463_v54 = vld [vmem:[#allocation3 + $0xec] sm:$0xf] }
 0x3bc   :  { %v1981_v52 = vsub.f32 1.0, %v1980_v48  ;;  %vm2005_vm5 = vmor %vm2003_vm3, %vm2004_vm1  ;;  %v2027_v37 = vand.u32 2147483647, %v2017_v40  ;;  %v2030_v20 = vor.u32 1.1754944e-38, %v2029_v7  ;;  %v4069_v24 = vor.u32 %v4465_v32, %v4068_v29  ;;  %v4052_v48 = vld [vmem:[#allocation3 + $0xc8] sm:$0xf] }
 0x3bd   :  { %v2000_v43 = vsub.f32 1.0, %v1999_v50  ;;  %v4073_v36 = vor.u32 %v4463_v54, %v4070_v34  ;;  %v4461_v50 = vld [vmem:[#allocation3 + $0xd4] sm:$0xf0]  ;;  %v4447_v32 = vld [vmem:[#allocation3 + $0x6c] sm:$0xf] }
 0x3be   :  { %v1982_v63 = vmul.f32 %v4577_v41, %v1981_v52  ;;  %vm2028_vm11 = vcmp.eq.f32.partialorder %v2027_v37, 8.507059e+37  ;;  %2583 = vmatpush.bf16.msrb.mxu2 %v4069_v24  ;;  %v4009_v34 = vor.u32 %v4447_v32, %v4006_v27 }
 0x3bf   :  { %v2001_v47 = vmul.f32 %v4579_v45, %v2000_v43  ;;  %2596 = vmatpush.bf16.msrb.mxu3 %v4073_v36  ;;  %v4053_v43 = vor.u32 %v4461_v50, %v4052_v48  ;;  %v3982_v48 = vld [vmem:[#allocation3 + $0x50] sm:$0xf0]  ;;  %v3988_v50 = vld [vmem:[#allocation3 + $0x48] sm:$0xf] }
 0x3c0   :  { %v4581_v49 = vpop.eup %4580  ;;  %v1983_v30 = vadd.f32 %v4577_v41, %v1982_v63  ;;  %v4057_v63 = vor.u32 %v4459_v53, %v4054_v56 }
 0x3c1   :  { %v2002_v0 = vadd.f32 %v4579_v45, %v2001_v47  ;;  %v2019_v1 = vmul.f32 %v4581_v49, %v2017_v40  ;;  %v4583_v16 = vpop.eup %4582  ;;  %vm2024_vm8 = vweird.f32 %v4581_v49  ;;  %v4460_v40 = vld [vmem:[#allocation3 + $0xcc] sm:$0xf0] }
 0x3c2   :  { %v1987_v3 = vsel %vm1986_vm4, %v4577_v41, %v1983_v30  ;;  %vm2025_vm10 = vmor %vm2023_vm9, %vm2024_vm8  ;;  %v4458_v41 = vld [vmem:[#allocation3 + $0xc4] sm:$0xf]  ;;  %v4045_v44 = vor.u32 %v4460_v40, %v4044_v39  ;;  %2584 = vmatpush.bf16.msrb.mxu2 %v4053_v43  ;;  %v4456_v47 = vld [vmem:[#allocation3 + $0xac] sm:$0xf0] }
 0x3c3   :  { %v1992_v21 = vsel %vm1989_vm6, %v1991_v51, %v1987_v3  ;;  %v2006_v23 = vsel %vm2005_vm5, %v4579_v45, %v2002_v0  ;;  %v2020_v33 = vsub.f32 1.0, %v2019_v1  ;;  %v4046_v45 = vld [vmem:[#allocation3 + $0xd0] sm:$0xf0]  ;;  %2597 = vmatpush.bf16.msrb.mxu3 %v4057_v63  ;;  %v4036_v51 = vld [vmem:[#allocation3 + $0xa8] sm:$0xf] }
 0x3c4   :  { %v2011_v42 = vsel %vm2008_vm7, %v2010_v6, %v2006_v23  ;;  %v2034_v62 = vmul.f32 %v4583_v16, %v1992_v21  ;;  %v4049_v52 = vor.u32 %v4458_v41, %v4046_v45  ;;  %v4030_v30 = vld [vmem:[#allocation3 + $0xb0] sm:$0xf0]  ;;  %v4457_v0 = vld [vmem:[#allocation3 + $0xb4] sm:$0xf0]  ;;  %v4455_v3 = vld [vmem:[#allocation3 + $0xac] sm:$0xf] }
 0x3c5   :  { %v2033_v11 = vmul.f32 %v2011_v42, %v4944_v31  ;;  %v2021_v12 = vmul.f32 %v4581_v49, %v2020_v33  ;;  %v4060_v31 = vld [vmem:[#allocation3 + $0xe0] sm:$0xf]  ;;  %v4033_v1 = vor.u32 %v4454_v38, %v4030_v30  ;;  %v4037_v6 = vor.u32 %v4457_v0, %v4036_v51  ;;  %v4038_v16 = vld [vmem:[#allocation3 + $0xb8] sm:$0xf0]  ;;  %v4452_v33 = vld [vmem:[#allocation3 + $0x8c] sm:$0xf0] }
 0x3c6   :  { %v4061_v25 = vor.u32 %v4464_v26, %v4060_v31  ;;  %2571 = vmatpush.bf16.msrb.mxu1 %v4049_v52  ;;  %v4041_v21 = vor.u32 %v4455_v3, %v4038_v16  ;;  %v4012_v23 = vld [vmem:[#allocation3 + $0x80] sm:$0xf]  ;;  %v4450_v42 = vld [vmem:[#allocation3 + $0x84] sm:$0xf]  ;;  %v3998_v26 = vld [vmem:[#allocation3 + $0x70] sm:$0xf0] }
 0x3c7   :  { %v4952_v14 = vadd.f32 %v2034_v62, %v2033_v11  ;;  %v2022_v18 = vadd.f32 %v4581_v49, %v2021_v12  ;;  %2585 = vmatpush.bf16.msrb.mxu2 %v4037_v6  ;;  %v4013_v62 = vor.u32 %v4452_v33, %v4012_v23  ;;  %v4014_v11 = vld [vmem:[#allocation3 + $0x90] sm:$0xf0]  ;;  %v4020_v12 = vld [vmem:[#allocation3 + $0x88] sm:$0xf]  ;;  %v3980_v40 = vld [vmem:[#allocation3 + $0x40] sm:$0xf] }
 0x3c8   :  { %2557 = vmatpush.bf16.msrb.mxu0 %v4061_v25  ;;  %2598 = vmatpush.bf16.msrb.mxu3 %v4041_v21  ;;  %v4017_v7 = vor.u32 %v4450_v42, %v4014_v11  ;;  %v4449_v25 = vld [vmem:[#allocation3 + $0x74] sm:$0xf0]  ;;  %v4444_v41 = vld [vmem:[#allocation3 + $0x4c] sm:$0xf0]  ;;  %v4438_v30 = vld [vmem:[#allocation3 + $0x24] sm:$0xf] }
 0x3c9   :  { %4584 = vtanh.f32 %v4952_v14  ;;  %v2026_v17 = vsel %vm2025_vm10, %v4581_v49, %v2022_v18  ;;  %v4029_v49 = vor.u32 %v4456_v47, %v4028_v58  ;;  %v4453_v18 = vld [vmem:[#allocation3 + $0x94] sm:$0xf0]  ;;  %v4005_v29 = vor.u32 %v4449_v25, %v4004_v19  ;;  %v4443_v58 = vld [vmem:[#allocation3 + $0x4c] sm:$0xf]  ;;  %v3990_v47 = vld [vmem:[#allocation3 + $0x58] sm:$0xf0] }
 0x3ca   :  { %v2031_v59 = vsel %vm2028_vm11, %v2030_v20, %v2026_v17  ;;  %2572 = vmatpush.bf16.msrb.mxu1 %v4033_v1  ;;  %v4021_v37 = vor.u32 %v4453_v18, %v4020_v12  ;;  %v4451_v17 = vld [vmem:[#allocation3 + $0x8c] sm:$0xf]  ;;  %v4022_v20 = vld [vmem:[#allocation3 + $0x98] sm:$0xf0]  ;;  %v3981_v45 = vor.u32 %v4444_v41, %v3980_v40  ;;  %v4445_v52 = vld [vmem:[#allocation3 + $0x54] sm:$0xf0] }
 0x3cb   :  { %v3989_v63 = vor.u32 %v4445_v52, %v3988_v50  ;;  %v4440_v38 = vld [vmem:[#allocation3 + $0x2c] sm:$0xf0]  ;;  %v3966_v51 = vld [vmem:[#allocation3 + $0x30] sm:$0xf0]  ;;  %v3972_v0 = vld [vmem:[#allocation3 + $0x28] sm:$0xf] }
 0x3cc   :  { %2558 = vmatpush.bf16.msrb.mxu0 %v4045_v44  ;;  %2586 = vmatpush.bf16.msrb.mxu2 %v4021_v37  ;;  %v4442_v44 = vld [vmem:[#allocation3 + $0x44] sm:$0xf]  ;;  %v3969_v1 = vor.u32 %v4438_v30, %v3966_v51  ;;  %v4441_v6 = vld [vmem:[#allocation3 + $0x34] sm:$0xf0]  ;;  %v4439_v3 = vld [vmem:[#allocation3 + $0x2c] sm:$0xf] }
 0x3cd   :  { %v3985_v56 = vor.u32 %v4442_v44, %v3982_v48  ;;  %v3974_v16 = vld [vmem:[#allocation3 + $0x38] sm:$0xf0]  ;;  %v3973_v33 = vor.u32 %v4441_v6, %v3972_v0  ;;  %v4436_v11 = vld [vmem:[#allocation3 + $0xc] sm:$0xf0]  ;;  %v4434_v12 = vld [vmem:[#allocation3 + $0x4] sm:$0xf] }
 0x3ce   :  { %2573 = vmatpush.bf16.msrb.mxu1 %v4017_v7  ;;  %v3977_v42 = vor.u32 %v4439_v3, %v3974_v16 }
 0x3cf   :  { %v4585_v35 = vpop.eup %4584 }
 0x3d0   :  { %v2037_v46 = vmul.f32 %v4585_v35, %v2031_v59  ;;  %2559 = vmatpush.bf16.msrb.mxu0 %v4029_v49  ;;  %v4025_v35 = vor.u32 %v4451_v17, %v4022_v20  ;;  %v3996_v59 = vld [vmem:[#allocation3 + $0x60] sm:$0xf]  ;;  %2587 = vmatpush.bf16.msrb.mxu2 %v4005_v29  ;;  %v3950_v20 = vld [vmem:[#allocation3 + $0x10] sm:$0xf0] }
 0x3d2   :  { %2039 = vst [vmem:[#allocation13 + $0x20] sm:$0xff] %v2037_v46  ;;  %v2045_v22 = vpack.c.bf16 %v2037_v46, %v2037_v46  ;;  %v4448_v46 = vld [vmem:[#allocation3 + $0x6c] sm:$0xf0]  ;;  %2599 = vmatpush.bf16.msrb.mxu3 %v4025_v35  ;;  %v3956_v35 = vld [vmem:[#allocation3 + $0x8] sm:$0xf] }
 0x3d3   :  { %v3997_v31 = vor.u32 %v4448_v46, %v3996_v59  ;;  %v4437_v59 = vld [vmem:[#allocation3 + $0x14] sm:$0xf0]  ;;  %v3953_v46 = vor.u32 %v4434_v12, %v3950_v20  ;;  %v4496_v20 = vld [vmem:[#allocation3 + $0xec] sm:$0xf0] }
 0x3d4   :  { %2246 = vmatmul.bf16.vlgmr.msra.gmra.mxu0 %v2045_v22  ;;  %2259 = vmatmul.bf16.vlgmr.msra.gmra.mxu1 %v2045_v22 }
 0x3d5   :  { %2272 = vmatmul.bf16.vlgmr.msra.gmra.mxu2 %v2045_v22  ;;  %2285 = vmatmul.bf16.vlgmr.msra.gmra.mxu3 %v2045_v22  ;;  %v4446_v22 = vld [vmem:[#allocation3 + $0x64] sm:$0xf] }
 0x3d6   :  { %2560 = vmatpush.bf16.msrb.mxu0 %v4013_v62  ;;  %v4001_v28 = vor.u32 %v4446_v22, %v3998_v26  ;;  %2600 = vmatpush.bf16.msrb.mxu3 %v4009_v34  ;;  %v3948_v62 = vld [vmem:[#allocation3] sm:$0xf]  ;;  %v3957_v22 = vor.u32 %v4437_v59, %v3956_v35  ;;  %v3958_v26 = vld [vmem:[#allocation3 + $0x18] sm:$0xf0]  ;;  %v4494_v35 = vld [vmem:[#allocation3 + $0xe4] sm:$0xf] }
 0x3d7   :  { %2588 = vmatpush.bf16.msrb.mxu2 %v3989_v63  ;;  %v3949_v17 = vor.u32 %v4436_v11, %v3948_v62 }
 0x3d8   :  { %2574 = vmatpush.bf16.msrb.mxu1 %v4001_v28 }
 0x3da   :  { %2561 = vmatpush.bf16.msrb.mxu0 %v3997_v31  ;;  %v4435_v31 = vld [vmem:[#allocation3 + $0xc] sm:$0xf] }
 0x3db   :  { %2589 = vmatpush.bf16.msrb.mxu2 %v3973_v33  ;;  %v3961_v28 = vor.u32 %v4435_v31, %v3958_v26  ;;  %v4497_v31 = vld [vmem:[#allocation3 + $0xf4] sm:$0xf0] }
 0x3dc   :  { %2575 = vmatpush.bf16.msrb.mxu1 %v3985_v56 }
 0x3de   :  { %2562 = vmatpush.bf16.msrb.mxu0 %v3981_v45 }
 0x3df   :  { %2590 = vmatpush.bf16.msrb.mxu2 %v3957_v22  ;;  %v4199_v22 = vld [vmem:[#allocation3 + $0xe8] sm:$0xf] }
 0x3e0   :  { %2576 = vmatpush.bf16.msrb.mxu1 %v3969_v1 }
 0x3e4   :  { %2577 = vmatpush.bf16.msrb.mxu1 %v3953_v46  ;;  %v4193_v46 = vld [vmem:[#allocation3 + $0xf0] sm:$0xf0] }
 0x3e5   :  { %v4196_v26 = vor.u32 %v4494_v35, %v4193_v46  ;;  %v4479_v35 = vld [vmem:[#allocation3 + $0x6c] sm:$0xf] }
 0x3e8   :  { %2889 = vmatpush.bf16.msra.mxu1 %v4196_v26 }
 0x451   :  { %v2247_v24 = vpop.f32.mrf.mxu0  ;;  %v2260_v54 = vpop.f32.mrf.mxu1 }
 0x452   :  { %v2290_v36 = vadd.f32 %v2247_v24, %v4877_v55  ;;  %v2291_v39 = vadd.f32 %v2260_v54, %v4880_v57  ;;  %v3964_v55 = vld [vmem:[#allocation3 + $0x20] sm:$0xf]  ;;  %v3993_v57 = vor.u32 %v4443_v58, %v3990_v47 }
 0x453   :  { %v3965_v49 = vor.u32 %v4440_v38, %v3964_v55 }
 0x454   :  { %v3943_v43 = vmul.f32 -1.442695, %v2290_v36  ;;  %v3944_v53 = vmul.f32 -1.442695, %v2291_v39  ;;  %2601 = vmatpush.bf16.msrb.mxu3 %v3993_v57 }
 0x455   :  { %2563 = vmatpush.bf16.msrb.mxu0 %v3965_v49 }
 0x456   :  { %4586 = vpow2.f32 %v3943_v43 }
 0x457   :  { %4588 = vpow2.f32 %v3944_v53 }
 0x458   :  { %v2273_v21 = vpop.f32.mrf.mxu2  ;;  %v2286_v23 = vpop.f32.mrf.mxu3  ;;  %2602 = vmatpush.bf16.msrb.mxu3 %v3977_v42 }
 0x459   :  { %v2293_v18 = vadd.f32 %v2286_v23, %v4886_v9  ;;  %v2249_v7 = vpop.f32.mrf.mxu0  ;;  %v2262_v37 = vpop.f32.mrf.mxu1  ;;  %2564 = vmatpush.bf16.msrb.mxu0 %v3949_v17  ;;  %v2292_v39 = vadd.f32 %v2273_v21, %v4883_v2 }
 0x45b   :  { %v3945_v19 = vmul.f32 -1.442695, %v2293_v18 }
 0x45c   :  { %v4587_v25 = vpop.eup %4586  ;;  %2603 = vmatpush.bf16.msrb.mxu3 %v3961_v28  ;;  %v4201_v28 = vld [vmem:[#allocation3 + $0xf8] sm:$0xf0] }
 0x45d   :  { %v4589_v29 = vpop.eup %4588  ;;  %v2297_v32 = vadd.f32 1.0, %v4587_v25  ;;  %4590 = vpow2.f32 %v3945_v19  ;;  %v4200_v19 = vor.u32 %v4497_v31, %v4199_v22  ;;  %v4495_v25 = vld [vmem:[#allocation3 + $0xec] sm:$0xf] }
 0x45e   :  { %v2316_v9 = vadd.f32 1.0, %v4589_v29  ;;  %v4204_v29 = vor.u32 %v4495_v25, %v4201_v28  ;;  %v4111_v25 = vld [vmem:[#allocation3 + $0x40] sm:$0xf]  ;;  %v4476_v28 = vld [vmem:[#allocation3 + $0x4c] sm:$0xf0] }
 0x45f   :  { %4592 = vrcp.f32 %v2297_v32  ;;  %v2309_v50 = vand.u32 2147483648, %v2297_v32  ;;  %v2307_v53 = vand.u32 2147483647, %v2297_v32  ;;  %vm2303_vm14 = vweird.f32 %v2297_v32  ;;  %2902 = vmatpush.bf16.msra.mxu2 %v4200_v19 }
 0x460   :  { %4594 = vrcp.f32 %v2316_v9  ;;  %v2275_v27 = vpop.f32.mrf.mxu2  ;;  %v2288_v24 = vpop.f32.mrf.mxu3  ;;  %v2328_v52 = vand.u32 2147483648, %v2316_v9  ;;  %v2326_v63 = vand.u32 2147483647, %v2316_v9  ;;  %vm2322_vm15 = vweird.f32 %v2316_v9  ;;  %2915 = vmatpush.bf16.msra.mxu3 %v4204_v29  ;;  %v4474_v29 = vld [vmem:[#allocation3 + $0x44] sm:$0xf] }
 0x461   :  { %v2310_v2 = vor.u32 1.1754944e-38, %v2309_v50  ;;  %vm2308_vm2 = vcmp.eq.f32.partialorder %v2307_v53, 8.507059e+37  ;;  %v4490_v27 = vld [vmem:[#allocation3 + $0xc4] sm:$0xf]  ;;  %v4488_v50 = vld [vmem:[#allocation3 + $0xac] sm:$0xf0] }
 0x462   :  { %v2329_v57 = vor.u32 1.1754944e-38, %v2328_v52  ;;  %vm2327_vm3 = vcmp.eq.f32.partialorder %v2326_v63, 8.507059e+37  ;;  %v4486_v52 = vld [vmem:[#allocation3 + $0xa4] sm:$0xf]  ;;  %v4161_v53 = vld [vmem:[#allocation3 + $0xb0] sm:$0xf0] }
 0x463   :  { %v4591_v54 = vpop.eup %4590  ;;  %v4489_v63 = vld [vmem:[#allocation3 + $0xb4] sm:$0xf0] }
 0x464   :  { %v2336_v34 = vadd.f32 1.0, %v4591_v54  ;;  %v4177_v54 = vld [vmem:[#allocation3 + $0xd0] sm:$0xf0] }
 0x465   :  { %v4593_v36 = vpop.eup %4592 }
 0x466   :  { %v4595_v40 = vpop.eup %4594  ;;  %v2299_v41 = vmul.f32 %v4593_v36, %v2297_v32  ;;  %4596 = vrcp.f32 %v2336_v34  ;;  %vm2304_vm12 = vweird.f32 %v4593_v36  ;;  %v2348_v42 = vand.u32 2147483648, %v2336_v34  ;;  %v4175_v32 = vld [vmem:[#allocation3 + $0xc0] sm:$0xf] }
 0x467   :  { %v2318_v44 = vmul.f32 %v4595_v40, %v2316_v9  ;;  %4598 = vtanh.f32 %v2292_v39  ;;  %vm2323_vm13 = vweird.f32 %v4595_v40  ;;  %vm2305_vm0 = vmor %vm2303_vm14, %vm2304_vm12  ;;  %vm2342_vm5 = vweird.f32 %v2336_v34  ;;  %v4492_v9 = vld [vmem:[#allocation3 + $0xcc] sm:$0xf0] }
 0x468   :  { %v2300_v45 = vsub.f32 1.0, %v2299_v41  ;;  %vm2324_vm1 = vmor %vm2322_vm15, %vm2323_vm13  ;;  %v2346_v62 = vand.u32 2147483647, %v2336_v34  ;;  %v2349_v12 = vor.u32 1.1754944e-38, %v2348_v42  ;;  %v4176_v24 = vor.u32 %v4492_v9, %v4175_v32  ;;  %v4491_v41 = vld [vmem:[#allocation3 + $0xcc] sm:$0xf] }
 0x469   :  { %v2319_v48 = vsub.f32 1.0, %v2318_v44  ;;  %v4180_v39 = vor.u32 %v4490_v27, %v4177_v54  ;;  %v4185_v44 = vld [vmem:[#allocation3 + $0xd8] sm:$0xf0]  ;;  %v4112_v32 = vor.u32 %v4476_v28, %v4111_v25  ;;  %v4113_v9 = vld [vmem:[#allocation3 + $0x50] sm:$0xf0] }
 0x46a   :  { %v2301_v43 = vmul.f32 %v4593_v36, %v2300_v45  ;;  %vm2347_vm7 = vcmp.eq.f32.partialorder %v2346_v62, 8.507059e+37  ;;  %v4188_v45 = vor.u32 %v4491_v41, %v4185_v44  ;;  %v4127_v62 = vld [vmem:[#allocation3 + $0x60] sm:$0xf]  ;;  %v4119_v27 = vld [vmem:[#allocation3 + $0x48] sm:$0xf] }
 0x46b   :  { %v2320_v56 = vmul.f32 %v4595_v40, %v2319_v48  ;;  %2890 = vmatpush.bf16.msra.mxu1 %v4180_v39  ;;  %v4159_v48 = vld [vmem:[#allocation3 + $0xa0] sm:$0xf]  ;;  %v4121_v41 = vld [vmem:[#allocation3 + $0x58] sm:$0xf0]  ;;  %v4472_v44 = vld [vmem:[#allocation3 + $0x2c] sm:$0xf0] }
 0x46c   :  { %v4597_v58 = vpop.eup %4596  ;;  %v2302_v47 = vadd.f32 %v4593_v36, %v2301_v43  ;;  %2916 = vmatpush.bf16.msra.mxu3 %v4188_v45  ;;  %v4160_v43 = vor.u32 %v4488_v50, %v4159_v48  ;;  %v4470_v48 = vld [vmem:[#allocation3 + $0x24] sm:$0xf]  ;;  %v4097_v50 = vld [vmem:[#allocation3 + $0x30] sm:$0xf0] }
 0x46d   :  { %v2321_v55 = vadd.f32 %v4595_v40, %v2320_v56  ;;  %v2338_v38 = vmul.f32 %v4597_v58, %v2336_v34  ;;  %v4599_v30 = vpop.eup %4598  ;;  %vm2343_vm4 = vweird.f32 %v4597_v58  ;;  %v4183_v34 = vld [vmem:[#allocation3 + $0xc8] sm:$0xf] }
 0x46e   :  { %v2306_v49 = vsel %vm2305_vm0, %v4593_v36, %v2302_v47  ;;  %vm2344_vm6 = vmor %vm2342_vm5, %vm2343_vm4  ;;  %v4493_v36 = vld [vmem:[#allocation3 + $0xd4] sm:$0xf0]  ;;  %v4167_v56 = vld [vmem:[#allocation3 + $0xa8] sm:$0xf] }
 0x46f   :  { %v2311_v51 = vsel %vm2308_vm2, %v2310_v2, %v2306_v49  ;;  %v2325_v0 = vsel %vm2324_vm1, %v4595_v40, %v2321_v55  ;;  %v2339_v1 = vsub.f32 1.0, %v2338_v38  ;;  %v4184_v40 = vor.u32 %v4493_v36, %v4183_v34  ;;  %v4487_v2 = vld [vmem:[#allocation3 + $0xac] sm:$0xf]  ;;  %v4169_v55 = vld [vmem:[#allocation3 + $0xb8] sm:$0xf0] }
 0x470   :  { %v2330_v6 = vsel %vm2327_vm3, %v2329_v57, %v2325_v0  ;;  %v2353_v3 = vmul.f32 %v4599_v30, %v2311_v51  ;;  %v4168_v47 = vor.u32 %v4489_v63, %v4167_v56  ;;  %v4172_v38 = vor.u32 %v4487_v2, %v4169_v55  ;;  %v4143_v57 = vld [vmem:[#allocation3 + $0x80] sm:$0xf]  ;;  %v4484_v49 = vld [vmem:[#allocation3 + $0x8c] sm:$0xf0]  ;;  %v4482_v30 = vld [vmem:[#allocation3 + $0x84] sm:$0xf] }
 0x471   :  { %v2352_v16 = vmul.f32 %v2330_v6, %v4952_v14  ;;  %v2340_v21 = vmul.f32 %v4597_v58, %v2339_v1  ;;  %v4191_v14 = vld [vmem:[#allocation3 + $0xe0] sm:$0xf]  ;;  %2903 = vmatpush.bf16.msra.mxu2 %v4184_v40  ;;  %v4144_v51 = vor.u32 %v4484_v49, %v4143_v57  ;;  %v4145_v0 = vld [vmem:[#allocation3 + $0x90] sm:$0xf0]  ;;  %v4151_v1 = vld [vmem:[#allocation3 + $0x88] sm:$0xf]  ;;  %v4116_v36 = vor.u32 %v4474_v29, %v4113_v9 }
 0x472   :  { %v4192_v59 = vor.u32 %v4496_v20, %v4191_v14  ;;  %2917 = vmatpush.bf16.msra.mxu3 %v4172_v38  ;;  %v4485_v6 = vld [vmem:[#allocation3 + $0x94] sm:$0xf0]  ;;  %v4475_v40 = vld [vmem:[#allocation3 + $0x4c] sm:$0xf]  ;;  %v4105_v63 = vld [vmem:[#allocation3 + $0x38] sm:$0xf0] }
 0x473   :  { %v4960_v23 = vadd.f32 %v2353_v3, %v2352_v16  ;;  %v2341_v33 = vadd.f32 %v4597_v58, %v2340_v21  ;;  %v4148_v3 = vor.u32 %v4482_v30, %v4145_v0  ;;  %v4152_v16 = vor.u32 %v4485_v6, %v4151_v1  ;;  %v4483_v21 = vld [vmem:[#allocation3 + $0x8c] sm:$0xf]  ;;  %v4079_v38 = vld [vmem:[#allocation3] sm:$0xf]  ;;  %v4468_v57 = vld [vmem:[#allocation3 + $0xc] sm:$0xf0] }
 0x474   :  { %2876 = vmatpush.bf16.msra.mxu0 %v4192_v59  ;;  %v4137_v59 = vld [vmem:[#allocation3 + $0x78] sm:$0xf0]  ;;  %v4471_v56 = vld [vmem:[#allocation3 + $0x2c] sm:$0xf]  ;;  %v4466_v49 = vld [vmem:[#allocation3 + $0x4] sm:$0xf]  ;;  %v4080_v1 = vor.u32 %v4468_v57, %v4079_v38 }
 0x475   :  { %4600 = vtanh.f32 %v4960_v23  ;;  %v2345_v11 = vsel %vm2344_vm6, %v4597_v58, %v2341_v33  ;;  %v4164_v58 = vor.u32 %v4486_v52, %v4161_v53  ;;  %2904 = vmatpush.bf16.msra.mxu2 %v4168_v47  ;;  %v4153_v33 = vld [vmem:[#allocation3 + $0x98] sm:$0xf0]  ;;  %v4140_v31 = vor.u32 %v4479_v35, %v4137_v59  ;;  %v4103_v52 = vld [vmem:[#allocation3 + $0x28] sm:$0xf]  ;;  %v4473_v53 = vld [vmem:[#allocation3 + $0x34] sm:$0xf0] }
 0x476   :  { %v2350_v7 = vsel %vm2347_vm7, %v2349_v12, %v2345_v11  ;;  %v4156_v42 = vor.u32 %v4483_v21, %v4153_v33  ;;  %v4480_v11 = vld [vmem:[#allocation3 + $0x6c] sm:$0xf0]  ;;  %v4478_v12 = vld [vmem:[#allocation3 + $0x64] sm:$0xf]  ;;  %v4104_v2 = vor.u32 %v4473_v53, %v4103_v52  ;;  %v4108_v55 = vor.u32 %v4471_v56, %v4105_v63  ;;  %v4081_v6 = vld [vmem:[#allocation3 + $0x10] sm:$0xf0] }
 0x477   :  { %2891 = vmatpush.bf16.msra.mxu1 %v4164_v58  ;;  %v4084_v21 = vor.u32 %v4466_v49, %v4081_v6 }
 0x478   :  { %2877 = vmatpush.bf16.msra.mxu0 %v4176_v24  ;;  %2918 = vmatpush.bf16.msra.mxu3 %v4156_v42  ;;  %v4477_v24 = vld [vmem:[#allocation3 + $0x54] sm:$0xf0]  ;;  %v4467_v42 = vld [vmem:[#allocation3 + $0xc] sm:$0xf] }
 0x479   :  { %2905 = vmatpush.bf16.msra.mxu2 %v4152_v16  ;;  %v4120_v39 = vor.u32 %v4477_v24, %v4119_v27  ;;  %v4469_v16 = vld [vmem:[#allocation3 + $0x14] sm:$0xf0] }
 0x47b   :  { %v4601_v18 = vpop.eup %4600  ;;  %2892 = vmatpush.bf16.msra.mxu1 %v4148_v3  ;;  %v4087_v3 = vld [vmem:[#allocation3 + $0x8] sm:$0xf] }
 0x47c   :  { %v2356_v37 = vmul.f32 %v4601_v18, %v2350_v7  ;;  %2878 = vmatpush.bf16.msra.mxu0 %v4160_v43  ;;  %v4128_v18 = vor.u32 %v4480_v11, %v4127_v62  ;;  %v4129_v7 = vld [vmem:[#allocation3 + $0x70] sm:$0xf0]  ;;  %2919 = vmatpush.bf16.msra.mxu3 %v4140_v31  ;;  %v4100_v43 = vor.u32 %v4470_v48, %v4097_v50  ;;  %v4089_v62 = vld [vmem:[#allocation3 + $0x18] sm:$0xf0] }
 0x47d   :  { %v4132_v14 = vor.u32 %v4478_v12, %v4129_v7  ;;  %v4088_v33 = vor.u32 %v4469_v16, %v4087_v3 }
 0x47e   :  { %2358 = vst [vmem:[#allocation13 + $0x28] sm:$0xff] %v2356_v37  ;;  %v2364_v17 = vpack.c.bf16 %v2356_v37, %v2356_v37  ;;  %v4135_v37 = vld [vmem:[#allocation3 + $0x68] sm:$0xf] }
 0x47f   :  { %2893 = vmatpush.bf16.msra.mxu1 %v4132_v14 }
 0x480   :  { %2565 = vmatmul.bf16.vlgmr.msrb.gmra.mxu0 %v2364_v17  ;;  %2578 = vmatmul.bf16.vlgmr.msrb.gmra.mxu1 %v2364_v17 }
 0x481   :  { %2591 = vmatmul.bf16.vlgmr.msrb.gmra.mxu2 %v2364_v17  ;;  %2604 = vmatmul.bf16.vlgmr.msrb.gmra.mxu3 %v2364_v17  ;;  %v4481_v17 = vld [vmem:[#allocation3 + $0x74] sm:$0xf0] }
 0x482   :  { %2879 = vmatpush.bf16.msra.mxu0 %v4144_v51  ;;  %v4136_v20 = vor.u32 %v4481_v17, %v4135_v37 }
 0x483   :  { %2894 = vmatpush.bf16.msra.mxu1 %v4116_v36 }
 0x484   :  { %2906 = vmatpush.bf16.msra.mxu2 %v4136_v20 }
 0x486   :  { %2880 = vmatpush.bf16.msra.mxu0 %v4128_v18  ;;  %v4092_v18 = vor.u32 %v4467_v42, %v4089_v62 }
 0x487   :  { %2895 = vmatpush.bf16.msra.mxu1 %v4100_v43 }
 0x488   :  { %2907 = vmatpush.bf16.msra.mxu2 %v4120_v39 }
 0x48a   :  { %2881 = vmatpush.bf16.msra.mxu0 %v4112_v32 }
 0x48b   :  { %2896 = vmatpush.bf16.msra.mxu1 %v4084_v21 }
 0x48c   :  { %2908 = vmatpush.bf16.msra.mxu2 %v4104_v2 }
 0x490   :  { %2909 = vmatpush.bf16.msra.mxu2 %v4088_v33 }
 0x4fd   :  { %v2566_v46 = vpop.f32.mrf.mxu0  ;;  %v2579_v22 = vpop.f32.mrf.mxu1 }
 0x4fe   :  { %v2609_v26 = vadd.f32 %v2566_v46, %v4889_v10  ;;  %v2610_v19 = vadd.f32 %v2579_v22, %v4892_v15  ;;  %v4095_v10 = vld [vmem:[#allocation3 + $0x20] sm:$0xf]  ;;  %v4124_v15 = vor.u32 %v4475_v40, %v4121_v41 }
 0x4ff   :  { %v4096_v45 = vor.u32 %v4472_v44, %v4095_v10 }
 0x500   :  { %v4074_v54 = vmul.f32 -1.442695, %v2609_v26  ;;  %v4075_v34 = vmul.f32 -1.442695, %v2610_v19  ;;  %2920 = vmatpush.bf16.msra.mxu3 %v4124_v15 }
 0x501   :  { %2882 = vmatpush.bf16.msra.mxu0 %v4096_v45 }
 0x502   :  { %4602 = vpow2.f32 %v4074_v54 }
 0x503   :  { %4604 = vpow2.f32 %v4075_v34 }
 0x504   :  { %v2592_v58 = vpop.f32.mrf.mxu2  ;;  %v2605_v47 = vpop.f32.mrf.mxu3  ;;  %2921 = vmatpush.bf16.msra.mxu3 %v4108_v55 }
 0x505   :  { %v2612_v30 = vadd.f32 %v2605_v47, %v4898_v4  ;;  %v2568_v51 = vpop.f32.mrf.mxu0  ;;  %v2581_v0 = vpop.f32.mrf.mxu1  ;;  %2883 = vmatpush.bf16.msra.mxu0 %v4080_v1  ;;  %v2611_v46 = vadd.f32 %v2592_v58, %v4895_v60 }
 0x507   :  { %v4076_v11 = vmul.f32 -1.442695, %v2612_v30 }
 0x508   :  { %v4603_v12 = vpop.eup %4602  ;;  %2922 = vmatpush.bf16.msra.mxu3 %v4092_v18 }
 0x509   :  { %v4605_v7 = vpop.eup %4604  ;;  %v2616_v37 = vadd.f32 1.0, %v4603_v12  ;;  %4606 = vpow2.f32 %v4076_v11 }
 0x50a   :  { %v2635_v4 = vadd.f32 1.0, %v4605_v7 }
 0x50b   :  { %4608 = vrcp.f32 %v2616_v37  ;;  %v2628_v28 = vand.u32 2147483648, %v2616_v37  ;;  %v2626_v9 = vand.u32 2147483647, %v2616_v37  ;;  %vm2622_vm10 = vweird.f32 %v2616_v37 }
 0x50c   :  { %4610 = vrcp.f32 %v2635_v4  ;;  %v2594_v17 = vpop.f32.mrf.mxu2  ;;  %v2607_v14 = vpop.f32.mrf.mxu3  ;;  %v2647_v29 = vand.u32 2147483648, %v2635_v4  ;;  %v2645_v24 = vand.u32 2147483647, %v2635_v4  ;;  %vm2641_vm11 = vweird.f32 %v2635_v4 }
 0x50d   :  { %v2629_v60 = vor.u32 1.1754944e-38, %v2628_v28  ;;  %vm2627_vm14 = vcmp.eq.f32.partialorder %v2626_v9, 8.507059e+37 }
 0x50e   :  { %v2648_v40 = vor.u32 1.1754944e-38, %v2647_v29  ;;  %vm2646_vm15 = vcmp.eq.f32.partialorder %v2645_v24, 8.507059e+37 }
 0x50f   :  { %v4607_v20 = vpop.eup %4606 }
 0x510   :  { %v2655_v35 = vadd.f32 1.0, %v4607_v20 }
 0x511   :  { %v4609_v59 = vpop.eup %4608 }
 0x512   :  { %v4611_v22 = vpop.eup %4610  ;;  %v2618_v31 = vmul.f32 %v4609_v59, %v2616_v37  ;;  %4612 = vrcp.f32 %v2655_v35  ;;  %vm2623_vm8 = vweird.f32 %v4609_v59  ;;  %v2667_v63 = vand.u32 2147483648, %v2655_v35 }
 0x513   :  { %v2637_v26 = vmul.f32 %v4611_v22, %v2635_v4  ;;  %4614 = vtanh.f32 %v2611_v46  ;;  %vm2642_vm9 = vweird.f32 %v4611_v22  ;;  %vm2624_vm12 = vmor %vm2622_vm10, %vm2623_vm8  ;;  %vm2661_vm1 = vweird.f32 %v2655_v35 }
 0x514   :  { %v2619_v19 = vsub.f32 1.0, %v2618_v31  ;;  %vm2643_vm13 = vmor %vm2641_vm11, %vm2642_vm9  ;;  %v2665_v58 = vand.u32 2147483647, %v2655_v35  ;;  %v2668_v2 = vor.u32 1.1754944e-38, %v2667_v63 }
 0x515   :  { %v2638_v25 = vsub.f32 1.0, %v2637_v26 }
 0x516   :  { %v2620_v32 = vmul.f32 %v4609_v59, %v2619_v19  ;;  %vm2666_vm3 = vcmp.eq.f32.partialorder %v2665_v58, 8.507059e+37 }
 0x517   :  { %v2639_v27 = vmul.f32 %v4611_v22, %v2638_v25 }
 0x518   :  { %v4613_v54 = vpop.eup %4612  ;;  %v2621_v34 = vadd.f32 %v4609_v59, %v2620_v32 }
 0x519   :  { %v2640_v36 = vadd.f32 %v4611_v22, %v2639_v27  ;;  %v2657_v39 = vmul.f32 %v4613_v54, %v2655_v35  ;;  %v4615_v10 = vpop.eup %4614  ;;  %vm2662_vm0 = vweird.f32 %v4613_v54 }
 0x51a   :  { %v2625_v41 = vsel %vm2624_vm12, %v4609_v59, %v2621_v34  ;;  %vm2663_vm2 = vmor %vm2661_vm1, %vm2662_vm0 }
 0x51b   :  { %v2630_v44 = vsel %vm2627_vm14, %v2629_v60, %v2625_v41  ;;  %v2644_v15 = vsel %vm2643_vm13, %v4611_v22, %v2640_v36  ;;  %v2658_v45 = vsub.f32 1.0, %v2657_v39 }
 0x51c   :  { %v2649_v48 = vsel %vm2646_vm15, %v2648_v40, %v2644_v15  ;;  %v2672_v50 = vmul.f32 %v4615_v10, %v2630_v44 }
 0x51d   :  { %v2671_v52 = vmul.f32 %v2649_v48, %v4960_v23  ;;  %v2659_v43 = vmul.f32 %v4613_v54, %v2658_v45 }
 0x51f   :  { %v4968_v53 = vadd.f32 %v2672_v50, %v2671_v52  ;;  %v2660_v56 = vadd.f32 %v4613_v54, %v2659_v43 }
 0x521   :  { %4616 = vtanh.f32 %v4968_v53  ;;  %v2664_v47 = vsel %vm2663_vm2, %v4613_v54, %v2660_v56 }
 0x522   :  { %v2669_v38 = vsel %vm2666_vm3, %v2668_v2, %v2664_v47 }
 0x527   :  { %v4617_v55 = vpop.eup %4616 }
 0x528   :  { %v2675_v57 = vmul.f32 %v4617_v55, %v2669_v38 }
 0x52a   :  { %2677 = vst [vmem:[#allocation13 + $0x30] sm:$0xff] %v2675_v57  ;;  %v2683_v49 = vpack.c.bf16 %v2675_v57, %v2675_v57 }
 0x52c   :  { %2884 = vmatmul.bf16.vlgmr.msra.gmra.mxu0 %v2683_v49  ;;  %2897 = vmatmul.bf16.vlgmr.msra.gmra.mxu1 %v2683_v49 }
 0x52d   :  { %2910 = vmatmul.bf16.vlgmr.msra.gmra.mxu2 %v2683_v49  ;;  %2923 = vmatmul.bf16.vlgmr.msra.gmra.mxu3 %v2683_v49 }
 0x5a9   :  { %v2885_v23 = vpop.f32.mrf.mxu0  ;;  %v2898_v30 = vpop.f32.mrf.mxu1 }
 0x5aa   :  { %v2928_v51 = vadd.f32 %v2885_v23, %v4901_v5  ;;  %v2929_v0 = vadd.f32 %v2898_v30, %v4904_v8 }
 0x5ac   :  { %v4205_v1 = vmul.f32 -1.442695, %v2928_v51  ;;  %v4206_v6 = vmul.f32 -1.442695, %v2929_v0 }
 0x5ae   :  { %4618 = vpow2.f32 %v4205_v1 }
 0x5af   :  { %4620 = vpow2.f32 %v4206_v6 }
 0x5b0   :  { %v2911_v3 = vpop.f32.mrf.mxu2  ;;  %v2924_v16 = vpop.f32.mrf.mxu3 }
 0x5b1   :  { %v2931_v21 = vadd.f32 %v2924_v16, %v4914_v13  ;;  %v2887_v33 = vpop.f32.mrf.mxu0  ;;  %v2900_v42 = vpop.f32.mrf.mxu1  ;;  %v2930_v14 = vadd.f32 %v2911_v3, %v4911_v61 }
 0x5b3   :  { %v4207_v62 = vmul.f32 -1.442695, %v2931_v21 }
 0x5b4   :  { %v4619_v11 = vpop.eup %4618 }
 0x5b5   :  { %v4621_v12 = vpop.eup %4620  ;;  %v2935_v18 = vadd.f32 1.0, %v4619_v11  ;;  %4622 = vpow2.f32 %v4207_v62 }
 0x5b6   :  { %v2954_v7 = vadd.f32 1.0, %v4621_v12 }
 0x5b7   :  { %4624 = vrcp.f32 %v2935_v18  ;;  %v2947_v22 = vand.u32 2147483648, %v2935_v18  ;;  %v2945_v19 = vand.u32 2147483647, %v2935_v18  ;;  %vm2941_vm6 = vweird.f32 %v2935_v18 }
 0x5b8   :  { %4626 = vrcp.f32 %v2954_v7  ;;  %v2913_v5 = vpop.f32.mrf.mxu2  ;;  %v2926_v8 = vpop.f32.mrf.mxu3  ;;  %v2966_v31 = vand.u32 2147483648, %v2954_v7  ;;  %v2964_v28 = vand.u32 2147483647, %v2954_v7  ;;  %vm2960_vm7 = vweird.f32 %v2954_v7 }
 0x5b9   :  { %v2948_v61 = vor.u32 1.1754944e-38, %v2947_v22  ;;  %vm2946_vm10 = vcmp.eq.f32.partialorder %v2945_v19, 8.507059e+37 }
 0x5ba   :  { %v2967_v24 = vor.u32 1.1754944e-38, %v2966_v31  ;;  %vm2965_vm11 = vcmp.eq.f32.partialorder %v2964_v28, 8.507059e+37 }
 0x5bb   :  { %v4623_v37 = vpop.eup %4622 }
 0x5bc   :  { %v2974_v4 = vadd.f32 1.0, %v4623_v37 }
 0x5bd   :  { %v4625_v17 = vpop.eup %4624 }
 0x5be   :  { %v4627_v20 = vpop.eup %4626  ;;  %v2937_v35 = vmul.f32 %v4625_v17, %v2935_v18  ;;  %4628 = vrcp.f32 %v2974_v4  ;;  %vm2942_vm4 = vweird.f32 %v4625_v17  ;;  %v2986_v48 = vand.u32 2147483648, %v2974_v4 }
 0x5bf   :  { %v2956_v13 = vmul.f32 %v4627_v20, %v2954_v7  ;;  %4630 = vtanh.f32 %v2930_v14  ;;  %vm2961_vm5 = vweird.f32 %v4627_v20  ;;  %vm2943_vm8 = vmor %vm2941_vm6, %vm2942_vm4  ;;  %vm2980_vm13 = vweird.f32 %v2974_v4 }
 0x5c0   :  { %v2938_v59 = vsub.f32 1.0, %v2937_v35  ;;  %vm2962_vm9 = vmor %vm2960_vm7, %vm2961_vm5  ;;  %v2984_v50 = vand.u32 2147483647, %v2974_v4  ;;  %v2987_v43 = vor.u32 1.1754944e-38, %v2986_v48 }
 0x5c1   :  { %v2957_v46 = vsub.f32 1.0, %v2956_v13 }
 0x5c2   :  { %v2939_v26 = vmul.f32 %v4625_v17, %v2938_v59  ;;  %vm2985_vm15 = vcmp.eq.f32.partialorder %v2984_v50, 8.507059e+37 }
 0x5c3   :  { %v2958_v25 = vmul.f32 %v4627_v20, %v2957_v46 }
 0x5c4   :  { %v4629_v29 = vpop.eup %4628  ;;  %v2940_v32 = vadd.f32 %v4625_v17, %v2939_v26 }
 0x5c5   :  { %v2959_v9 = vadd.f32 %v4627_v20, %v2958_v25  ;;  %v2976_v27 = vmul.f32 %v4629_v29, %v2974_v4  ;;  %v4631_v34 = vpop.eup %4630  ;;  %vm2981_vm12 = vweird.f32 %v4629_v29 }
 0x5c6   :  { %v2944_v54 = vsel %vm2943_vm8, %v4625_v17, %v2940_v32  ;;  %vm2982_vm14 = vmor %vm2980_vm13, %vm2981_vm12 }
 0x5c7   :  { %v2949_v60 = vsel %vm2946_vm10, %v2948_v61, %v2944_v54  ;;  %v2963_v36 = vsel %vm2962_vm9, %v4627_v20, %v2959_v9  ;;  %v2977_v39 = vsub.f32 1.0, %v2976_v27 }
 0x5c8   :  { %v2968_v40 = vsel %vm2965_vm11, %v2967_v24, %v2963_v36  ;;  %v2991_v41 = vmul.f32 %v4631_v34, %v2949_v60 }
 0x5c9   :  { %v2990_v10 = vmul.f32 %v2968_v40, %v4968_v53  ;;  %v2978_v44 = vmul.f32 %v4629_v29, %v2977_v39 }
 0x5cb   :  { %v2992_v15 = vadd.f32 %v2991_v41, %v2990_v10  ;;  %v2979_v45 = vadd.f32 %v4629_v29, %v2978_v44 }
 0x5cd   :  { %4632 = vtanh.f32 %v2992_v15  ;;  %v2983_v52 = vsel %vm2982_vm14, %v4629_v29, %v2979_v45 }
 0x5ce   :  { %v2988_v53 = vsel %vm2985_vm15, %v2987_v43, %v2983_v52 }
 0x5d3   :  { %v4633_v56 = vpop.eup %4632 }
 0x5d4   :  { %v2994_v63 = vmul.f32 %v4633_v56, %v2988_v53 }
 0x5d6   :  { %2996 = vst [vmem:[#allocation13 + $0x38] sm:$0xff] %v2994_v63 }
 0x5d7   :  { %3011 = dma.vmem_to_hbm [thread:$0]  %s3004_s2, 1024, %s3006_s11, [#allocation10], %s4765_s23, %s4765_s23, %s4766_s24  }
 0x5d8   :  { %4762 = dma.done.wait [#allocation10], 1024  }
 0x5d9   :  { %4763 = vsyncadd [#allocation10], 4294966272 }
 0x5da   :  { %3016 = vsyncpa [#allocation9], 1 }
 0x5db   :  { %3017 = vsyncpa [#allocation12], 1 }
 0x5dc   :  { %3018 = vsyncpa [#allocation10], 1 }
 0x5dd   :  { %3019 = vsyncmov [#allocation7] }
 0x5e0   :  { %s3020_s12 = vpop.sfrf %3019 }
 0x5e1   :  { %p4208_p0 = scmp.ne.s32.totalorder %s3020_s12, 0 }
 0x5e3   :  { %3024 = shalt.err (%p4208_p0)  }
 0x5e4   :  { %3026 = vsyncmov [#allocation7 + $0x1] }
 0x5e7   :  { %s3027_s4 = vpop.sfrf %3026 }
 0x5e8   :  { %p4209_p1 = scmp.ne.s32.totalorder %s3027_s4, 0 }
 0x5ea   :  { %3031 = shalt.err (%p4209_p1)  }

</bundles_post_ra>
